<compile_context>
chip_gen: v7x
topology: tpu7x:2x2x1
jax: 0.10.0
libtpu: 0.0.40
codegen_flags: <defaults>
</compile_context>

<pallas_src>
import functools

import numpy as np
import jax
import jax.numpy as jnp
from jax import lax
from jax.experimental import pallas as pl
from jax.experimental.pallas import tpu as pltpu

EPS = 1e-5
LANE = 128      # TPU lane width: channel / packed-K dims padded to multiples of this
ROW_BLK = 128   # target rows of the flattened padded image per inner step


def _round_up(x, m):
    return ((x + m - 1) // m) * m


# ----------------------------- fused Pallas kernel -------------------------- #

def _residual_block_kernel(xp_ref, mask_ref, w1_ref, scale1_ref, shift1_ref,
                           w2_ref, wd_ref, shift2_ref,
                           o_ref, h1p_ref, *, H, W):
    # xp_ref:        (Rp, Cpk) bf16  im2col-packed, spatially padded input
    #                                (lanes = 9 taps x Cin, centre tap at 4*Cin)
    # mask_ref:      (Rp, 1)   f32   1.0 on interior pixels, 0.0 on padding ring
    # w1_ref:        (Cpk, Cpo) bf16 packed conv1 weights
    # scale1/shift1: (1, Cpo)  f32   conv1 bias + BN1 folded affine
    # w2_ref:        (3, 3*Cpo, Cpo) bf16  conv2 weights, per-dy lane-concat layout
    # wd_ref:        (Cpk, Cpo) bf16 1x1 downsample weights * BNd scale, in the
    #                                centre-tap lane rows of the packed K axis
    # shift2_ref:    (1, Cpo)  f32   conv2 bias + downsample bias + BNd shift
    # o_ref:         (Rp, Cpo) bf16  output in the flattened padded layout
    # h1p_ref:       (Rp, Cpo) bf16  VMEM scratch: padded conv1+BN+ReLU result
    Wp = W + 2
    Rp = (H + 2) * Wp
    band0 = Wp + 1                    # flat row of padded pixel (1, 1)
    Rband = Rp - 2 * band0            # rows spanning padded (1,1)..(H,W)
    Cpo = o_ref.shape[-1]

    # Hoisted epilogue row vectors (block loops below are fully unrolled; JAX
    # does not CSE repeated load+broadcast).
    scale1 = scale1_ref[...]
    shift1 = shift1_ref[...]
    shift2 = shift2_ref[...]

    # Zero only the never-written top/bottom border bands: they are conv2's
    # spatial zero padding (h1p) and keep the HBM output deterministic (o).
    # Interior rows are fully overwritten below; in-band ring pixels are zeroed
    # by the mask in stage 1.
    h1p_ref[pl.ds(0, band0), :] = jnp.zeros((band0, Cpo), h1p_ref.dtype)
    h1p_ref[pl.ds(Rp - band0, band0), :] = jnp.zeros((band0, Cpo), h1p_ref.dtype)
    o_ref[pl.ds(0, band0), :] = jnp.zeros((band0, Cpo), o_ref.dtype)
    o_ref[pl.ds(Rp - band0, band0), :] = jnp.zeros((band0, Cpo), o_ref.dtype)

    # Near-exact tiling of the interior band: pick blk so n_blocks*blk barely
    # exceeds Rband (tail block clamps by at most blk-1 rows).
    n_blocks = -(-Rband // ROW_BLK)
    blk = min(_round_up(-(-Rband // n_blocks), 8), Rband)
    n_blocks = -(-Rband // blk)

    # ---- stage 1: conv1 as ONE im2col matmul per block + BN1 affine + ReLU ----
    for i in range(n_blocks):
        r0 = band0 + min(i * blk, Rband - blk)        # clamp tail (tiny overlap)
        acc = jnp.dot(xp_ref[pl.ds(r0, blk), :], w1_ref[...],
                      preferred_element_type=jnp.float32)
        y = jnp.maximum(acc * scale1 + shift1, 0.0)
        y = y * mask_ref[pl.ds(r0, blk), :]           # re-zero in-band ring pixels
        h1p_ref[pl.ds(r0, blk), :] = y.astype(h1p_ref.dtype)

    # ---- stage 2: conv2 (3 matmuls/block via per-dy lane concat) fused with
    #      the 1x1 downsample (accumulator init), residual add, final ReLU ------
    for i in range(n_blocks):
        r0 = band0 + min(i * blk, Rband - blk)
        # downsample path seeds the accumulator (BNd scale already in wd_ref)
        acc = jnp.dot(xp_ref[pl.ds(r0, blk), :], wd_ref[...],
                      preferred_element_type=jnp.float32)
        for dy in range(3):
            off = (dy - 1) * Wp - 1
            lhs = jnp.concatenate(
                [h1p_ref[pl.ds(r0 + off + dx, blk), :] for dx in range(3)],
                axis=-1)                               # (blk, 3*Cpo), free lane concat
            acc = acc + jnp.dot(lhs, w2_ref[dy],
                                preferred_element_type=jnp.float32)
        o_ref[pl.ds(r0, blk), :] = jnp.maximum(acc + shift2, 0.0).astype(o_ref.dtype)


# ----------------------------- forward pass -------------------------------- #

@jax.jit
def residual_block_forward(x_nchw, p):
    x = jnp.transpose(x_nchw, (0, 2, 3, 1))           # NCHW -> NHWC
    N, H, W, Cin = x.shape
    Cout = p['w1'].shape[-1]
    Cpo = _round_up(Cout, LANE)
    Cpk = _round_up(9 * Cin, LANE)
    Wp, Rp = W + 2, (H + 2) * (W + 2)

    # im2col pack: double spatial pad, then the 9 shifted (H+2, W+2) windows are
    # concatenated on the channel axis -> conv1 is one K=Cpk matmul per block.
    # Lanes [4*Cin:5*Cin) hold the centre pixel and also feed the 1x1 downsample.
    xp2 = jnp.pad(x, ((0, 0), (2, 2), (2, 2), (0, 0)))
    xp = jnp.concatenate(
        [xp2[:, dy:dy + H + 2, dx:dx + W + 2, :]
         for dy in range(3) for dx in range(3)], axis=-1)      # (N, H+2, W+2, 9*Cin)
    xp = jnp.pad(xp, ((0, 0), (0, 0), (0, 0), (0, Cpk - 9 * Cin)))
    xp = xp.reshape(N, Rp, Cpk).astype(jnp.bfloat16)

    # interior-pixel mask in the flattened padded layout (static, tiny).
    r = np.arange(Rp)
    interior = ((r % Wp >= 1) & (r % Wp <= W) & (r // Wp >= 1) & (r // Wp <= H))
    mask = jnp.asarray(interior.astype(np.float32))[:, None]   # (Rp, 1)

    # fold conv biases + eval-mode BatchNorm into affines; pack weights for the
    # im2col / per-dy lane-concat layouts used in the kernel.
    s1 = p['bn1_gamma'] / jnp.sqrt(p['bn1_var'] + EPS)
    sd = p['bnd_gamma'] / jnp.sqrt(p['bnd_var'] + EPS)

    def pad_row(v):                                    # (Cout,) -> (1, Cpo) f32
        return jnp.pad(v, (0, Cpo - Cout))[None, :].astype(jnp.float32)

    scale1 = pad_row(s1)
    shift1 = pad_row(s1 * p['b1'] + p['bn1_beta'] - p['bn1_mean'] * s1)
    shift2 = pad_row(sd * p['bd'] + p['bnd_beta'] - p['bnd_mean'] * sd + p['b2'])

    w1p = jnp.pad(p['w1'].reshape(9 * Cin, Cout),      # rows ordered (dy, dx, cin)
                  ((0, Cpk - 9 * Cin), (0, Cpo - Cout))).astype(jnp.bfloat16)
    w2p = jnp.pad(p['w2'], ((0, 0), (0, 0), (0, Cpo - Cout), (0, Cpo - Cout)))
    w2p = w2p.reshape(3, 3 * Cpo, Cpo).astype(jnp.bfloat16)
    wdp = jnp.pad(p['wd'] * sd[None, :],               # BNd scale folded into wd
                  ((4 * Cin, Cpk - 5 * Cin), (0, Cpo - Cout))).astype(jnp.bfloat16)

    def full_spec(arr):                                # whole array, resident block
        nd = arr.ndim
        return pl.BlockSpec(arr.shape, lambda n, nd=nd: (0,) * nd)

    grid_spec = pltpu.PrefetchScalarGridSpec(
        num_scalar_prefetch=0,
        grid=(N,),                                     # one image per grid step
        in_specs=[
            pl.BlockSpec((None, Rp, Cpk), lambda n: (n, 0, 0)),        # xp (packed)
            full_spec(mask), full_spec(w1p), full_spec(scale1), full_spec(shift1),
            full_spec(w2p), full_spec(wdp), full_spec(shift2),
        ],
        out_specs=pl.BlockSpec((None, Rp, Cpo), lambda n: (n, 0, 0)),
        scratch_shapes=[pltpu.VMEM((Rp, Cpo), jnp.bfloat16)],          # padded h1
    )

    out_flat = pl.pallas_call(
        functools.partial(_residual_block_kernel, H=H, W=W),
        out_shape=jax.ShapeDtypeStruct((N, Rp, Cpo), jnp.bfloat16),
        grid_spec=grid_spec,
        compiler_params=pltpu.CompilerParams(
            dimension_semantics=("parallel",)),        # batch images across TCs (v7x)
    )(xp, mask, w1p, scale1, shift1, w2p, wdp, shift2)

    out = out_flat.reshape(N, H + 2, W + 2, Cpo)[:, 1:H + 1, 1:W + 1, :Cout]
    return jnp.transpose(out.astype(jnp.float32), (0, 3, 1, 2))   # NHWC -> NCHW


# ----------------------------- params / reference -------------------------- #

def init_params(key, cin, cout):
    ks = jax.random.split(key, 14)
    p = {}
    p['w1'] = 0.1 * jax.random.normal(ks[0], (3, 3, cin, cout), jnp.float32)
    p['b1'] = 0.1 * jax.random.normal(ks[1], (cout,), jnp.float32)
    p['w2'] = 0.1 * jax.random.normal(ks[2], (3, 3, cout, cout), jnp.float32)
    p['b2'] = 0.1 * jax.random.normal(ks[3], (cout,), jnp.float32)
    p['wd'] = 0.1 * jax.random.normal(ks[4], (cin, cout), jnp.float32)
    p['bd'] = 0.1 * jax.random.normal(ks[5], (cout,), jnp.float32)
    p['bn1_gamma'] = 1.0 + 0.1 * jax.random.normal(ks[6], (cout,), jnp.float32)
    p['bn1_beta'] = 0.1 * jax.random.normal(ks[7], (cout,), jnp.float32)
    p['bn1_mean'] = 0.1 * jax.random.normal(ks[8], (cout,), jnp.float32)
    p['bn1_var'] = jnp.abs(jax.random.normal(ks[9], (cout,), jnp.float32)) + 0.5
    p['bnd_gamma'] = 1.0 + 0.1 * jax.random.normal(ks[10], (cout,), jnp.float32)
    p['bnd_beta'] = 0.1 * jax.random.normal(ks[11], (cout,), jnp.float32)
    p['bnd_mean'] = 0.1 * jax.random.normal(ks[12], (cout,), jnp.float32)
    p['bnd_var'] = jnp.abs(jax.random.normal(ks[13], (cout,), jnp.float32)) + 0.5
    return p


def ref_forward(x_nchw, p):
    dn = ('NCHW', 'OIHW', 'NCHW')

    def conv(x, w_hwio, b, pad):
        w = jnp.transpose(w_hwio, (3, 2, 0, 1))       # HWIO -> OIHW
        y = lax.conv_general_dilated(x, w, window_strides=(1, 1), padding=pad,
                                     dimension_numbers=dn,
                                     precision=lax.Precision.HIGHEST)
        return y + b[None, :, None, None]

    def bn(x, g, b, m, v):
        return (x - m[None, :, None, None]) / jnp.sqrt(
            v[None, :, None, None] + EPS) * g[None, :, None, None] + \
            b[None, :, None, None]

    h = conv(x_nchw, p['w1'], p['b1'], [(1, 1), (1, 1)])
    h = bn(h, p['bn1_gamma'], p['bn1_beta'], p['bn1_mean'], p['bn1_var'])
    h = jnp.maximum(h, 0.0)
    h = conv(h, p['w2'], p['b2'], [(1, 1), (1, 1)])
    idn = conv(x_nchw, p['wd'][None, None], p['bd'], [(0, 0), (0, 0)])
    idn = bn(idn, p['bnd_gamma'], p['bnd_beta'], p['bnd_mean'], p['bnd_var'])
    return jnp.maximum(h + idn, 0.0)


# ----------------------------- main ---------------------------------------- #

if __name__ == "__main__":
    key = jax.random.PRNGKey(0)
    kx, kp = jax.random.split(key)

    N, Cin, Cout, H, W = 2, 4, 8, 16, 16  # stride = 1 (see note at top)
    x = jax.random.normal(kx, (N, Cin, H, W), jnp.float32)
    params = init_params(kp, Cin, Cout)

    out = jax.block_until_ready(residual_block_forward(x, params))
    ref = jax.block_until_ready(ref_forward(x, params))

    # bf16 MXU operands / bf16 output (f32 accumulation) vs f32 HIGHEST reference.
    np.testing.assert_allclose(np.asarray(out), np.asarray(ref),
                               rtol=2e-2, atol=2e-2)
    print("KERNEL_OK")
</pallas_src>

<mosaic_0001>
module attributes {stable_mosaic.version = 11 : i64} {
  func.func @_residual_block_kernel(%arg0: i32, %arg1: memref<1x324x128xbf16, #tpu.memory_space<vmem>>, %arg2: memref<324x1xf32, #tpu.memory_space<vmem>>, %arg3: memref<128x128xbf16, #tpu.memory_space<vmem>>, %arg4: memref<1x128xf32, #tpu.memory_space<vmem>>, %arg5: memref<1x128xf32, #tpu.memory_space<vmem>>, %arg6: memref<3x384x128xbf16, #tpu.memory_space<vmem>>, %arg7: memref<128x128xbf16, #tpu.memory_space<vmem>>, %arg8: memref<1x128xf32, #tpu.memory_space<vmem>>, %arg9: memref<1x324x128xbf16, #tpu.memory_space<vmem>>, %arg10: memref<324x128xbf16, #tpu.memory_space<vmem>>) attributes {dimension_semantics = [#tpu.dimension_semantics<parallel>], iteration_bounds = array<i64: 2>, scalar_prefetch = 0 : i64, scratch_operands = 1 : i64, tpu.core_type = #tpu.core_type<tc>, window_params = [{transform_indices = @transform_0, window_bounds = array<i64: 1, 324, 128>}, {pipeline_mode = #tpu.pipeline_mode<synchronous>, transform_indices = @transform_1, window_bounds = array<i64: 324, 1>}, {pipeline_mode = #tpu.pipeline_mode<synchronous>, transform_indices = @transform_2, window_bounds = array<i64: 128, 128>}, {pipeline_mode = #tpu.pipeline_mode<synchronous>, transform_indices = @transform_3, window_bounds = array<i64: 1, 128>}, {pipeline_mode = #tpu.pipeline_mode<synchronous>, transform_indices = @transform_4, window_bounds = array<i64: 1, 128>}, {pipeline_mode = #tpu.pipeline_mode<synchronous>, transform_indices = @transform_5, window_bounds = array<i64: 3, 384, 128>}, {pipeline_mode = #tpu.pipeline_mode<synchronous>, transform_indices = @transform_6, window_bounds = array<i64: 128, 128>}, {pipeline_mode = #tpu.pipeline_mode<synchronous>, transform_indices = @transform_7, window_bounds = array<i64: 1, 128>}, {transform_indices = @transform_8, window_bounds = array<i64: 1, 324, 128>}]} {
    %c0 = arith.constant 0 : index
    %c0_0 = arith.constant 0 : index
    %0 = vector.load %arg4[%c0, %c0_0] : memref<1x128xf32, #tpu.memory_space<vmem>>, vector<1x128xf32>
    %c0_1 = arith.constant 0 : index
    %c0_2 = arith.constant 0 : index
    %1 = vector.load %arg5[%c0_1, %c0_2] : memref<1x128xf32, #tpu.memory_space<vmem>>, vector<1x128xf32>
    %c0_3 = arith.constant 0 : index
    %c0_4 = arith.constant 0 : index
    %2 = vector.load %arg8[%c0_3, %c0_4] : memref<1x128xf32, #tpu.memory_space<vmem>>, vector<1x128xf32>
    %cst = arith.constant 0.000000e+00 : bf16
    %3 = vector.broadcast %cst : bf16 to vector<19x128xbf16>
    %c0_5 = arith.constant 0 : index
    %c0_6 = arith.constant 0 : index
    %4 = vector.load %arg10[%c0_5, %c0_6] : memref<324x128xbf16, #tpu.memory_space<vmem>>, vector<19x128xbf16>
    tpu.vector_store %arg10[%c0_5, %c0_6], %3 {strides = array<i32>} : memref<324x128xbf16, #tpu.memory_space<vmem>>, vector<19x128xbf16>,
    %cst_7 = arith.constant 0.000000e+00 : bf16
    %5 = vector.broadcast %cst_7 : bf16 to vector<19x128xbf16>
    %c305 = arith.constant 305 : index
    %c0_8 = arith.constant 0 : index
    %6 = vector.load %arg10[%c305, %c0_8] : memref<324x128xbf16, #tpu.memory_space<vmem>>, vector<19x128xbf16>
    tpu.vector_store %arg10[%c305, %c0_8], %5 {strides = array<i32>} : memref<324x128xbf16, #tpu.memory_space<vmem>>, vector<19x128xbf16>,
    %cst_9 = arith.constant 0.000000e+00 : bf16
    %7 = vector.broadcast %cst_9 : bf16 to vector<19x128xbf16>
    %c0_10 = arith.constant 0 : index
    %c0_11 = arith.constant 0 : index
    %c0_12 = arith.constant 0 : index
    %8 = vector.load %arg9[%c0_10, %c0_11, %c0_12] : memref<1x324x128xbf16, #tpu.memory_space<vmem>>, vector<1x19x128xbf16>
    %9 = vector.shape_cast %8 : vector<1x19x128xbf16> to vector<19x128xbf16>
    %10 = vector.shape_cast %7 : vector<19x128xbf16> to vector<1x19x128xbf16>
    tpu.vector_store %arg9[%c0_10, %c0_11, %c0_12], %10 {strides = array<i32>} : memref<1x324x128xbf16, #tpu.memory_space<vmem>>, vector<1x19x128xbf16>,
    %cst_13 = arith.constant 0.000000e+00 : bf16
    %11 = vector.broadcast %cst_13 : bf16 to vector<19x128xbf16>
    %c0_14 = arith.constant 0 : index
    %c305_15 = arith.constant 305 : index
    %c0_16 = arith.constant 0 : index
    %12 = vector.load %arg9[%c0_14, %c305_15, %c0_16] : memref<1x324x128xbf16, #tpu.memory_space<vmem>>, vector<1x19x128xbf16>
    %13 = vector.shape_cast %12 : vector<1x19x128xbf16> to vector<19x128xbf16>
    %14 = vector.shape_cast %11 : vector<19x128xbf16> to vector<1x19x128xbf16>
    tpu.vector_store %arg9[%c0_14, %c305_15, %c0_16], %14 {strides = array<i32>} : memref<1x324x128xbf16, #tpu.memory_space<vmem>>, vector<1x19x128xbf16>,
    %c0_17 = arith.constant 0 : index
    %c19 = arith.constant 19 : index
    %c0_18 = arith.constant 0 : index
    %15 = vector.load %arg1[%c0_17, %c19, %c0_18] : memref<1x324x128xbf16, #tpu.memory_space<vmem>>, vector<1x96x128xbf16>
    %16 = vector.shape_cast %15 : vector<1x96x128xbf16> to vector<96x128xbf16>
    %c0_19 = arith.constant 0 : index
    %c0_20 = arith.constant 0 : index
    %17 = vector.load %arg3[%c0_19, %c0_20] : memref<128x128xbf16, #tpu.memory_space<vmem>>, vector<128x128xbf16>
    %cst_21 = arith.constant dense<0.000000e+00> : vector<96x128xf32>
    %18 = tpu.matmul %16, %17, %cst_21 {dimension_numbers = #tpu.dot_dimension_numbers<[1], [0], [0], [1], [0, 0, 1, 1], [], []>} : vector<96x128xbf16>, vector<128x128xbf16>, vector<96x128xf32> -> vector<96x128xf32>
    %19 = vector.broadcast %0 : vector<1x128xf32> to vector<96x128xf32>
    %20 = arith.mulf %18, %19 : vector<96x128xf32>
    %21 = vector.broadcast %1 : vector<1x128xf32> to vector<96x128xf32>
    %22 = arith.addf %20, %21 : vector<96x128xf32>
    %cst_22 = arith.constant 0.000000e+00 : f32
    %23 = vector.broadcast %cst_22 : f32 to vector<96x128xf32>
    %24 = arith.maximumf %22, %23 : vector<96x128xf32>
    %c19_23 = arith.constant 19 : index
    %c0_24 = arith.constant 0 : index
    %25 = vector.load %arg2[%c19_23, %c0_24] : memref<324x1xf32, #tpu.memory_space<vmem>>, vector<96x1xf32>
    %26 = vector.broadcast %25 : vector<96x1xf32> to vector<96x128xf32>
    %27 = arith.mulf %24, %26 : vector<96x128xf32>
    %28 = arith.truncf %27 : vector<96x128xf32> to vector<96x128xbf16>
    %c19_25 = arith.constant 19 : index
    %c0_26 = arith.constant 0 : index
    %29 = vector.load %arg10[%c19_25, %c0_26] : memref<324x128xbf16, #tpu.memory_space<vmem>>, vector<96x128xbf16>
    tpu.vector_store %arg10[%c19_25, %c0_26], %28 {strides = array<i32>} : memref<324x128xbf16, #tpu.memory_space<vmem>>, vector<96x128xbf16>,
    %c0_27 = arith.constant 0 : index
    %c115 = arith.constant 115 : index
    %c0_28 = arith.constant 0 : index
    %30 = vector.load %arg1[%c0_27, %c115, %c0_28] : memref<1x324x128xbf16, #tpu.memory_space<vmem>>, vector<1x96x128xbf16>
    %31 = vector.shape_cast %30 : vector<1x96x128xbf16> to vector<96x128xbf16>
    %c0_29 = arith.constant 0 : index
    %c0_30 = arith.constant 0 : index
    %32 = vector.load %arg3[%c0_29, %c0_30] : memref<128x128xbf16, #tpu.memory_space<vmem>>, vector<128x128xbf16>
    %cst_31 = arith.constant dense<0.000000e+00> : vector<96x128xf32>
    %33 = tpu.matmul %31, %32, %cst_31 {dimension_numbers = #tpu.dot_dimension_numbers<[1], [0], [0], [1], [0, 0, 1, 1], [], []>} : vector<96x128xbf16>, vector<128x128xbf16>, vector<96x128xf32> -> vector<96x128xf32>
    %34 = vector.broadcast %0 : vector<1x128xf32> to vector<96x128xf32>
    %35 = arith.mulf %33, %34 : vector<96x128xf32>
    %36 = vector.broadcast %1 : vector<1x128xf32> to vector<96x128xf32>
    %37 = arith.addf %35, %36 : vector<96x128xf32>
    %cst_32 = arith.constant 0.000000e+00 : f32
    %38 = vector.broadcast %cst_32 : f32 to vector<96x128xf32>
    %39 = arith.maximumf %37, %38 : vector<96x128xf32>
    %c115_33 = arith.constant 115 : index
    %c0_34 = arith.constant 0 : index
    %40 = vector.load %arg2[%c115_33, %c0_34] : memref<324x1xf32, #tpu.memory_space<vmem>>, vector<96x1xf32>
    %41 = vector.broadcast %40 : vector<96x1xf32> to vector<96x128xf32>
    %42 = arith.mulf %39, %41 : vector<96x128xf32>
    %43 = arith.truncf %42 : vector<96x128xf32> to vector<96x128xbf16>
    %c115_35 = arith.constant 115 : index
    %c0_36 = arith.constant 0 : index
    %44 = vector.load %arg10[%c115_35, %c0_36] : memref<324x128xbf16, #tpu.memory_space<vmem>>, vector<96x128xbf16>
    tpu.vector_store %arg10[%c115_35, %c0_36], %43 {strides = array<i32>} : memref<324x128xbf16, #tpu.memory_space<vmem>>, vector<96x128xbf16>,
    %c0_37 = arith.constant 0 : index
    %c209 = arith.constant 209 : index
    %c0_38 = arith.constant 0 : index
    %45 = vector.load %arg1[%c0_37, %c209, %c0_38] : memref<1x324x128xbf16, #tpu.memory_space<vmem>>, vector<1x96x128xbf16>
    %46 = vector.shape_cast %45 : vector<1x96x128xbf16> to vector<96x128xbf16>
    %c0_39 = arith.constant 0 : index
    %c0_40 = arith.constant 0 : index
    %47 = vector.load %arg3[%c0_39, %c0_40] : memref<128x128xbf16, #tpu.memory_space<vmem>>, vector<128x128xbf16>
    %cst_41 = arith.constant dense<0.000000e+00> : vector<96x128xf32>
    %48 = tpu.matmul %46, %47, %cst_41 {dimension_numbers = #tpu.dot_dimension_numbers<[1], [0], [0], [1], [0, 0, 1, 1], [], []>} : vector<96x128xbf16>, vector<128x128xbf16>, vector<96x128xf32> -> vector<96x128xf32>
    %49 = vector.broadcast %0 : vector<1x128xf32> to vector<96x128xf32>
    %50 = arith.mulf %48, %49 : vector<96x128xf32>
    %51 = vector.broadcast %1 : vector<1x128xf32> to vector<96x128xf32>
    %52 = arith.addf %50, %51 : vector<96x128xf32>
    %cst_42 = arith.constant 0.000000e+00 : f32
    %53 = vector.broadcast %cst_42 : f32 to vector<96x128xf32>
    %54 = arith.maximumf %52, %53 : vector<96x128xf32>
    %c209_43 = arith.constant 209 : index
    %c0_44 = arith.constant 0 : index
    %55 = vector.load %arg2[%c209_43, %c0_44] : memref<324x1xf32, #tpu.memory_space<vmem>>, vector<96x1xf32>
    %56 = vector.broadcast %55 : vector<96x1xf32> to vector<96x128xf32>
    %57 = arith.mulf %54, %56 : vector<96x128xf32>
    %58 = arith.truncf %57 : vector<96x128xf32> to vector<96x128xbf16>
    %c209_45 = arith.constant 209 : index
    %c0_46 = arith.constant 0 : index
    %59 = vector.load %arg10[%c209_45, %c0_46] : memref<324x128xbf16, #tpu.memory_space<vmem>>, vector<96x128xbf16>
    tpu.vector_store %arg10[%c209_45, %c0_46], %58 {strides = array<i32>} : memref<324x128xbf16, #tpu.memory_space<vmem>>, vector<96x128xbf16>,
    %c0_47 = arith.constant 0 : index
    %c19_48 = arith.constant 19 : index
    %c0_49 = arith.constant 0 : index
    %60 = vector.load %arg1[%c0_47, %c19_48, %c0_49] : memref<1x324x128xbf16, #tpu.memory_space<vmem>>, vector<1x96x128xbf16>
    %61 = vector.shape_cast %60 : vector<1x96x128xbf16> to vector<96x128xbf16>
    %c0_50 = arith.constant 0 : index
    %c0_51 = arith.constant 0 : index
    %62 = vector.load %arg7[%c0_50, %c0_51] : memref<128x128xbf16, #tpu.memory_space<vmem>>, vector<128x128xbf16>
    %cst_52 = arith.constant dense<0.000000e+00> : vector<96x128xf32>
    %63 = tpu.matmul %61, %62, %cst_52 {dimension_numbers = #tpu.dot_dimension_numbers<[1], [0], [0], [1], [0, 0, 1, 1], [], []>} : vector<96x128xbf16>, vector<128x128xbf16>, vector<96x128xf32> -> vector<96x128xf32>
    %c0_53 = arith.constant 0 : index
    %c0_54 = arith.constant 0 : index
    %64 = vector.load %arg10[%c0_53, %c0_54] : memref<324x128xbf16, #tpu.memory_space<vmem>>, vector<96x128xbf16>
    %c1 = arith.constant 1 : index
    %c0_55 = arith.constant 0 : index
    %65 = vector.load %arg10[%c1, %c0_55] : memref<324x128xbf16, #tpu.memory_space<vmem>>, vector<96x128xbf16>
    %c2 = arith.constant 2 : index
    %c0_56 = arith.constant 0 : index
    %66 = vector.load %arg10[%c2, %c0_56] : memref<324x128xbf16, #tpu.memory_space<vmem>>, vector<96x128xbf16>
    %67 = tpu.concatenate %64, %65, %66 in 1 : vector<96x128xbf16>, vector<96x128xbf16>, vector<96x128xbf16> -> vector<96x384xbf16>
    %c0_57 = arith.constant 0 : index
    %c0_58 = arith.constant 0 : index
    %c0_59 = arith.constant 0 : index
    %68 = vector.load %arg6[%c0_57, %c0_58, %c0_59] : memref<3x384x128xbf16, #tpu.memory_space<vmem>>, vector<1x384x128xbf16>
    %69 = vector.shape_cast %68 : vector<1x384x128xbf16> to vector<384x128xbf16>
    %cst_60 = arith.constant dense<0.000000e+00> : vector<96x128xf32>
    %70 = tpu.matmul %67, %69, %cst_60 {dimension_numbers = #tpu.dot_dimension_numbers<[1], [0], [0], [1], [0, 0, 1, 1], [], []>} : vector<96x384xbf16>, vector<384x128xbf16>, vector<96x128xf32> -> vector<96x128xf32>
    %71 = arith.addf %63, %70 : vector<96x128xf32>
    %c18 = arith.constant 18 : index
    %c0_61 = arith.constant 0 : index
    %72 = vector.load %arg10[%c18, %c0_61] : memref<324x128xbf16, #tpu.memory_space<vmem>>, vector<96x128xbf16>
    %c19_62 = arith.constant 19 : index
    %c0_63 = arith.constant 0 : index
    %73 = vector.load %arg10[%c19_62, %c0_63] : memref<324x128xbf16, #tpu.memory_space<vmem>>, vector<96x128xbf16>
    %c20 = arith.constant 20 : index
    %c0_64 = arith.constant 0 : index
    %74 = vector.load %arg10[%c20, %c0_64] : memref<324x128xbf16, #tpu.memory_space<vmem>>, vector<96x128xbf16>
    %75 = tpu.concatenate %72, %73, %74 in 1 : vector<96x128xbf16>, vector<96x128xbf16>, vector<96x128xbf16> -> vector<96x384xbf16>
    %c1_65 = arith.constant 1 : index
    %c0_66 = arith.constant 0 : index
    %c0_67 = arith.constant 0 : index
    %76 = vector.load %arg6[%c1_65, %c0_66, %c0_67] : memref<3x384x128xbf16, #tpu.memory_space<vmem>>, vector<1x384x128xbf16>
    %77 = vector.shape_cast %76 : vector<1x384x128xbf16> to vector<384x128xbf16>
    %cst_68 = arith.constant dense<0.000000e+00> : vector<96x128xf32>
    %78 = tpu.matmul %75, %77, %cst_68 {dimension_numbers = #tpu.dot_dimension_numbers<[1], [0], [0], [1], [0, 0, 1, 1], [], []>} : vector<96x384xbf16>, vector<384x128xbf16>, vector<96x128xf32> -> vector<96x128xf32>
    %79 = arith.addf %71, %78 : vector<96x128xf32>
    %c36 = arith.constant 36 : index
    %c0_69 = arith.constant 0 : index
    %80 = vector.load %arg10[%c36, %c0_69] : memref<324x128xbf16, #tpu.memory_space<vmem>>, vector<96x128xbf16>
    %c37 = arith.constant 37 : index
    %c0_70 = arith.constant 0 : index
    %81 = vector.load %arg10[%c37, %c0_70] : memref<324x128xbf16, #tpu.memory_space<vmem>>, vector<96x128xbf16>
    %c38 = arith.constant 38 : index
    %c0_71 = arith.constant 0 : index
    %82 = vector.load %arg10[%c38, %c0_71] : memref<324x128xbf16, #tpu.memory_space<vmem>>, vector<96x128xbf16>
    %83 = tpu.concatenate %80, %81, %82 in 1 : vector<96x128xbf16>, vector<96x128xbf16>, vector<96x128xbf16> -> vector<96x384xbf16>
    %c2_72 = arith.constant 2 : index
    %c0_73 = arith.constant 0 : index
    %c0_74 = arith.constant 0 : index
    %84 = vector.load %arg6[%c2_72, %c0_73, %c0_74] : memref<3x384x128xbf16, #tpu.memory_space<vmem>>, vector<1x384x128xbf16>
    %85 = vector.shape_cast %84 : vector<1x384x128xbf16> to vector<384x128xbf16>
    %cst_75 = arith.constant dense<0.000000e+00> : vector<96x128xf32>
    %86 = tpu.matmul %83, %85, %cst_75 {dimension_numbers = #tpu.dot_dimension_numbers<[1], [0], [0], [1], [0, 0, 1, 1], [], []>} : vector<96x384xbf16>, vector<384x128xbf16>, vector<96x128xf32> -> vector<96x128xf32>
    %87 = arith.addf %79, %86 : vector<96x128xf32>
    %88 = vector.broadcast %2 : vector<1x128xf32> to vector<96x128xf32>
    %89 = arith.addf %87, %88 : vector<96x128xf32>
    %cst_76 = arith.constant 0.000000e+00 : f32
    %90 = vector.broadcast %cst_76 : f32 to vector<96x128xf32>
    %91 = arith.maximumf %89, %90 : vector<96x128xf32>
    %92 = arith.truncf %91 : vector<96x128xf32> to vector<96x128xbf16>
    %c0_77 = arith.constant 0 : index
    %c19_78 = arith.constant 19 : index
    %c0_79 = arith.constant 0 : index
    %93 = vector.load %arg9[%c0_77, %c19_78, %c0_79] : memref<1x324x128xbf16, #tpu.memory_space<vmem>>, vector<1x96x128xbf16>
    %94 = vector.shape_cast %93 : vector<1x96x128xbf16> to vector<96x128xbf16>
    %95 = vector.shape_cast %92 : vector<96x128xbf16> to vector<1x96x128xbf16>
    tpu.vector_store %arg9[%c0_77, %c19_78, %c0_79], %95 {strides = array<i32>} : memref<1x324x128xbf16, #tpu.memory_space<vmem>>, vector<1x96x128xbf16>,
    %c0_80 = arith.constant 0 : index
    %c115_81 = arith.constant 115 : index
    %c0_82 = arith.constant 0 : index
    %96 = vector.load %arg1[%c0_80, %c115_81, %c0_82] : memref<1x324x128xbf16, #tpu.memory_space<vmem>>, vector<1x96x128xbf16>
    %97 = vector.shape_cast %96 : vector<1x96x128xbf16> to vector<96x128xbf16>
    %c0_83 = arith.constant 0 : index
    %c0_84 = arith.constant 0 : index
    %98 = vector.load %arg7[%c0_83, %c0_84] : memref<128x128xbf16, #tpu.memory_space<vmem>>, vector<128x128xbf16>
    %cst_85 = arith.constant dense<0.000000e+00> : vector<96x128xf32>
    %99 = tpu.matmul %97, %98, %cst_85 {dimension_numbers = #tpu.dot_dimension_numbers<[1], [0], [0], [1], [0, 0, 1, 1], [], []>} : vector<96x128xbf16>, vector<128x128xbf16>, vector<96x128xf32> -> vector<96x128xf32>
    %c96 = arith.constant 96 : index
    %c0_86 = arith.constant 0 : index
    %100 = vector.load %arg10[%c96, %c0_86] : memref<324x128xbf16, #tpu.memory_space<vmem>>, vector<96x128xbf16>
    %c97 = arith.constant 97 : index
    %c0_87 = arith.constant 0 : index
    %101 = vector.load %arg10[%c97, %c0_87] : memref<324x128xbf16, #tpu.memory_space<vmem>>, vector<96x128xbf16>
    %c98 = arith.constant 98 : index
    %c0_88 = arith.constant 0 : index
    %102 = vector.load %arg10[%c98, %c0_88] : memref<324x128xbf16, #tpu.memory_space<vmem>>, vector<96x128xbf16>
    %103 = tpu.concatenate %100, %101, %102 in 1 : vector<96x128xbf16>, vector<96x128xbf16>, vector<96x128xbf16> -> vector<96x384xbf16>
    %c0_89 = arith.constant 0 : index
    %c0_90 = arith.constant 0 : index
    %c0_91 = arith.constant 0 : index
    %104 = vector.load %arg6[%c0_89, %c0_90, %c0_91] : memref<3x384x128xbf16, #tpu.memory_space<vmem>>, vector<1x384x128xbf16>
    %105 = vector.shape_cast %104 : vector<1x384x128xbf16> to vector<384x128xbf16>
    %cst_92 = arith.constant dense<0.000000e+00> : vector<96x128xf32>
    %106 = tpu.matmul %103, %105, %cst_92 {dimension_numbers = #tpu.dot_dimension_numbers<[1], [0], [0], [1], [0, 0, 1, 1], [], []>} : vector<96x384xbf16>, vector<384x128xbf16>, vector<96x128xf32> -> vector<96x128xf32>
    %107 = arith.addf %99, %106 : vector<96x128xf32>
    %c114 = arith.constant 114 : index
    %c0_93 = arith.constant 0 : index
    %108 = vector.load %arg10[%c114, %c0_93] : memref<324x128xbf16, #tpu.memory_space<vmem>>, vector<96x128xbf16>
    %c115_94 = arith.constant 115 : index
    %c0_95 = arith.constant 0 : index
    %109 = vector.load %arg10[%c115_94, %c0_95] : memref<324x128xbf16, #tpu.memory_space<vmem>>, vector<96x128xbf16>
    %c116 = arith.constant 116 : index
    %c0_96 = arith.constant 0 : index
    %110 = vector.load %arg10[%c116, %c0_96] : memref<324x128xbf16, #tpu.memory_space<vmem>>, vector<96x128xbf16>
    %111 = tpu.concatenate %108, %109, %110 in 1 : vector<96x128xbf16>, vector<96x128xbf16>, vector<96x128xbf16> -> vector<96x384xbf16>
    %c1_97 = arith.constant 1 : index
    %c0_98 = arith.constant 0 : index
    %c0_99 = arith.constant 0 : index
    %112 = vector.load %arg6[%c1_97, %c0_98, %c0_99] : memref<3x384x128xbf16, #tpu.memory_space<vmem>>, vector<1x384x128xbf16>
    %113 = vector.shape_cast %112 : vector<1x384x128xbf16> to vector<384x128xbf16>
    %cst_100 = arith.constant dense<0.000000e+00> : vector<96x128xf32>
    %114 = tpu.matmul %111, %113, %cst_100 {dimension_numbers = #tpu.dot_dimension_numbers<[1], [0], [0], [1], [0, 0, 1, 1], [], []>} : vector<96x384xbf16>, vector<384x128xbf16>, vector<96x128xf32> -> vector<96x128xf32>
    %115 = arith.addf %107, %114 : vector<96x128xf32>
    %c132 = arith.constant 132 : index
    %c0_101 = arith.constant 0 : index
    %116 = vector.load %arg10[%c132, %c0_101] : memref<324x128xbf16, #tpu.memory_space<vmem>>, vector<96x128xbf16>
    %c133 = arith.constant 133 : index
    %c0_102 = arith.constant 0 : index
    %117 = vector.load %arg10[%c133, %c0_102] : memref<324x128xbf16, #tpu.memory_space<vmem>>, vector<96x128xbf16>
    %c134 = arith.constant 134 : index
    %c0_103 = arith.constant 0 : index
    %118 = vector.load %arg10[%c134, %c0_103] : memref<324x128xbf16, #tpu.memory_space<vmem>>, vector<96x128xbf16>
    %119 = tpu.concatenate %116, %117, %118 in 1 : vector<96x128xbf16>, vector<96x128xbf16>, vector<96x128xbf16> -> vector<96x384xbf16>
    %c2_104 = arith.constant 2 : index
    %c0_105 = arith.constant 0 : index
    %c0_106 = arith.constant 0 : index
    %120 = vector.load %arg6[%c2_104, %c0_105, %c0_106] : memref<3x384x128xbf16, #tpu.memory_space<vmem>>, vector<1x384x128xbf16>
    %121 = vector.shape_cast %120 : vector<1x384x128xbf16> to vector<384x128xbf16>
    %cst_107 = arith.constant dense<0.000000e+00> : vector<96x128xf32>
    %122 = tpu.matmul %119, %121, %cst_107 {dimension_numbers = #tpu.dot_dimension_numbers<[1], [0], [0], [1], [0, 0, 1, 1], [], []>} : vector<96x384xbf16>, vector<384x128xbf16>, vector<96x128xf32> -> vector<96x128xf32>
    %123 = arith.addf %115, %122 : vector<96x128xf32>
    %124 = vector.broadcast %2 : vector<1x128xf32> to vector<96x128xf32>
    %125 = arith.addf %123, %124 : vector<96x128xf32>
    %cst_108 = arith.constant 0.000000e+00 : f32
    %126 = vector.broadcast %cst_108 : f32 to vector<96x128xf32>
    %127 = arith.maximumf %125, %126 : vector<96x128xf32>
    %128 = arith.truncf %127 : vector<96x128xf32> to vector<96x128xbf16>
    %c0_109 = arith.constant 0 : index
    %c115_110 = arith.constant 115 : index
    %c0_111 = arith.constant 0 : index
    %129 = vector.load %arg9[%c0_109, %c115_110, %c0_111] : memref<1x324x128xbf16, #tpu.memory_space<vmem>>, vector<1x96x128xbf16>
    %130 = vector.shape_cast %129 : vector<1x96x128xbf16> to vector<96x128xbf16>
    %131 = vector.shape_cast %128 : vector<96x128xbf16> to vector<1x96x128xbf16>
    tpu.vector_store %arg9[%c0_109, %c115_110, %c0_111], %131 {strides = array<i32>} : memref<1x324x128xbf16, #tpu.memory_space<vmem>>, vector<1x96x128xbf16>,
    %c0_112 = arith.constant 0 : index
    %c209_113 = arith.constant 209 : index
    %c0_114 = arith.constant 0 : index
    %132 = vector.load %arg1[%c0_112, %c209_113, %c0_114] : memref<1x324x128xbf16, #tpu.memory_space<vmem>>, vector<1x96x128xbf16>
    %133 = vector.shape_cast %132 : vector<1x96x128xbf16> to vector<96x128xbf16>
    %c0_115 = arith.constant 0 : index
    %c0_116 = arith.constant 0 : index
    %134 = vector.load %arg7[%c0_115, %c0_116] : memref<128x128xbf16, #tpu.memory_space<vmem>>, vector<128x128xbf16>
    %cst_117 = arith.constant dense<0.000000e+00> : vector<96x128xf32>
    %135 = tpu.matmul %133, %134, %cst_117 {dimension_numbers = #tpu.dot_dimension_numbers<[1], [0], [0], [1], [0, 0, 1, 1], [], []>} : vector<96x128xbf16>, vector<128x128xbf16>, vector<96x128xf32> -> vector<96x128xf32>
    %c190 = arith.constant 190 : index
    %c0_118 = arith.constant 0 : index
    %136 = vector.load %arg10[%c190, %c0_118] : memref<324x128xbf16, #tpu.memory_space<vmem>>, vector<96x128xbf16>
    %c191 = arith.constant 191 : index
    %c0_119 = arith.constant 0 : index
    %137 = vector.load %arg10[%c191, %c0_119] : memref<324x128xbf16, #tpu.memory_space<vmem>>, vector<96x128xbf16>
    %c192 = arith.constant 192 : index
    %c0_120 = arith.constant 0 : index
    %138 = vector.load %arg10[%c192, %c0_120] : memref<324x128xbf16, #tpu.memory_space<vmem>>, vector<96x128xbf16>
    %139 = tpu.concatenate %136, %137, %138 in 1 : vector<96x128xbf16>, vector<96x128xbf16>, vector<96x128xbf16> -> vector<96x384xbf16>
    %c0_121 = arith.constant 0 : index
    %c0_122 = arith.constant 0 : index
    %c0_123 = arith.constant 0 : index
    %140 = vector.load %arg6[%c0_121, %c0_122, %c0_123] : memref<3x384x128xbf16, #tpu.memory_space<vmem>>, vector<1x384x128xbf16>
    %141 = vector.shape_cast %140 : vector<1x384x128xbf16> to vector<384x128xbf16>
    %cst_124 = arith.constant dense<0.000000e+00> : vector<96x128xf32>
    %142 = tpu.matmul %139, %141, %cst_124 {dimension_numbers = #tpu.dot_dimension_numbers<[1], [0], [0], [1], [0, 0, 1, 1], [], []>} : vector<96x384xbf16>, vector<384x128xbf16>, vector<96x128xf32> -> vector<96x128xf32>
    %143 = arith.addf %135, %142 : vector<96x128xf32>
    %c208 = arith.constant 208 : index
    %c0_125 = arith.constant 0 : index
    %144 = vector.load %arg10[%c208, %c0_125] : memref<324x128xbf16, #tpu.memory_space<vmem>>, vector<96x128xbf16>
    %c209_126 = arith.constant 209 : index
    %c0_127 = arith.constant 0 : index
    %145 = vector.load %arg10[%c209_126, %c0_127] : memref<324x128xbf16, #tpu.memory_space<vmem>>, vector<96x128xbf16>
    %c210 = arith.constant 210 : index
    %c0_128 = arith.constant 0 : index
    %146 = vector.load %arg10[%c210, %c0_128] : memref<324x128xbf16, #tpu.memory_space<vmem>>, vector<96x128xbf16>
    %147 = tpu.concatenate %144, %145, %146 in 1 : vector<96x128xbf16>, vector<96x128xbf16>, vector<96x128xbf16> -> vector<96x384xbf16>
    %c1_129 = arith.constant 1 : index
    %c0_130 = arith.constant 0 : index
    %c0_131 = arith.constant 0 : index
    %148 = vector.load %arg6[%c1_129, %c0_130, %c0_131] : memref<3x384x128xbf16, #tpu.memory_space<vmem>>, vector<1x384x128xbf16>
    %149 = vector.shape_cast %148 : vector<1x384x128xbf16> to vector<384x128xbf16>
    %cst_132 = arith.constant dense<0.000000e+00> : vector<96x128xf32>
    %150 = tpu.matmul %147, %149, %cst_132 {dimension_numbers = #tpu.dot_dimension_numbers<[1], [0], [0], [1], [0, 0, 1, 1], [], []>} : vector<96x384xbf16>, vector<384x128xbf16>, vector<96x128xf32> -> vector<96x128xf32>
    %151 = arith.addf %143, %150 : vector<96x128xf32>
    %c226 = arith.constant 226 : index
    %c0_133 = arith.constant 0 : index
    %152 = vector.load %arg10[%c226, %c0_133] : memref<324x128xbf16, #tpu.memory_space<vmem>>, vector<96x128xbf16>
    %c227 = arith.constant 227 : index
    %c0_134 = arith.constant 0 : index
    %153 = vector.load %arg10[%c227, %c0_134] : memref<324x128xbf16, #tpu.memory_space<vmem>>, vector<96x128xbf16>
    %c228 = arith.constant 228 : index
    %c0_135 = arith.constant 0 : index
    %154 = vector.load %arg10[%c228, %c0_135] : memref<324x128xbf16, #tpu.memory_space<vmem>>, vector<96x128xbf16>
    %155 = tpu.concatenate %152, %153, %154 in 1 : vector<96x128xbf16>, vector<96x128xbf16>, vector<96x128xbf16> -> vector<96x384xbf16>
    %c2_136 = arith.constant 2 : index
    %c0_137 = arith.constant 0 : index
    %c0_138 = arith.constant 0 : index
    %156 = vector.load %arg6[%c2_136, %c0_137, %c0_138] : memref<3x384x128xbf16, #tpu.memory_space<vmem>>, vector<1x384x128xbf16>
    %157 = vector.shape_cast %156 : vector<1x384x128xbf16> to vector<384x128xbf16>
    %cst_139 = arith.constant dense<0.000000e+00> : vector<96x128xf32>
    %158 = tpu.matmul %155, %157, %cst_139 {dimension_numbers = #tpu.dot_dimension_numbers<[1], [0], [0], [1], [0, 0, 1, 1], [], []>} : vector<96x384xbf16>, vector<384x128xbf16>, vector<96x128xf32> -> vector<96x128xf32>
    %159 = arith.addf %151, %158 : vector<96x128xf32>
    %160 = vector.broadcast %2 : vector<1x128xf32> to vector<96x128xf32>
    %161 = arith.addf %159, %160 : vector<96x128xf32>
    %cst_140 = arith.constant 0.000000e+00 : f32
    %162 = vector.broadcast %cst_140 : f32 to vector<96x128xf32>
    %163 = arith.maximumf %161, %162 : vector<96x128xf32>
    %164 = arith.truncf %163 : vector<96x128xf32> to vector<96x128xbf16>
    %c0_141 = arith.constant 0 : index
    %c209_142 = arith.constant 209 : index
    %c0_143 = arith.constant 0 : index
    %165 = vector.load %arg9[%c0_141, %c209_142, %c0_143] : memref<1x324x128xbf16, #tpu.memory_space<vmem>>, vector<1x96x128xbf16>
    %166 = vector.shape_cast %165 : vector<1x96x128xbf16> to vector<96x128xbf16>
    %167 = vector.shape_cast %164 : vector<96x128xbf16> to vector<1x96x128xbf16>
    tpu.vector_store %arg9[%c0_141, %c209_142, %c0_143], %167 {strides = array<i32>} : memref<1x324x128xbf16, #tpu.memory_space<vmem>>, vector<1x96x128xbf16>,
    return
  }
  func.func @transform_0(%arg0: i32) -> (i32, i32, i32) {
    %c0_i32 = arith.constant 0 : i32
    %c0_i32_0 = arith.constant 0 : i32
    %c0_i32_1 = arith.constant 0 : i32
    return %arg0, %c0_i32, %c0_i32_0 : i32, i32, i32
  }
  func.func @transform_1(%arg0: i32) -> (i32, i32) {
    %c0_i32 = arith.constant 0 : i32
    %c0_i32_0 = arith.constant 0 : i32
    %c0_i32_1 = arith.constant 0 : i32
    return %c0_i32, %c0_i32_0 : i32, i32
  }
  func.func @transform_2(%arg0: i32) -> (i32, i32) {
    %c0_i32 = arith.constant 0 : i32
    %c0_i32_0 = arith.constant 0 : i32
    %c0_i32_1 = arith.constant 0 : i32
    return %c0_i32, %c0_i32_0 : i32, i32
  }
  func.func @transform_3(%arg0: i32) -> (i32, i32) {
    %c0_i32 = arith.constant 0 : i32
    %c0_i32_0 = arith.constant 0 : i32
    %c0_i32_1 = arith.constant 0 : i32
    return %c0_i32, %c0_i32_0 : i32, i32
  }
  func.func @transform_4(%arg0: i32) -> (i32, i32) {
    %c0_i32 = arith.constant 0 : i32
    %c0_i32_0 = arith.constant 0 : i32
    %c0_i32_1 = arith.constant 0 : i32
    return %c0_i32, %c0_i32_0 : i32, i32
  }
  func.func @transform_5(%arg0: i32) -> (i32, i32, i32) {
    %c0_i32 = arith.constant 0 : i32
    %c0_i32_0 = arith.constant 0 : i32
    %c0_i32_1 = arith.constant 0 : i32
    %c0_i32_2 = arith.constant 0 : i32
    return %c0_i32, %c0_i32_0, %c0_i32_1 : i32, i32, i32
  }
  func.func @transform_6(%arg0: i32) -> (i32, i32) {
    %c0_i32 = arith.constant 0 : i32
    %c0_i32_0 = arith.constant 0 : i32
    %c0_i32_1 = arith.constant 0 : i32
    return %c0_i32, %c0_i32_0 : i32, i32
  }
  func.func @transform_7(%arg0: i32) -> (i32, i32) {
    %c0_i32 = arith.constant 0 : i32
    %c0_i32_0 = arith.constant 0 : i32
    %c0_i32_1 = arith.constant 0 : i32
    return %c0_i32, %c0_i32_0 : i32, i32
  }
  func.func @transform_8(%arg0: i32) -> (i32, i32, i32) {
    %c0_i32 = arith.constant 0 : i32
    %c0_i32_0 = arith.constant 0 : i32
    %c0_i32_1 = arith.constant 0 : i32
    return %arg0, %c0_i32, %c0_i32_0 : i32, i32, i32
  }
}

</mosaic_0001>

<bundles_post_ra>
// kernel: residual_block_forward.1
= control target key start
LH: loop header
LB: loop body
LE: loop exit
PB: predicated region body
PF: predicated region fallthrough
CT: control target
= control target key end

     0   :  { %s10790_s27 = smov 0   ;;  %s13721_s0 = inlined_call_operand.vmem [shape: bf16[2,324,128], index: 0, kind: input, shape index: {}]   ;;  %s13722_s1 = inlined_call_operand.vmem [shape: f32[324,1], index: 1, kind: input, shape index: {}]   ;;  %s13723_s2 = inlined_call_operand.vmem [shape: bf16[128,128], index: 2, kind: input, shape index: {}]   ;;  %s13724_s3 = inlined_call_operand.vmem [shape: f32[1,128], index: 3, kind: input, shape index: {}]   ;;  %s13725_s4 = inlined_call_operand.vmem [shape: f32[1,128], index: 4, kind: input, shape index: {}]   ;;  %s13726_s5 = inlined_call_operand.vmem [shape: bf16[3,384,128], index: 5, kind: input, shape index: {}]   ;;  %s13727_s6 = inlined_call_operand.vmem [shape: bf16[128,128], index: 6, kind: input, shape index: {}]   ;;  %s13728_s7 = inlined_call_operand.vmem [shape: f32[1,128], index: 7, kind: input, shape index: {}]   ;;  %s13729_s8 = inlined_call_operand.vmem [shape: bf16[2,324,128], index: 8, kind: output, shape index: {}]  }
   0x1 LB: > { %s8183_s28 = sadd.s32 4294967295, %s10742_s27   ;;  %p8187_p0 = scmp.ge.s32.totalorder %s10742_s27, 1  ;;  %s10742_s27 = sphi %s10790_s27, %s18_s27  }
   0x2   : > { %p262_p1 = scmp.lt.s32.totalorder %s10742_s27, 3 }
   0x4   : > { %p263_p2 = pnand %p8187_p0, %p262_p1 }
   0x6   : > { %266 = sbr.rel (%p263_p2) target bundleno = 986 (0x3da), region = 52 }
   0xd   : > { %v10342_v0 = vld [vmem:[%s13723_s2] sm:$0xff]   ;;  %p296_p3 = scmp.lt.s32.totalorder %s8183_s28, 1  ;;  %v10344_v2 = vld [vmem:[%s13723_s2 + $0x8] sm:$0xff]   ;;  %v10744_v3 = vmov 0   ;;  %v10346_v5 = vld [vmem:[%s13723_s2 + $0x10] sm:$0xff]   ;;  %vm312_vm2 = vcmask 1041408  }
   0xe   : > { %v10343_v1 = vld [vmem:[%s13723_s2] sm:$0xff]   ;;  %9694 = vmatprep.subr.bf16.mxu0 %v10342_v0  ;;  %10340 = vset.pattern.permute.xlu0 %v10744_v3  ;;  %310 = vst [vmem:[#allocation2] sm:$0xf] %v10744_v3  ;;  %311 = vst [vmem:[#allocation2 + $0x4] sm:$0xf] %v10744_v3  ;;  %v10345_v4 = vld [vmem:[%s13723_s2 + $0x8] sm:$0xff]  }
   0xf   : > { %s13805_s28 = smov (!%p296_p3, %s8183_s28), 1  ;;  %324 = vst [vmem:[#allocation2 + $0x9c] sm:$0xf] %v10744_v3  ;;  %325 = vst [vmem:[#allocation2 + $0xa0] sm:$0x3] %v10744_v3  ;;  %9722 = vmatprep.subr.bf16.mxu1 %v10343_v1  ;;  %9695 = vmatpush3.bf16.msra.mxu0 %v10342_v0  ;;  %v10347_v6 = vld [vmem:[%s13723_s2 + $0x10] sm:$0xff]  }
  0x10   : > { %9723 = vmatpush3.bf16.msra.mxu1 %v10343_v1  ;;  %9696 = vmatprep.subr.bf16.mxu0 %v10344_v2  ;;  %s10330_s17 = smul.u32 164, %s13805_s28  ;;  %v10348_v7 = vld [vmem:[%s13723_s2 + $0x18] sm:$0xff]   ;;  %v10350_v9 = vld [vmem:[%s13723_s2 + $0x20] sm:$0xff]   ;;  %v10352_v11 = vld [vmem:[%s13723_s2 + $0x28] sm:$0xff]   ;;  %vm398_vm0 = vsmask.f32 6400 }
  0x11   : > { %9724 = vmatprep.subr.bf16.mxu1 %v10345_v4  ;;  %10341 = vset.pattern.permute.xlu1 %v10744_v3  ;;  %v10349_v8 = vld [vmem:[%s13723_s2 + $0x18] sm:$0xff]   ;;  %v10351_v10 = vld [vmem:[%s13723_s2 + $0x20] sm:$0xff]   ;;  %v10353_v12 = vld [vmem:[%s13723_s2 + $0x28] sm:$0xff]   ;;  %vm1544_vm1 = vsmask.f32 7424  ;;  %vm318_vm5 = vcmask 1043456  }
  0x12   : > { %s10822_s22 = scalar_lea.vmem %s13729_s8, %s10330_s17  ;;  %s10846_s14 = scalar_lea.vmem %s13721_s0, %s10330_s17  ;;  %v10354_v15 = vld [vmem:[%s13723_s2 + $0x30] sm:$0xff]   ;;  %v10356_v27 = vld [vmem:[%s13723_s2 + $0x38] sm:$0xff]   ;;  %v10364_v50 = vld [vmem:[%s13723_s2] sm:$0xff]   ;;  %vm313_vm3 = vsmask.f32 1280  ;;  %vm898_vm8 = vcmask 1043457  }
  0x13   : > { %9697 = vmatpush3.bf16.msra.mxu0 %v10344_v2  ;;  %326 = vst [vmem:[%s10822_s22] sm:$0xf] %v10744_v3  ;;  %327 = vst [vmem:[%s10822_s22 + $0x4] sm:$0xf] %v10744_v3  ;;  %v10358_v13 = vld [vmem:[%s10846_s14 + $0x8] sm:$0xfe]   ;;  %v10359_v14 = vld [vmem:[%s10846_s14 + $0x10] sm:$0xff]  }
  0x14   : > { %334 = vst [vmem:[%s10822_s22 + $0x9c] sm:$0xf] %v10744_v3  ;;  %335 = vst [vmem:[%s10822_s22 + $0xa0] sm:$0x3] %v10744_v3  ;;  %9725 = vmatpush3.bf16.msra.mxu1 %v10345_v4  ;;  %9698 = vmatprep.subr.bf16.mxu0 %v10346_v5  ;;  %v10355_v16 = vld [vmem:[%s13723_s2 + $0x30] sm:$0xff]   ;;  %v400_v17 = vshrl.u32 %v10358_v13, 16 }
  0x15   : > { %9726 = vmatprep.subr.bf16.mxu1 %v10347_v6  ;;  %v403_v18 = vshll.u32 %v10358_v13, 16  ;;  %v408_v19 = vshrl.u32 %v10359_v14, 16  ;;  %v411_v20 = vshll.u32 %v10359_v14, 16  ;;  %v10360_v21 = vld [vmem:[%s10846_s14 + $0x38] sm:$0xfe]   ;;  %v10361_v22 = vld [vmem:[%s10846_s14 + $0x40] sm:$0xff]   ;;  %vm11035_vm4 = vmand %vm312_vm2, %vm313_vm3 }
  0x16   : > { %v402_v23 = vrot.slane %v400_v17, 1  ;;  %v981_v28 = vshrl.u32 %v10360_v21, 16  ;;  %v984_v29 = vshll.u32 %v10360_v21, 16  ;;  %v989_v30 = vshrl.u32 %v10361_v22, 16  ;;  %v10362_v34 = vld [vmem:[%s10846_s14 + $0x18] sm:$0xff]   ;;  %v10363_v40 = vld [vmem:[%s10846_s14 + $0x48] sm:$0xff]  }
  0x17   : > { %9699 = vmatpush3.bf16.msra.mxu0 %v10346_v5  ;;  %v405_v24 = vrot.slane %v403_v18, 2  ;;  %v410_v25 = vrot.slane %v408_v19, 1  ;;  %v413_v26 = vrot.slane %v411_v20, 2  ;;  %v992_v31 = vshll.u32 %v10361_v22, 16  ;;  %v10357_v35 = vld [vmem:[%s13723_s2 + $0x38] sm:$0xff]   ;;  %v10366_v51 = vld [vmem:[%s10846_s14 + $0x20] sm:$0xff]  }
  0x18   : > { %9727 = vmatpush3.bf16.msra.mxu1 %v10347_v6  ;;  %9700 = vmatprep.subr.bf16.mxu0 %v10348_v7  ;;  %v983_v36 = vrot.slane %v981_v28, 1  ;;  %v986_v37 = vrot.slane %v984_v29, 2  ;;  %v991_v38 = vrot.slane %v989_v30, 1  ;;  %v417_v42 = vshrl.u32 %v10362_v34, 16  ;;  %v10367_v58 = vld [vmem:[%s10846_s14 + $0x50] sm:$0xff]   ;;  %v10368_v59 = vld [vmem:[%s10846_s14 + $0x28] sm:$0xff]  }
  0x19   : > { %9728 = vmatprep.subr.bf16.mxu1 %v10349_v8  ;;  %v406_v32 = vor.u32 %v405_v24, %v402_v23  ;;  %v414_v33 = vor.u32 %v413_v26, %v410_v25  ;;  %v994_v39 = vrot.slane %v992_v31, 2  ;;  %v420_v43 = vshll.u32 %v10362_v34, 16  ;;  %v10369_v1 = vld [vmem:[%s10846_s14 + $0x58] sm:$0xff]   ;;  %v10365_v3 = vld [vmem:[%s13723_s2 + $0x8] sm:$0xff]   ;;  %v10370_v14 = vld [vmem:[%s13723_s2 + $0x10] sm:$0xff]  }
  0x1a   : > { %v987_v44 = vor.u32 %v986_v37, %v983_v36  ;;  %v998_v46 = vshrl.u32 %v10363_v40, 16  ;;  %v1001_v47 = vshll.u32 %v10363_v40, 16  ;;  %v419_v48 = vrot.slane %v417_v42, 1  ;;  %v10373_v24 = vld [vmem:[%s10846_s14 + $0x60] sm:$0xff]  }
  0x1b   : > { %9701 = vmatpush3.bf16.msra.mxu0 %v10348_v7  ;;  %v415_v41 = vsel %vm398_vm0, %v406_v32, %v414_v33  ;;  %v995_v45 = vor.u32 %v994_v39, %v991_v38  ;;  %v422_v49 = vrot.slane %v420_v43, 2  ;;  %v426_v56 = vshrl.u32 %v10366_v51, 16  ;;  %v10374_v28 = vld [vmem:[%s10846_s14 + $0x38] ss:$0 sps:$4 sm:$0x33]  }
  0x1c   : > { %9729 = vmatpush3.bf16.msra.mxu1 %v10349_v8  ;;  %9702 = vmatprep.subr.bf16.mxu0 %v10350_v9  ;;  %v1000_v53 = vrot.slane %v998_v46, 1  ;;  %v1003_v54 = vrot.slane %v1001_v47, 2  ;;  %v429_v57 = vshll.u32 %v10366_v51, 16  ;;  %v1007_v0 = vshrl.u32 %v10367_v58, 16 }
  0x1d   : > { %9730 = vmatprep.subr.bf16.mxu1 %v10351_v10  ;;  %9710 = vmatprep.mubr.bf16.mxu0 %v415_v41  ;;  %v996_v52 = vsel %vm398_vm0, %v987_v44, %v995_v45  ;;  %v423_v55 = vor.u32 %v422_v49, %v419_v48  ;;  %v428_v62 = vrot.slane %v426_v56, 1  ;;  %v1010_v4 = vshll.u32 %v10367_v58, 16  ;;  %v10375_v37 = vld [vmem:[%s10846_s14 + $0x68] ss:$0 sps:$4 sm:$0x33]   ;;  %v644_v44 = vld [vmem:[%s13722_s1 + $0x13] sm:$0xff] }
  0x1e   : > { %9738 = vmatprep.mubr.bf16.mxu1 %v996_v52  ;;  %v1004_v60 = vor.u32 %v1003_v54, %v1000_v53  ;;  %v431_v63 = vrot.slane %v429_v57, 2  ;;  %v435_v5 = vshrl.u32 %v10368_v59, 16  ;;  %v438_v6 = vshll.u32 %v10368_v59, 16  ;;  %v10376_v49 = vld [vmem:[%s13723_s2 + $0x20] sm:$0xff]   ;;  %658 = vperm.xlu0 %10340, %v644_v44   ;;  %v647_v54 = vld [vmem:[%s13722_s1 + $0x2b] sm:$0xff] }
  0x1f   : > { %9703 = vmatpush3.bf16.msra.mxu0 %v10350_v9  ;;  %v424_v61 = vsel %vm398_vm0, %v414_v33, %v423_v55  ;;  %v1009_v8 = vrot.slane %v1007_v0, 1  ;;  %v1016_v9 = vshrl.u32 %v10369_v1, 16  ;;  %v1025_v30 = vshrl.u32 %v10373_v24, 16  ;;  %v10371_v33 = vld [vmem:[%s13723_s2 + $0x18] sm:$0xff]   ;;  %v10380_v57 = vld [vmem:[%s10846_s14 + $0x68] sm:$0xff]   ;;  %v10381_v59 = vld [vmem:[%s10846_s14 + $0x70] sm:$0xff]  }
  0x20   : > { %9731 = vmatpush3.bf16.msra.mxu1 %v10351_v10  ;;  %9704 = vmatprep.subr.bf16.mxu0 %v10352_v11  ;;  %v1005_v2 = vsel %vm398_vm0, %v995_v45, %v1004_v60  ;;  %v432_v7 = vor.u32 %v431_v63, %v428_v62  ;;  %v1019_v10 = vshll.u32 %v10369_v1, 16  ;;  %v440_v13 = vrot.slane %v438_v6, 2  ;;  %v645_v53 = vld [vmem:[%s13722_s1 + $0x1b] sm:$0xff]  ;;  %v10377_v58 = vld [vmem:[%s13723_s2 + $0x28] sm:$0xff]   ;;  %v648_v63 = vld [vmem:[%s13722_s1 + $0x33] sm:$0xff] }
  0x21   : > { %9732 = vmatprep.subr.bf16.mxu1 %v10353_v12  ;;  %v1018_v17 = vrot.slane %v1016_v9, 1  ;;  %v1028_v31 = vshll.u32 %v10373_v24, 16  ;;  %v456_v36 = vshll.u32 %v10374_v28, 16  ;;  %v1027_v38 = vrot.slane %v1025_v30, 1  ;;  %v10382_v1 = vld [vmem:[%s10846_s14 + $0x78] sm:$0xff]   ;;  %v10383_v6 = vld [vmem:[%s10846_s14 + $0x80] sm:$0xff]  }
  0x22   : > { %v1021_v18 = vrot.slane %v1019_v10, 2  ;;  %v1034_v43 = vshrl.u32 %v10375_v37, 16  ;;  %v1037_v46 = vshll.u32 %v10375_v37, 16  ;;  %663 = vperm.xlu0 %10340, %v645_v53   ;;  %v1548_v62 = vshll.u32 %v10380_v57, 16  ;;  %v654_v30 = vld [vmem:[%s13722_s1 + $0x63] sm:$0xff]  ;;  %v1222_v53 = vld [vmem:[%s13722_s1 + $0xbb] sm:$0xff] }
  0x23   : > { %9705 = vmatpush3.bf16.msra.mxu0 %v10352_v11  ;;  %v1012_v11 = vrot.slane %v1010_v4, 2  ;;  %v1030_v39 = vrot.slane %v1028_v31, 2  ;;  %v458_v42 = vrot.slane %v456_v36, 2  ;;  %v1553_v0 = vshll.u32 %v10381_v59, 16  ;;  %v655_v31 = vld [vmem:[%s13722_s1 + $0x6b] sm:$0xff] }
  0x24   : > { %9733 = vmatpush3.bf16.msra.mxu1 %v10353_v12  ;;  %9706 = vmatprep.subr.bf16.mxu0 %v10354_v15  ;;  %v437_v12 = vrot.slane %v435_v5, 1  ;;  %v1022_v23 = vor.u32 %v1021_v18, %v1018_v17  ;;  %v1036_v48 = vrot.slane %v1034_v43, 1  ;;  %v1039_v52 = vrot.slane %v1037_v46, 2  ;;  %v10386_v18 = vld [vmem:[%s10846_s14 + $0x98] ss:$0 sps:$4 sm:$0x11]  }
  0x25   : > { %9734 = vmatprep.subr.bf16.mxu1 %v10355_v16  ;;  %v1013_v19 = vor.u32 %v1012_v11, %v1009_v8  ;;  %v1031_v45 = vor.u32 %v1030_v39, %v1027_v38  ;;  %v1550_v4 = vrot.slane %v1548_v62, 1  ;;  %v1555_v5 = vrot.slane %v1553_v0, 1  ;;  %v650_v8 = vld [vmem:[%s13722_s1 + $0x43] sm:$0xff]  ;;  %v651_v11 = vld [vmem:[%s13722_s1 + $0x4b] sm:$0xff]  ;;  %v1213_v38 = vld [vmem:[%s13722_s1 + $0x73] sm:$0xff] }
  0x26   : > { %v441_v20 = vor.u32 %v440_v13, %v437_v12  ;;  %v1040_v56 = vor.u32 %v1039_v52, %v1036_v48  ;;  %678 = vperm.xlu0 %10340, %v648_v63   ;;  %v1557_v9 = vshrl.u32 %v10381_v59, 16  ;;  %v1561_v10 = vshll.u32 %v10382_v1, 16  ;;  %v10384_v12 = vld [vmem:[%s10846_s14 + $0x88] sm:$0xff]   ;;  %v1214_v39 = vld [vmem:[%s13722_s1 + $0x7b] sm:$0xff]  ;;  %v1217_v46 = vld [vmem:[%s13722_s1 + $0x93] sm:$0xff] }
  0x27   : > { %9707 = vmatpush3.bf16.msra.mxu0 %v10354_v15  ;;  %v10372_v15 = vld [vmem:[%s10846_s14 + $0x30] sm:$0xff]   ;;  %v1014_v25 = vsel %vm398_vm0, %v1004_v60, %v1013_v19  ;;  %v1023_v32 = vsel %vm398_vm0, %v1013_v19, %v1022_v23  ;;  %v1032_v51 = vsel %vm398_vm0, %v1022_v23, %v1031_v45  ;;  %v1569_v17 = vshll.u32 %v10383_v6, 16  ;;  %v1774_v62 = vld [vmem:[%s13722_s1 + $0x101] sm:$0xff] }
  0x28   : > { %9735 = vmatpush3.bf16.msra.mxu1 %v10355_v16  ;;  %9708 = vmatprep.subr.bf16.mxu0 %v10356_v27  ;;  %v433_v16 = vsel %vm398_vm0, %v423_v55, %v432_v7  ;;  %v444_v21 = vshrl.u32 %v10372_v15, 16  ;;  %v447_v22 = vshll.u32 %v10372_v15, 16  ;;  %v442_v29 = vsel %vm398_vm0, %v432_v7, %v441_v20  ;;  %v10379_v15 = vld [vmem:[%s13723_s2 + $0x38] sm:$0xff]   ;;  %v1216_v43 = vld [vmem:[%s13722_s1 + $0x8b] sm:$0xff] }
  0x29   : > { %9736 = vmatprep.subr.bf16.mxu1 %v10357_v35  ;;  %v1041_v60 = vsel %vm398_vm0, %v1031_v45, %v1040_v56  ;;  %v1559_v19 = vor.u32 %v1557_v9, %v1555_v5  ;;  %v1577_v23 = vshll.u32 %v10384_v12, 16  ;;  %v1221_v52 = vld [vmem:[%s13722_s1 + $0xb3] sm:$0xff]  ;;  %v1771_v59 = vld [vmem:[%s13722_s1 + $0xe9] sm:$0xff]  ;;  %v10389_v9 = vld [vmem:[%s13726_s5] sm:$0xff]   ;;  %vm319_vm6 = vsmask.f32 7938 }
  0x2a   : > { %v446_v26 = vrot.slane %v444_v21, 1  ;;  %688 = vperm.xlu0 %10340, %v650_v8   ;;  %v652_v21 = vld [vmem:[%s13722_s1 + $0x53] sm:$0xff]  ;;  %v1775_v63 = vld [vmem:[%s13722_s1 + $0x109] sm:$0xff]  ;;  %v10388_v8 = vld [vmem:[%s13726_s5 + $0x40] sm:$0xff]   ;;  %vm899_vm9 = vsmask.f32 7942 }
  0x2b   : > { %9709 = vmatpush3.bf16.msra.mxu0 %v10356_v27  ;;  %v449_v27 = vrot.slane %v447_v22, 2  ;;  %v653_v22 = vld [vmem:[%s13722_s1 + $0x5b] sm:$0xff]  ;;  %v1768_v56 = vld [vmem:[%s13722_s1 + $0xd1] sm:$0xff]  ;;  %vm11116_vm7 = vmand %vm318_vm5, %vm319_vm6  ;;  %vm764_vm10 = vsmask.f32 5392  ;;  %vm2173_vm13 = vcmask 1046528  }
  0x2c   : > { %9737 = vmatpush3.bf16.msra.mxu1 %v10357_v35  ;;  %9750 = vmatprep.subr.bf16.mxu0 %v10364_v50  ;;  %v453_v35 = vshrl.u32 %v10374_v28, 16  ;;  %v1776_v0 = vld [vmem:[%s13722_s1 + $0x111] sm:$0xff]  ;;  %vm11233_vm11 = vmand %vm898_vm8, %vm899_vm9  ;;  %vm1888_vm14 = vsmask.f32 256  ;;  %vm1889_vm15 = vsmask.f32 4368 }
  0x2d   : > { %v450_v34 = vor.u32 %v449_v27, %v446_v26  ;;  %v1571_v27 = vrot.slane %v1569_v17, 1  ;;  %9058 = vmatprep.subr.bf16.mxu1 %v10388_v8  ;;  %v10397_v17 = vld [vmem:[%s13726_s5 + $0x58] sm:$0xff]   ;;  %vm11257_vm12 = vmor %vm313_vm3, %vm764_vm10  ;;  %vm2025_vm3 = vcmask 1040384   ;;  %vm3485_vm6 = vcmask 1045504  }
  0x2e   : > { %9711 = vmatmul.mubr.bf16.vlgmr.msra.gmra.mrb[0].mxu0 %v424_v61  ;;  %v455_v41 = vrot.slane %v453_v35, 1  ;;  %v1546_v61 = vshrl.u32 %v10380_v57, 16  ;;  %698 = vperm.xlu0 %10340, %v652_v21   ;;  %v1769_v57 = vld [vmem:[%s13722_s1 + $0xd9] sm:$0xff]  ;;  %vm11550_vm2 = vmor %vm1888_vm14, %vm1889_vm15  ;;  %vm6252_vm8 = vcmask 1042432  }
  0x2f   : > { %9739 = vmatmul.mubr.bf16.vlgmr.msra.gmra.mrb[0].mxu1 %v1005_v2  ;;  %9751 = vmatpush3.bf16.msra.mxu0 %v10364_v50  ;;  %v451_v40 = vsel %vm398_vm0, %v441_v20, %v450_v34  ;;  %v646_v50 = vld [vmem:[%s13722_s1 + $0x23] sm:$0xff]  ;;  %v649_v2 = vld [vmem:[%s13722_s1 + $0x3b] sm:$0xff]  ;;  %v1563_v20 = vrot.slane %v1561_v10, 1  ;;  %vm11711_vm5 = vmand %vm2025_vm3, %vm1888_vm14 }
  0x30   : > { %9752 = vmatprep.subr.bf16.mxu0 %v10365_v3  ;;  %9714 = vmatprep.mubr.bf16.mxu0 %v433_v16  ;;  %v459_v47 = vor.u32 %v458_v42, %v455_v41  ;;  %v1551_v7 = vor.u32 %v1550_v4, %v1546_v61  ;;  %v1565_v16 = vshrl.u32 %v10382_v1, 16  ;;  %v1215_v42 = vld [vmem:[%s13722_s1 + $0x83] sm:$0xff]  ;;  %v1773_v61 = vld [vmem:[%s13722_s1 + $0xf9] sm:$0xff]  ;;  %v13747_v4 = vmov 0 }
  0x31   : > { %9742 = vmatprep.mubr.bf16.mxu1 %v1014_v25  ;;  %668 = vperm.xlu1 %10341, %v646_v50   ;;  %v1593_v25 = vshll.u32 %v10386_v18, 16  ;;  %v1564_v28 = vsel %vm1544_vm1, %v1559_v19, %v1563_v20  ;;  %v1220_v50 = vld [vmem:[%s13722_s1 + $0xab] sm:$0xff]  ;;  %v1777_v1 = vld [vmem:[%s13722_s1 + $0x119] sm:$0xff]  ;;  %v13748_v4 = vsel %vm11035_vm4, 4294967295, %v13747_v4 }
  0x32   : > { %v460_v55 = vsel %vm398_vm0, %v450_v34, %v459_v47  ;;  %v1556_v13 = vsel %vm1544_vm1, %v1551_v7, %v1555_v5  ;;  %v1567_v26 = vor.u32 %v1565_v16, %v1563_v20  ;;  %708 = vperm.xlu0 %10340, %v654_v30   ;;  %v1218_v47 = vld [vmem:[%s13722_s1 + $0x9b] sm:$0xff]  ;;  %13749 = vst [vmem:[#allocation3_spill] sm:$0xff] %v13748_v4  ;;  %v315_v5 = vld [vmem:[#allocation2 + $0x8] sm:$0x3] }
  0x33   : > { %9753 = vmatpush3.bf16.msra.mxu0 %v10365_v3  ;;  %v10378_v3 = vld [vmem:[%s13723_s2 + $0x30] sm:$0xff]   ;;  %v1595_v36 = vrot.slane %v1593_v25, 1  ;;  %v10387_v7 = vld [vmem:[%s13726_s5 + $0x80] sm:$0xff]   ;;  %v10390_v10 = vld [vmem:[%s13726_s5 + $0x88] sm:$0xff]   ;;  %9059 = vmatpush3.bf16.msra.mxu1 %v10389_v9 }
  0x34   : > { %9754 = vmatprep.subr.bf16.mxu0 %v10370_v14  ;;  %v1572_v37 = vsel %vm1544_vm1, %v1567_v26, %v1571_v27  ;;  %v10396_v16 = vld [vmem:[%s13726_s5 + $0x98] sm:$0xff]   ;;  %v10399_v19 = vld [vmem:[%s13726_s5 + $0xa0] sm:$0xff]   ;;  %v10405_v25 = vld [vmem:[%s13726_s5 + $0xb0] sm:$0xff]  }
  0x35   : > { %673 = vperm.xlu1 %10341, %v647_v54   ;;  %v1223_v54 = vld [vmem:[%s13722_s1 + $0xc3] sm:$0xff]  ;;  %v10398_v18 = vld [vmem:[%s13726_s5 + $0x18] sm:$0xff]   ;;  %v10406_v26 = vld [vmem:[%s13726_s5 + $0x70] sm:$0xff]  }
  0x36   : > { %9715 = vmatmul.mubr.bf16.gmra.mrb[4].mxu0 %v442_v29  ;;  %v1573_v29 = vshrl.u32 %v10383_v6, 16  ;;  %1227 = vperm.xlu0 %10340, %v1213_v38   ;;  %v316_v6 = vsel %vm11035_vm4, 0, %v315_v5  ;;  %v10400_v20 = vld [vmem:[%s13726_s5 + $0x60] sm:$0xff]   ;;  %v10410_v30 = vld [vmem:[%s13726_s5 + $0x38] sm:$0xff]  }
  0x37   : > { %9743 = vmatmul.mubr.bf16.gmra.mrb[4].mxu1 %v1023_v32  ;;  %9755 = vmatpush3.bf16.msra.mxu0 %v10370_v14  ;;  %v10385_v14 = vld [vmem:[%s10846_s14 + $0x90] sm:$0xff]   ;;  %v1581_v32 = vshrl.u32 %v10384_v12, 16  ;;  %317 = vst [vmem:[#allocation2 + $0x8] sm:$0x3] %v316_v6  ;;  %v10392_v12 = vld [vmem:[%s13726_s5 + $0x8] sm:$0xff]   ;;  %v10401_v21 = vld [vmem:[%s13726_s5 + $0x20] sm:$0xff]  }
  0x38   : > { %9756 = vmatprep.subr.bf16.mxu0 %v10371_v33  ;;  %9718 = vmatprep.mubr.bf16.mxu0 %v451_v40  ;;  %v1585_v24 = vshll.u32 %v10385_v14, 16  ;;  %v1589_v35 = vshrl.u32 %v10385_v14, 16  ;;  %v1575_v40 = vor.u32 %v1573_v29, %v1571_v27  ;;  %v10394_v14 = vld [vmem:[%s13726_s5 + $0x50] sm:$0xff]   ;;  %v10409_v29 = vld [vmem:[%s13726_s5 + $0x78] sm:$0xff]   ;;  %v11175_v9 = vld [vmem:[%s10846_s14 + $0x20] sm:$0xff]  }
  0x39   : > { %9746 = vmatprep.mubr.bf16.mxu1 %v1032_v51  ;;  %683 = vperm.xlu1 %10341, %v649_v2   ;;  %v1778_v2 = vld [vmem:[%s13722_s1 + $0x121] sm:$0xff]  ;;  %v10407_v27 = vld [vmem:[%s13726_s5 + $0x30] sm:$0xff]   ;;  %13753 = vst [vmem:[#allocation5_spill] sm:$0xff] %v11175_v9 }
  0x3a   : > { %v1587_v34 = vrot.slane %v1585_v24, 1  ;;  %1237 = vperm.xlu0 %10340, %v1215_v42   ;;  %v10404_v24 = vld [vmem:[%s13726_s5 + $0x28] sm:$0xff]  }
  0x3b   : > { %9757 = vmatpush3.bf16.msra.mxu0 %v10371_v33  ;;  %v1579_v33 = vrot.slane %v1577_v23, 1  ;;  %v10403_v23 = vld [vmem:[%s13726_s5 + $0x68] sm:$0xff]  }
  0x3c   : > { %9758 = vmatprep.subr.bf16.mxu0 %v10376_v49  ;;  %v1591_v48 = vor.u32 %v1589_v35, %v1587_v34 }
  0x3d   : > { %693 = vperm.xlu1 %10341, %v651_v11   ;;  %v1583_v41 = vor.u32 %v1581_v32, %v1579_v33  ;;  %v1580_v44 = vsel %vm1544_vm1, %v1575_v40, %v1579_v33  ;;  %v10391_v11 = vld [vmem:[%s13726_s5 + $0x48] sm:$0xff]   ;;  %v321_v32 = vld [vmem:[#allocation2 + $0x98] sm:$0xf]  ;;  %v13750_v33 = vmov 0 }
  0x3e   : > { %9719 = vmatmul.mubr.bf16.gmra.mrb[8].mxu0 %v460_v55  ;;  %1247 = vperm.xlu0 %10340, %v1217_v46   ;;  %v1596_v51 = vsel %vm1544_vm1, %v1591_v48, %v1595_v36  ;;  %v1224_v55 = vld [vmem:[%s13722_s1 + $0xcb] sm:$0xff]  ;;  %v13751_v33 = vsel %vm11116_vm7, 4294967295, %v13750_v33  ;;  %v322_v35 = vsel %vm11116_vm7, 0, %v321_v32 }
  0x3f   : > { %9747 = vmatmul.mubr.bf16.gmra.mrb[8].mxu1 %v1041_v60  ;;  %9759 = vmatpush3.bf16.msra.mxu0 %v10376_v49  ;;  %v1588_v45 = vsel %vm1544_vm1, %v1583_v41, %v1587_v34  ;;  %v1219_v49 = vld [vmem:[%s13722_s1 + $0xa3] sm:$0xff]  ;;  %v1772_v60 = vld [vmem:[%s13722_s1 + $0xf1] sm:$0xff]  ;;  %13752 = vst [vmem:[#allocation4_spill] sm:$0xff] %v13751_v33  ;;  %323 = vst [vmem:[#allocation2 + $0x98] sm:$0xf] %v322_v35 }
  0x40   : > { %9760 = vmatprep.subr.bf16.mxu0 %v10377_v58  ;;  %9766 = vmatprep.mubr.bf16.mxu0 %v1556_v13  ;;  %v10393_v13 = vld [vmem:[%s13726_s5 + $0x90] sm:$0xff]   ;;  %v331_v34 = vld [vmem:[%s10822_s22 + $0x98] sm:$0xf] }
  0x41   : > { %703 = vperm.xlu1 %10341, %v653_v22   ;;  %9060 = vmatprep.subr.bf16.mxu1 %v10391_v11  ;;  %v10402_v22 = vld [vmem:[%s13726_s5 + $0xa8] sm:$0xff]   ;;  %v332_v36 = vsel %vm11116_vm7, 0, %v331_v34 }
  0x42   : > { %1257 = vperm.xlu0 %10340, %v1219_v49   ;;  %9061 = vmatpush3.bf16.msra.mxu1 %v10392_v12  ;;  %333 = vst [vmem:[%s10822_s22 + $0x98] sm:$0xf] %v332_v36 }
  0x43   : > { %9761 = vmatpush3.bf16.msra.mxu0 %v10377_v58  ;;  %v1770_v58 = vld [vmem:[%s13722_s1 + $0xe1] sm:$0xff]  ;;  %9062 = vmatprep.subr.bf16.mxu1 %v10394_v14 }
  0x44   : > { %9762 = vmatprep.subr.bf16.mxu0 %v10378_v3 }
  0x45   : > { %713 = vperm.xlu1 %10341, %v655_v31   ;;  %v10414_v31 = vld [vmem:[%s13727_s6] sm:$0xff]  }
  0x46   : > { %1267 = vperm.xlu0 %10340, %v1221_v52  }
  0x47   : > { %9763 = vmatpush3.bf16.msra.mxu0 %v10378_v3  ;;  %v1779_v3 = vld [vmem:[%s13722_s1 + $0x129] sm:$0xff] }
  0x48   : > { %9764 = vmatprep.subr.bf16.mxu0 %v10379_v15 }
  0x49   : > { %1232 = vperm.xlu1 %10341, %v1214_v39   ;;  %v10416_v39 = vld [vmem:[%s13726_s5 + $0x100] sm:$0xff]  }
  0x4a   : > { %1277 = vperm.xlu0 %10340, %v1223_v54  }
  0x4b   : > { %9765 = vmatpush3.bf16.msra.mxu0 %v10379_v15  ;;  %v10395_v15 = vld [vmem:[%s13726_s5 + $0x10] sm:$0xff]  }
  0x4c   : > { %9778 = vmatprep.subr.bf16.mxu0 %v10387_v7  ;;  %9063 = vmatpush3.bf16.msra.mxu1 %v10395_v15 }
  0x4d   : > { %1242 = vperm.xlu1 %10341, %v1216_v43   ;;  %9064 = vmatprep.subr.bf16.mxu1 %v10397_v17 }
  0x4e   : > { %9767 = vmatmul.mubr.bf16.vlgmr.msra.gmra.mrb[12].mxu0 %v1564_v28  ;;  %1782 = vperm.xlu0 %10340, %v1768_v56   ;;  %v10408_v28 = vld [vmem:[%s13726_s5 + $0xb8] sm:$0xff]  }
  0x4f   : > { %9770 = vmatprep.mubr.bf16.mxu0 %v1572_v37  ;;  %9779 = vmatpush3.bf16.msra.mxu0 %v10387_v7 }
  0x50   : > { %9780 = vmatprep.subr.bf16.mxu0 %v10390_v10  ;;  %9065 = vmatpush3.bf16.msra.mxu1 %v10398_v18 }
  0x51   : > { %1252 = vperm.xlu1 %10341, %v1218_v47   ;;  %9066 = vmatprep.subr.bf16.mxu1 %v10400_v20  ;;  %v2060_v47 = vld [vmem:[#allocation2 + $0x4] sm:$0xf] }
  0x52   : > { %1792 = vperm.xlu0 %10340, %v1770_v58   ;;  %v10437_v58 = vld [vmem:[%s10846_s14 + $0x8] sm:$0xfe]  }
  0x53   : > { %9781 = vmatpush3.bf16.msra.mxu0 %v10390_v10 }
  0x54   : > { %9782 = vmatprep.subr.bf16.mxu0 %v10393_v13  ;;  %9067 = vmatpush3.bf16.msra.mxu1 %v10401_v21 }
  0x55   : > { %1262 = vperm.xlu1 %10341, %v1220_v50   ;;  %9068 = vmatprep.subr.bf16.mxu1 %v10403_v23 }
  0x56   : > { %9771 = vmatmul.mubr.bf16.gmra.mrb[16].mxu0 %v1580_v44  ;;  %1802 = vperm.xlu0 %10340, %v1772_v60   ;;  %v10440_v60 = vld [vmem:[%s10846_s14 + $0x18] sm:$0xff]  }
  0x57   : > { %9774 = vmatprep.mubr.bf16.mxu0 %v1588_v45  ;;  %9783 = vmatpush3.bf16.msra.mxu0 %v10393_v13  ;;  %v2059_v45 = vld [vmem:[#allocation2] sm:$0xf]  ;;  %v2598_v7 = vshrl.u32 %v10440_v60, 16  ;;  %v2601_v8 = vshll.u32 %v10440_v60, 16 }
  0x58   : > { %9784 = vmatprep.subr.bf16.mxu0 %v10396_v16  ;;  %9069 = vmatpush3.bf16.msra.mxu1 %v10404_v24  ;;  %v11145_v48 = vcombine.low %v2059_v45, %v2060_v47 }
  0x59   : > { %1272 = vperm.xlu1 %10341, %v1222_v53   ;;  %9070 = vmatprep.subr.bf16.mxu1 %v10406_v26  ;;  %v2603_v20 = vrot.slane %v2601_v8, 2 }
  0x5a   : > { %1812 = vperm.xlu0 %10340, %v1774_v62   ;;  %v2115_v52 = vshll.u32 %v11145_v48, 16  ;;  %v2113_v56 = vshrl.u32 %v11145_v48, 16  ;;  %v2581_v62 = vshrl.u32 %v10437_v58, 16 }
  0x5b   : > { %9785 = vmatpush3.bf16.msra.mxu0 %v10396_v16 }
  0x5c   : > { %9786 = vmatprep.subr.bf16.mxu0 %v10399_v19  ;;  %9071 = vmatpush3.bf16.msra.mxu1 %v10407_v27  ;;  %v11179_v12 = vrot.slane %v2581_v62, 1 }
  0x5d   : > { %1282 = vperm.xlu1 %10341, %v1224_v55   ;;  %9072 = vmatprep.subr.bf16.mxu1 %v10409_v29 }
  0x5e   : > { %9775 = vmatmul.mubr.bf16.gmra.mrb[20].mxu0 %v1596_v51  ;;  %1822 = vperm.xlu0 %10340, %v1776_v0   ;;  %v2072_v51 = vld [vmem:[#allocation2] sm:$0xe] }
  0x5f   : > { %9787 = vmatpush3.bf16.msra.mxu0 %v10399_v19  ;;  %v8280_v55 = vcombine.low %v2072_v51, %v2060_v47  ;;  %v2600_v19 = vrot.slane %v2598_v7, 1 }
  0x60   : > { %9788 = vmatprep.subr.bf16.mxu0 %v10402_v22  ;;  %9073 = vmatpush3.bf16.msra.mxu1 %v10410_v30 }
  0x61   : > { %1787 = vperm.xlu1 %10341, %v1769_v57   ;;  %9138 = vmatprep.subr.bf16.mxu1 %v10416_v39  ;;  %v2117_v57 = vrot.slane %v2115_v52, 1  ;;  %v11170_v5 = vrot.slane %v8280_v55, 1  ;;  %v11194_v34 = vor.u32 %v2603_v20, %v2600_v19 }
  0x62   : > { %1832 = vperm.xlu0 %10340, %v1778_v2  }
  0x63   : > { %9789 = vmatpush3.bf16.msra.mxu0 %v10402_v22  ;;  %v11172_v6 = vor.u32 %v2117_v57, %v2113_v56 }
  0x64   : > { %9790 = vmatprep.subr.bf16.mxu0 %v10405_v25 }
  0x65   : > { %1797 = vperm.xlu1 %10341, %v1771_v59   ;;  %v10438_v59 = vld [vmem:[%s10846_s14 + $0x10] sm:$0xff]  }
  0x66   : > { %v2589_v0 = vshrl.u32 %v10438_v59, 16 }
  0x67   : > { %9791 = vmatpush3.bf16.msra.mxu0 %v10405_v25 }
  0x68   : > { %9792 = vmatprep.subr.bf16.mxu0 %v10408_v28  ;;  %v2591_v14 = vrot.slane %v2589_v0, 1 }
  0x69   : > { %1807 = vperm.xlu1 %10341, %v1773_v61   ;;  %v11163_v61 = vld [vmem:[%s13724_s3] ss:$0 sm:$0xff] }
  0x6b   : > { %9793 = vmatpush3.bf16.msra.mxu0 %v10408_v28 }
  0x6c   : > { %9806 = vmatprep.subr.bf16.mxu0 %v10414_v31 }
  0x6d   : > { %1817 = vperm.xlu1 %10341, %v1775_v63   ;;  %v2584_v63 = vshll.u32 %v10437_v58, 16 }
  0x6f   : > { %v11181_v13 = vrot.slane %v2584_v63, 2 }
  0x71   : > { %1827 = vperm.xlu1 %10341, %v1777_v1   ;;  %v2592_v1 = vshll.u32 %v10438_v59, 16 }
  0x73   : > { %v2594_v15 = vrot.slane %v2592_v1, 2 }
  0x75   : > { %1837 = vperm.xlu1 %10341, %v1779_v3   ;;  %v11168_v3 = vld [vmem:[%s13725_s4] ss:$0 sm:$0xff]  ;;  %v11189_v27 = vor.u32 %v2594_v15, %v2591_v14 }
  0x9d   : > { %v11126_v37 = vpop.permute.xlu0 %658 }
  0xa1   : > { %v11133_v40 = vpop.permute.xlu0 %663 }
  0xa5   : > { %v11137_v42 = vpop.permute.xlu0 %678 }
  0xa9   : > { %v11141_v44 = vpop.permute.xlu0 %688 }
  0xad   : > { %v11147_v49 = vpop.permute.xlu0 %698 }
  0xb0   : > { %v11128_v38 = vpop.permute.xlu1 %668 }
  0xb1   : > { %v11152_v53 = vpop.permute.xlu0 %708 }
  0xb4   : > { %v11135_v41 = vpop.permute.xlu1 %673 }
  0xb5   : > { %v1228_v2 = vpop.permute.xlu0 %1227 }
  0xb8   : > { %v11139_v43 = vpop.permute.xlu1 %683 }
  0xb9   : > { %v1238_v62 = vpop.permute.xlu0 %1237 }
  0xbc   : > { %v11143_v46 = vpop.permute.xlu1 %693 }
  0xc0   : > { %v11149_v50 = vpop.permute.xlu1 %703 }
  0xc4   : > { %v11154_v54 = vpop.permute.xlu1 %713 }
  0xc8   : > { %v11177_v10 = vpop.permute.xlu1 %1232 }
  0xcc   : > { %v1243_v8 = vpop.permute.xlu1 %1242 }
 0x101   : > { %v9712_v11 = vpop.f32.mrb[0].mxu0 }
 0x102   : > { %v604_v16 = vmul.f32 %v9712_v11, %v11163_v61  ;;  %v9740_v17 = vpop.f32.mrb[0].mxu1  ;;  %v549_v18 = vpop.f32.mrb[1].mxu0 }
 0x103   : > { %v1179_v22 = vmul.f32 %v9740_v17, %v11163_v61  ;;  %v602_v23 = vmul.f32 %v11163_v61, %v549_v18  ;;  %v1130_v24 = vpop.f32.mrb[1].mxu1  ;;  %v9713_v25 = vpop.f32.mrb[2].mxu0 }
 0x104   : > { %v622_v28 = vadd.f32 %v11168_v3, %v604_v16  ;;  %v1177_v29 = vmul.f32 %v11163_v61, %v1130_v24  ;;  %v605_v30 = vmul.f32 %v9713_v25, %v11163_v61  ;;  %v9741_v31 = vpop.f32.mrb[2].mxu1  ;;  %v552_v32 = vpop.f32.mrb[3].mxu0 }
 0x105   : > { %v1191_v35 = vadd.f32 %v11168_v3, %v1179_v22  ;;  %v620_v36 = vadd.f32 %v11168_v3, %v602_v23  ;;  %v1180_v39 = vmul.f32 %v9741_v31, %v11163_v61  ;;  %v603_v45 = vmul.f32 %v11163_v61, %v552_v32  ;;  %v1133_v47 = vpop.f32.mrb[3].mxu1 }
 0x106   : > { %v634_v51 = vmax.f32 %v622_v28, 0.0  ;;  %v1189_v52 = vadd.f32 %v11168_v3, %v1177_v29  ;;  %v623_v55 = vadd.f32 %v11168_v3, %v605_v30  ;;  %v1178_v56 = vmul.f32 %v11163_v61, %v1133_v47 }
 0x107   : > { %v1203_v57 = vmax.f32 %v1191_v35, 0.0  ;;  %v632_v58 = vmax.f32 %v620_v36, 0.0  ;;  %v1192_v59 = vadd.f32 %v11168_v3, %v1180_v39  ;;  %v621_v60 = vadd.f32 %v11168_v3, %v603_v45 }
 0x108   : > { %v718_v63 = vmul.f32 %v11128_v38, %v634_v51  ;;  %v1201_v0 = vmax.f32 %v1189_v52, 0.0  ;;  %v635_v1 = vmax.f32 %v623_v55, 0.0  ;;  %v11207_v7 = vadd.f32 %v11168_v3, %v1178_v56 }
 0x109   : > { %v1287_v11 = vmul.f32 %v1238_v62, %v1203_v57  ;;  %v716_v14 = vmul.f32 %v11126_v37, %v632_v58  ;;  %v1204_v15 = vmax.f32 %v1192_v59, 0.0  ;;  %v633_v16 = vmax.f32 %v621_v60, 0.0  ;;  %v11210_v17 = vpop.f32.mrb[4].mxu0 }
 0x10a   : > { %v8946_v18 = vpack.c.bf16 %v718_v63, %v718_v63  ;;  %v1285_v19 = vmul.f32 %v1228_v2, %v1201_v0  ;;  %v719_v20 = vmul.f32 %v11135_v41, %v635_v1  ;;  %v1202_v38 = vmax.f32 %v11207_v7, 0.0  ;;  %v11214_v22 = vpop.f32.mrb[4].mxu1  ;;  %v11216_v23 = vpop.f32.mrb[5].mxu0  ;;  %v901_v63 = vld [vmem:[#allocation2 + $0x8] sm:$0xe] }
 0x10b   : > { %v8958_v24 = vpack.c.bf16 %v1287_v11, %v1287_v11  ;;  %v8944_v25 = vpack.c.bf16 %v716_v14, %v716_v14  ;;  %v1288_v28 = vmul.f32 %v1243_v8, %v1204_v15  ;;  %v717_v37 = vmul.f32 %v11133_v40, %v633_v16  ;;  %v11219_v29 = vpop.f32.mrb[5].mxu1  ;;  %v11221_v30 = vpop.f32.mrb[6].mxu0 }
 0x10c   : > { %v786_v31 = vshrl.u32 %v8946_v18, 16  ;;  %v789_v32 = vshll.u32 %v8946_v18, 16  ;;  %v8956_v2 = vpack.c.bf16 %v1285_v19, %v1285_v19  ;;  %v8947_v35 = vpack.c.bf16 %v719_v20, %v719_v20  ;;  %v11223_v41 = vpop.f32.mrb[6].mxu1  ;;  %v11225_v36 = vpop.f32.mrb[7].mxu0 }
 0x10d   : > { %v1353_v39 = vshrl.u32 %v8958_v24, 16  ;;  %v1356_v45 = vshll.u32 %v8958_v24, 16  ;;  %v767_v47 = vshrl.u32 %v8944_v25, 16  ;;  %v770_v51 = vshll.u32 %v8944_v25, 16  ;;  %v11227_v52 = vpop.f32.mrb[7].mxu1 }
 0x10e   : > { %v788_v55 = vrot.slane %v786_v31, 6  ;;  %v791_v40 = vrot.slane %v789_v32, 7  ;;  %v1334_v56 = vshrl.u32 %v8956_v2, 16  ;;  %v1337_v57 = vshll.u32 %v8956_v2, 16 }
 0x10f   : > { %v1355_v58 = vrot.slane %v1353_v39, 6  ;;  %v1358_v59 = vrot.slane %v1356_v45, 7  ;;  %v769_v60 = vrot.slane %v767_v47, 6  ;;  %v772_v62 = vrot.slane %v770_v51, 7 }
 0x110   : > { %v11229_v0 = vor.u32 %v791_v40, %v788_v55  ;;  %v1336_v7 = vrot.slane %v1334_v56, 6  ;;  %v1339_v8 = vrot.slane %v1337_v57, 7  ;;  %v796_v11 = vshrl.u32 %v8947_v35, 16 }
 0x111   : > { %v11237_v14 = vor.u32 %v1358_v59, %v1355_v58  ;;  %v773_v15 = vor.u32 %v772_v62, %v769_v60  ;;  %v799_v16 = vshll.u32 %v8947_v35, 16  ;;  %v8959_v18 = vpack.c.bf16 %v1288_v28, %v1288_v28  ;;  %v11239_v19 = vpop.f32.mrb[8].mxu0  ;;  %v1248_v60 = vpop.permute.xlu0 %1247 }
 0x112   : > { %v794_v20 = vrot.slane %v11229_v0, 4  ;;  %v11242_v24 = vor.u32 %v1339_v8, %v1336_v7  ;;  %v798_v25 = vrot.slane %v796_v11, 6  ;;  %v8945_v31 = vpack.c.bf16 %v717_v37, %v717_v37  ;;  %v11244_v32 = vpop.f32.mrb[8].mxu1  ;;  %v11246_v2 = vpop.f32.mrb[9].mxu0 }
 0x113   : > { %v1361_v39 = vrot.slane %v11237_v14, 4  ;;  %v774_v45 = vrot.slane %v773_v15, 4  ;;  %v902_v47 = vsel %vm11233_vm11, %v773_v15, %v901_v63  ;;  %v801_v35 = vrot.slane %v799_v16, 7  ;;  %v11251_v28 = vpop.f32.mrb[9].mxu1  ;;  %v11253_v51 = vpop.f32.mrb[10].mxu0 }
 0x114   : > { %903 = vst [vmem:[#allocation2 + $0x8] sm:$0xe] %v902_v47  ;;  %v1341_v37 = vrot.slane %v11242_v24, 4  ;;  %v1363_v40 = vshrl.u32 %v8959_v18, 16  ;;  %v1366_v56 = vshll.u32 %v8959_v18, 16  ;;  %v776_v57 = vshrl.u32 %v8945_v31, 16 }
 0x115   : > { %v11262_v58 = vpop.f32.mrb[10].mxu1  ;;  %v11264_v59 = vpop.f32.mrb[11].mxu0  ;;  %v11266_v62 = vor.u32 %v801_v35, %v798_v25  ;;  %v779_v63 = vshll.u32 %v8945_v31, 16  ;;  %v1286_v7 = vmul.f32 %v11177_v10, %v1202_v38  ;;  %v608_v8 = vmul.f32 %v11210_v17, %v11163_v61 }
 0x116   : > { %v11271_v11 = vpop.f32.mrb[11].mxu1  ;;  %v1365_v15 = vrot.slane %v1363_v40, 6  ;;  %v1368_v16 = vrot.slane %v1366_v56, 7  ;;  %v778_v47 = vrot.slane %v776_v57, 6  ;;  %v1183_v18 = vmul.f32 %v11214_v22, %v11163_v61 }
 0x117   : > { %v803_v21 = vsel %vm11257_vm12, %v794_v20, %v11266_v62  ;;  %v804_v25 = vrot.slane %v11266_v62, 4  ;;  %v781_v31 = vrot.slane %v779_v63, 7  ;;  %v8957_v35 = vpack.c.bf16 %v1286_v7, %v1286_v7 }
 0x118   : > { %906 = vst [vmem:[#allocation2 + $0x14] sm:$0xf] %v803_v21  ;;  %v11279_v10 = vor.u32 %v1368_v16, %v1365_v15  ;;  %v626_v17 = vadd.f32 %v11168_v3, %v608_v8  ;;  %v1195_v38 = vadd.f32 %v11168_v3, %v1183_v18  ;;  %v606_v40 = vmul.f32 %v11163_v61, %v11216_v23  ;;  %v1258_v8 = vpop.permute.xlu0 %1257 }
 0x119   : > { %v782_v56 = vor.u32 %v781_v31, %v778_v47  ;;  %v1343_v22 = vshrl.u32 %v8957_v35, 16  ;;  %v1346_v57 = vshll.u32 %v8957_v35, 16  ;;  %v1181_v20 = vmul.f32 %v11163_v61, %v11219_v29 }
 0x11a   : > { %v1370_v63 = vsel %vm11257_vm12, %v1361_v39, %v11279_v10  ;;  %v1371_v21 = vrot.slane %v11279_v10, 4  ;;  %v638_v7 = vmax.f32 %v626_v17, 0.0  ;;  %v1207_v15 = vmax.f32 %v1195_v38, 0.0 }
 0x11b   : > { %1470 = vst [vmem:[#allocation2 + $0x44] sm:$0xf] %v1370_v63  ;;  %v783_v16 = vsel %vm11257_vm12, %v774_v45, %v782_v56  ;;  %v784_v23 = vrot.slane %v782_v56, 4  ;;  %v1345_v47 = vrot.slane %v1343_v22, 6  ;;  %v1348_v18 = vrot.slane %v1346_v57, 7 }
 0x11c   : > { %904 = vst [vmem:[#allocation2 + $0xc] sm:$0xf] %v783_v16  ;;  %v722_v31 = vmul.f32 %v11141_v44, %v638_v7  ;;  %v1291_v29 = vmul.f32 %v1258_v8, %v1207_v15  ;;  %v624_v35 = vadd.f32 %v11168_v3, %v606_v40  ;;  %v1193_v39 = vadd.f32 %v11168_v3, %v1181_v20  ;;  %v11303_v7 = vpop.permute.xlu1 %1252 }
 0x11d   : > { %v793_v17 = vsel %vm11257_vm12, %v784_v23, %v11229_v0  ;;  %v1349_v38 = vor.u32 %v1348_v18, %v1345_v47  ;;  %v609_v63 = vmul.f32 %v11221_v30, %v11163_v61  ;;  %v1184_v45 = vmul.f32 %v11223_v41, %v11163_v61 }
 0x11e   : > { %905 = vst [vmem:[#allocation2 + $0x10] sm:$0xf] %v793_v17  ;;  %v8950_v56 = vpack.c.bf16 %v722_v31, %v722_v31  ;;  %v8962_v22 = vpack.c.bf16 %v1291_v29, %v1291_v29  ;;  %v636_v44 = vmax.f32 %v624_v35, 0.0  ;;  %v1205_v57 = vmax.f32 %v1193_v39, 0.0 }
 0x11f   : > { %v1350_v40 = vsel %vm11257_vm12, %v1341_v37, %v1349_v38  ;;  %v1351_v20 = vrot.slane %v1349_v38, 4  ;;  %v627_v0 = vadd.f32 %v11168_v3, %v609_v63  ;;  %v1196_v15 = vadd.f32 %v11168_v3, %v1184_v45 }
 0x120   : > { %1468 = vst [vmem:[#allocation2 + $0x3c] sm:$0xf] %v1350_v40  ;;  %v826_v30 = vshrl.u32 %v8950_v56, 16  ;;  %v829_v8 = vshll.u32 %v8950_v56, 16  ;;  %v1393_v16 = vshrl.u32 %v8962_v22, 16  ;;  %v1396_v41 = vshll.u32 %v8962_v22, 16 }
 0x121   : > { %v1360_v23 = vsel %vm11257_vm12, %v1351_v20, %v11237_v14  ;;  %v720_v47 = vmul.f32 %v11137_v42, %v636_v44  ;;  %v1289_v18 = vmul.f32 %v1248_v60, %v1205_v57  ;;  %v639_v31 = vmax.f32 %v627_v0, 0.0  ;;  %v11313_v29 = vpop.f32.mrb[12].mxu0  ;;  %v1263_v20 = vpop.permute.xlu1 %1262 }
 0x122   : > { %1469 = vst [vmem:[#allocation2 + $0x40] sm:$0xf] %v1360_v23  ;;  %v828_v37 = vrot.slane %v826_v30, 6  ;;  %v831_v35 = vrot.slane %v829_v8, 7  ;;  %v1395_v39 = vrot.slane %v1393_v16, 6  ;;  %v1398_v17 = vrot.slane %v1396_v41, 7 }
 0x123   : > { %v11315_v38 = vpop.f32.mrb[13].mxu0  ;;  %v8948_v63 = vpack.c.bf16 %v720_v47, %v720_v47  ;;  %v8960_v45 = vpack.c.bf16 %v1289_v18, %v1289_v18  ;;  %v723_v56 = vmul.f32 %v11143_v46, %v639_v31  ;;  %v1208_v22 = vmax.f32 %v1196_v15, 0.0 }
 0x124   : > { %v11318_v40 = vpop.f32.mrb[14].mxu0  ;;  %v11320_v14 = vor.u32 %v831_v35, %v828_v37  ;;  %v11322_v42 = vor.u32 %v1398_v17, %v1395_v39  ;;  %v607_v60 = vmul.f32 %v11163_v61, %v11225_v36  ;;  %v1182_v44 = vmul.f32 %v11163_v61, %v11227_v52 }
 0x125   : > { %v11328_v57 = vpop.f32.mrb[15].mxu0  ;;  %v806_v0 = vshrl.u32 %v8948_v63, 16  ;;  %v809_v30 = vshll.u32 %v8948_v63, 16  ;;  %v1373_v8 = vshrl.u32 %v8960_v45, 16  ;;  %v1376_v46 = vshll.u32 %v8960_v45, 16 }
 0x126   : > { %v834_v15 = vrot.slane %v11320_v14, 4  ;;  %v1401_v16 = vrot.slane %v11322_v42, 4  ;;  %v8951_v41 = vpack.c.bf16 %v723_v56, %v723_v56  ;;  %v1292_v23 = vmul.f32 %v1263_v20, %v1208_v22 }
 0x127   : > { %v808_v47 = vrot.slane %v806_v0, 6  ;;  %v811_v18 = vrot.slane %v809_v30, 7  ;;  %v1375_v31 = vrot.slane %v1373_v8, 6  ;;  %v1378_v36 = vrot.slane %v1376_v46, 7 }
 0x128   : > { %v836_v37 = vshrl.u32 %v8951_v41, 16  ;;  %v839_v35 = vshll.u32 %v8951_v41, 16  ;;  %v8963_v52 = vpack.c.bf16 %v1292_v23, %v1292_v23  ;;  %v625_v39 = vadd.f32 %v11168_v3, %v607_v60  ;;  %v1268_v23 = vpop.permute.xlu0 %1267 }
 0x129   : > { %v11333_v17 = vor.u32 %v811_v18, %v808_v47  ;;  %v11335_v63 = vor.u32 %v1378_v36, %v1375_v31  ;;  %v1194_v45 = vadd.f32 %v11168_v3, %v1182_v44  ;;  %v612_v26 = vmul.f32 %v11239_v19, %v11163_v61  ;;  %v11340_v56 = vpop.f32.mrb[16].mxu0 }
 0x12a   : > { %v838_v22 = vrot.slane %v836_v37, 6  ;;  %v841_v20 = vrot.slane %v839_v35, 7  ;;  %v1403_v0 = vshrl.u32 %v8963_v52, 16  ;;  %v1406_v30 = vshll.u32 %v8963_v52, 16  ;;  %v11342_v8 = vpop.f32.mrb[17].mxu0 }
 0x12b   : > { %v813_v60 = vsel %vm11257_vm12, %v804_v25, %v11333_v17  ;;  %v1380_v19 = vsel %vm11257_vm12, %v1371_v21, %v11335_v63  ;;  %v11356_v41 = vpop.f32.mrb[18].mxu0  ;;  %v637_v25 = vmax.f32 %v625_v39, 0.0  ;;  %v1206_v36 = vmax.f32 %v1194_v45, 0.0 }
 0x12c   : > { %907 = vst [vmem:[#allocation2 + $0x18] sm:$0xf] %v813_v60  ;;  %1471 = vst [vmem:[#allocation2 + $0x48] sm:$0xf] %v1380_v19  ;;  %v11358_v47 = vor.u32 %v841_v20, %v838_v22  ;;  %v1405_v62 = vrot.slane %v1403_v0, 6  ;;  %v1408_v18 = vrot.slane %v1406_v30, 7  ;;  %v630_v10 = vadd.f32 %v11168_v3, %v612_v26 }
 0x12d   : > { %v11360_v31 = vpop.f32.mrb[19].mxu0  ;;  %v1187_v21 = vmul.f32 %v11244_v32, %v11163_v61  ;;  %v610_v37 = vmul.f32 %v11163_v61, %v11246_v2  ;;  %v721_v39 = vmul.f32 %v11139_v43, %v637_v25  ;;  %v1290_v45 = vmul.f32 %v11303_v7, %v1206_v36 }
 0x12e   : > { %v843_v35 = vsel %vm11257_vm12, %v834_v15, %v11358_v47  ;;  %v11371_v22 = vor.u32 %v1408_v18, %v1405_v62  ;;  %v642_v26 = vmax.f32 %v630_v10, 0.0  ;;  %v1185_v30 = vmul.f32 %v11163_v61, %v11251_v28  ;;  %v1278_v18 = vpop.permute.xlu0 %1277 }
 0x12f   : > { %910 = vst [vmem:[#allocation2 + $0x24] sm:$0xf] %v843_v35  ;;  %v1199_v20 = vadd.f32 %v11168_v3, %v1187_v21  ;;  %v628_v32 = vadd.f32 %v11168_v3, %v610_v37  ;;  %v8949_v0 = vpack.c.bf16 %v721_v39, %v721_v39  ;;  %v8961_v43 = vpack.c.bf16 %v1290_v45, %v1290_v45 }
 0x130   : > { %v1410_v2 = vsel %vm11257_vm12, %v1401_v16, %v11371_v22  ;;  %v726_v60 = vmul.f32 %v11152_v53, %v642_v26  ;;  %v1197_v10 = vadd.f32 %v11168_v3, %v1185_v30  ;;  %v613_v16 = vmul.f32 %v11253_v51, %v11163_v61 }
 0x131   : > { %1474 = vst [vmem:[#allocation2 + $0x54] sm:$0xf] %v1410_v2  ;;  %v1211_v7 = vmax.f32 %v1199_v20, 0.0  ;;  %v640_v19 = vmax.f32 %v628_v32, 0.0  ;;  %v11384_v62 = vpop.f32.mrb[20].mxu0  ;;  %v816_v25 = vshrl.u32 %v8949_v0, 16 }
 0x132   : > { %v819_v36 = vshll.u32 %v8949_v0, 16  ;;  %v11389_v21 = vpop.f32.mrb[21].mxu0  ;;  %v1383_v37 = vshrl.u32 %v8961_v43, 16  ;;  %v1386_v28 = vshll.u32 %v8961_v43, 16  ;;  %v8954_v35 = vpack.c.bf16 %v726_v60, %v726_v60 }
 0x133   : > { %v1295_v39 = vmul.f32 %v1278_v18, %v1211_v7  ;;  %v11391_v45 = vpop.f32.mrb[22].mxu0  ;;  %v818_v53 = vrot.slane %v816_v25, 6  ;;  %v724_v20 = vmul.f32 %v11147_v49, %v640_v19  ;;  %v1209_v32 = vmax.f32 %v1197_v10, 0.0 }
 0x134   : > { %v821_v26 = vrot.slane %v819_v36, 7  ;;  %v11394_v2 = vpop.f32.mrb[23].mxu0  ;;  %v1385_v0 = vrot.slane %v1383_v37, 6  ;;  %v1388_v30 = vrot.slane %v1386_v28, 7  ;;  %v866_v15 = vshrl.u32 %v8954_v35, 16 }
 0x135   : > { %v869_v52 = vshll.u32 %v8954_v35, 16  ;;  %v8966_v44 = vpack.c.bf16 %v1295_v39, %v1295_v39  ;;  %v8952_v46 = vpack.c.bf16 %v724_v20, %v724_v20  ;;  %v1293_v9 = vmul.f32 %v1268_v23, %v1209_v32 }
 0x136   : > { %v822_v51 = vor.u32 %v821_v26, %v818_v53  ;;  %v1389_v43 = vor.u32 %v1388_v30, %v1385_v0  ;;  %v868_v60 = vrot.slane %v866_v15, 6  ;;  %v631_v18 = vadd.f32 %v11168_v3, %v613_v16  ;;  %v1273_v53 = vpop.permute.xlu1 %1272 }
 0x137   : > { %v871_v7 = vrot.slane %v869_v52, 7  ;;  %v13758_v25 = vrot.slane %v11333_v17, 4  ;;  %v1433_v36 = vshrl.u32 %v8966_v44, 16  ;;  %v1436_v10 = vshll.u32 %v8966_v44, 16 }
 0x138   : > { %v824_v19 = vrot.slane %v822_v51, 4  ;;  %v13759_v37 = vrot.slane %v11335_v63, 4  ;;  %v1391_v23 = vrot.slane %v1389_v43, 4  ;;  %v846_v52 = vshrl.u32 %v8952_v46, 16 }
 0x139   : > { %v823_v49 = vsel %vm11257_vm12, %v13758_v25, %v822_v51  ;;  %v11405_v35 = vor.u32 %v871_v7, %v868_v60  ;;  %v1435_v15 = vrot.slane %v1433_v36, 6  ;;  %v1438_v16 = vrot.slane %v1436_v10, 7 }
 0x13a   : > { %908 = vst [vmem:[#allocation2 + $0x1c] sm:$0xf] %v823_v49  ;;  %v1390_v28 = vsel %vm11257_vm12, %v13759_v37, %v1389_v43  ;;  %v833_v17 = vsel %vm11257_vm12, %v824_v19, %v11320_v14  ;;  %v849_v39 = vshll.u32 %v8952_v46, 16  ;;  %v1400_v63 = vsel %vm11257_vm12, %v1391_v23, %v11322_v42 }
 0x13b   : > { %1472 = vst [vmem:[#allocation2 + $0x4c] sm:$0xf] %v1390_v28  ;;  %909 = vst [vmem:[#allocation2 + $0x20] sm:$0xf] %v833_v17  ;;  %v874_v44 = vrot.slane %v11405_v35, 4  ;;  %v848_v26 = vrot.slane %v846_v52, 6  ;;  %v8964_v20 = vpack.c.bf16 %v1293_v9, %v1293_v9  ;;  %v11414_v32 = vor.u32 %v1438_v16, %v1435_v15  ;;  %v1283_v28 = vpop.permute.xlu1 %1282 }
 0x13c   : > { %1473 = vst [vmem:[#allocation2 + $0x50] sm:$0xf] %v1400_v63  ;;  %v851_v0 = vrot.slane %v849_v39, 7  ;;  %v643_v30 = vmax.f32 %v631_v18, 0.0  ;;  %v1188_v14 = vmul.f32 %v11262_v58, %v11163_v61  ;;  %v611_v43 = vmul.f32 %v11163_v61, %v11264_v59  ;;  %v1783_v63 = vpop.permute.xlu0 %1782 }
 0x13d   : > { %v1413_v51 = vshrl.u32 %v8964_v20, 16  ;;  %v1416_v46 = vshll.u32 %v8964_v20, 16  ;;  %v1186_v42 = vmul.f32 %v11163_v61, %v11271_v11  ;;  %v1441_v60 = vrot.slane %v11414_v32, 4 }
 0x13e   : > { %v11423_v7 = vor.u32 %v851_v0, %v848_v26  ;;  %v727_v9 = vmul.f32 %v11154_v54, %v643_v30  ;;  %v1200_v25 = vadd.f32 %v11168_v3, %v1188_v14  ;;  %v629_v58 = vadd.f32 %v11168_v3, %v611_v43 }
 0x13f   : > { %v1415_v18 = vrot.slane %v1413_v51, 6  ;;  %v1418_v49 = vrot.slane %v1416_v46, 7  ;;  %v1198_v19 = vadd.f32 %v11168_v3, %v1186_v42  ;;  %v13760_v59 = vrot.slane %v11358_v47, 4 }
 0x140   : > { %v854_v36 = vrot.slane %v11423_v7, 4  ;;  %v8955_v10 = vpack.c.bf16 %v727_v9, %v727_v9  ;;  %v1212_v37 = vmax.f32 %v1200_v25, 0.0  ;;  %v641_v23 = vmax.f32 %v629_v58, 0.0 }
 0x141   : > { %v853_v11 = vsel %vm11257_vm12, %v13760_v59, %v11423_v7  ;;  %v11435_v54 = vor.u32 %v1418_v49, %v1415_v18  ;;  %v1210_v52 = vmax.f32 %v1198_v19, 0.0  ;;  %v1734_v17 = vmul.f32 %v11313_v29, %v11163_v61  ;;  %v915_v18 = vld [vmem:[#allocation2 + $0x38] sm:$0x3] }
 0x142   : > { %911 = vst [vmem:[#allocation2 + $0x28] sm:$0xf] %v853_v11  ;;  %v876_v15 = vshrl.u32 %v8955_v10, 16  ;;  %v879_v16 = vshll.u32 %v8955_v10, 16  ;;  %v1296_v39 = vmul.f32 %v1283_v28, %v1212_v37  ;;  %v1732_v47 = vmul.f32 %v11163_v61, %v11315_v38 }
 0x143   : > { %v13761_v26 = vrot.slane %v11371_v22, 4  ;;  %v1421_v0 = vrot.slane %v11435_v54, 4  ;;  %v725_v30 = vmul.f32 %v11149_v50, %v641_v23  ;;  %v1294_v14 = vmul.f32 %v1273_v53, %v1210_v52  ;;  %v11452_v53 = vld [vmem:[#allocation2 + $0x8] sm:$0xff]   ;;  %v1793_v52 = vpop.permute.xlu0 %1792 }
 0x144   : > { %v878_v29 = vrot.slane %v876_v15, 6  ;;  %v881_v51 = vrot.slane %v879_v16, 7  ;;  %v8967_v46 = vpack.c.bf16 %v1296_v39, %v1296_v39  ;;  %v1746_v43 = vadd.f32 %v11168_v3, %v1734_v17 }
 0x145   : > { %v1420_v20 = vsel %vm11257_vm12, %v13761_v26, %v11435_v54  ;;  %v8953_v38 = vpack.c.bf16 %v725_v30, %v725_v30  ;;  %v8965_v42 = vpack.c.bf16 %v1294_v14, %v1294_v14  ;;  %v1744_v9 = vadd.f32 %v11168_v3, %v1732_v47  ;;  %v11456_v47 = vpop.permute.xlu1 %1787 }
 0x146   : > { %1475 = vst [vmem:[#allocation2 + $0x58] sm:$0xf] %v1420_v20  ;;  %v1735_v22 = vmul.f32 %v11318_v40, %v11163_v61  ;;  %v882_v25 = vor.u32 %v881_v51, %v878_v29  ;;  %v1443_v49 = vshrl.u32 %v8967_v46, 16  ;;  %v1446_v58 = vshll.u32 %v8967_v46, 16  ;;  %v1479_v40 = vld [vmem:[#allocation2 + $0x68] sm:$0x3] }
 0x147   : > { %v1758_v50 = vmax.f32 %v1746_v43, 0.0  ;;  %v856_v19 = vshrl.u32 %v8953_v38, 16  ;;  %v859_v59 = vshll.u32 %v8953_v38, 16  ;;  %v1423_v11 = vshrl.u32 %v8965_v42, 16 }
 0x148   : > { %v1426_v10 = vshll.u32 %v8965_v42, 16  ;;  %v883_v37 = vsel %vm11257_vm12, %v874_v44, %v882_v25  ;;  %v884_v28 = vrot.slane %v882_v25, 4  ;;  %v1445_v54 = vrot.slane %v1443_v49, 6 }
 0x149   : > { %v1448_v23 = vrot.slane %v1446_v58, 7  ;;  %914 = vst [vmem:[#allocation2 + $0x34] sm:$0xf] %v883_v37  ;;  %v858_v17 = vrot.slane %v856_v19, 6  ;;  %v861_v15 = vrot.slane %v859_v59, 7  ;;  %v1425_v16 = vrot.slane %v1423_v11, 6  ;;  %v1798_v11 = vpop.permute.xlu1 %1797 }
 0x14a   : > { %v1428_v39 = vrot.slane %v1426_v10, 7  ;;  %v916_v26 = vsel %vm11035_vm4, %v884_v28, %v915_v18  ;;  %v1842_v30 = vmul.f32 %v1793_v52, %v1758_v50  ;;  %v1756_v14 = vmax.f32 %v1744_v9, 0.0  ;;  %v11472_v58 = vld [vmem:[#allocation2 + $0x10] sm:$0xff]  }
 0x14b   : > { %v1449_v20 = vor.u32 %v1448_v23, %v1445_v54  ;;  %917 = vst [vmem:[#allocation2 + $0x38] sm:$0x3] %v916_v26  ;;  %v862_v44 = vor.u32 %v861_v15, %v858_v17  ;;  %v1747_v51 = vadd.f32 %v11168_v3, %v1735_v22  ;;  %v2175_v46 = vrot.slane %v11452_v53, 1 }
 0x14c   : > { %v1429_v29 = vor.u32 %v1428_v39, %v1425_v16  ;;  %v8970_v42 = vpack.c.bf16 %v1842_v30, %v1842_v30  ;;  %v1840_v25 = vmul.f32 %v1783_v63, %v1756_v14  ;;  %v1733_v54 = vmul.f32 %v11163_v61, %v11328_v57  ;;  %v11505_v30 = vld [vmem:[#allocation2 + $0x18] sm:$0xff]  }
 0x14d   : > { %v1450_v43 = vsel %vm11257_vm12, %v1441_v60, %v1449_v20  ;;  %v1451_v38 = vrot.slane %v1449_v20, 4  ;;  %v863_v9 = vsel %vm11257_vm12, %v854_v36, %v862_v44  ;;  %v864_v18 = vrot.slane %v862_v44, 4 }
 0x14e   : > { %1478 = vst [vmem:[#allocation2 + $0x64] sm:$0xf] %v1450_v43  ;;  %v1430_v22 = vsel %vm11257_vm12, %v1421_v0, %v1429_v29  ;;  %v1431_v49 = vrot.slane %v1429_v29, 4  ;;  %912 = vst [vmem:[#allocation2 + $0x2c] sm:$0xf] %v863_v9  ;;  %v1909_v63 = vshrl.u32 %v8970_v42, 16  ;;  %v8968_v7 = vpack.c.bf16 %v1840_v25, %v1840_v25 }
 0x14f   : > { %v1480_v60 = vsel %vm11035_vm4, %v1451_v38, %v1479_v40  ;;  %1476 = vst [vmem:[#allocation2 + $0x5c] sm:$0xf] %v1430_v22  ;;  %v1912_v50 = vshll.u32 %v8970_v42, 16  ;;  %v873_v36 = vsel %vm11257_vm12, %v864_v18, %v11405_v35  ;;  %v1759_v19 = vmax.f32 %v1747_v51, 0.0  ;;  %v10731_v42 = vld [vmem:[%s13727_s6] sm:$0xff]   ;;  %v10420_v9 = vld [vmem:[%s13726_s5 + $0x108] sm:$0xff]   ;;  %v11524_v22 = vpop.permute.xlu1 %1807 }
 0x150   : > { %1481 = vst [vmem:[#allocation2 + $0x68] sm:$0x3] %v1480_v60  ;;  %v1440_v0 = vsel %vm11257_vm12, %v1431_v49, %v11414_v32  ;;  %v2176_v59 = vsel %vm2173_vm13, %v11170_v5, %v2175_v46  ;;  %913 = vst [vmem:[#allocation2 + $0x30] sm:$0xf] %v873_v36  ;;  %v11484_v10 = vrot.slane %v1909_v63, 7  ;;  %v1892_v37 = vshrl.u32 %v8968_v7, 16 }
 0x151   : > { %1477 = vst [vmem:[#allocation2 + $0x60] sm:$0xf] %v1440_v0  ;;  %v1895_v28 = vshll.u32 %v8968_v7, 16  ;;  %9794 = vmatprep.mubr.bf16.mxu0 %v2176_v59  ;;  %v1843_v35 = vmul.f32 %v1798_v11, %v1759_v19  ;;  %v2120_v23 = vshll.u32 %v11452_v53, 16  ;;  %v2177_v32 = vrot.slane %v11472_v58, 1  ;;  %v10418_v5 = vld [vmem:[%s13727_s6 + $0x8] sm:$0xff]  }
 0x152   : > { %v2124_v52 = vshrl.u32 %v11452_v53, 16  ;;  %v1465_v40 = vld [vmem:[#allocation2 + $0x38] sm:$0xe]  ;;  %v11495_v17 = vor.u32 %v1912_v50, %v11484_v10  ;;  %v1916_v15 = vrot.slane %v11484_v10, 4  ;;  %v11498_v16 = vrot.slane %v1892_v37, 7  ;;  %v10421_v18 = vld [vmem:[%s13727_s6 + $0x10] sm:$0xff]  }
 0x153   : > { %v1745_v61 = vadd.f32 %v11168_v3, %v1733_v54  ;;  %v1466_v57 = vsel %vm11233_vm11, %v11242_v24, %v1465_v40  ;;  %v8971_v39 = vpack.c.bf16 %v1843_v35, %v1843_v35  ;;  %v2122_v26 = vrot.slane %v2120_v23, 1  ;;  %v10417_v3 = vld [vmem:[%s13726_s5 + $0xc0] sm:$0xff]   ;;  %v1803_v24 = vpop.permute.xlu0 %1802  ;;  %v10425_v40 = vld [vmem:[%s13726_s5 + $0x110] sm:$0xff]  }
 0x154   : > { %v2178_v20 = vsel %vm2173_vm13, %v2175_v46, %v2177_v32  ;;  %1467 = vst [vmem:[#allocation2 + $0x38] sm:$0xe] %v1466_v57  ;;  %v1897_v14 = vor.u32 %v1895_v28, %v11498_v16  ;;  %v1898_v44 = vrot.slane %v11498_v16, 4  ;;  %v2128_v51 = vshll.u32 %v11472_v58, 16  ;;  %v11532_v63 = vld [vmem:[%s13724_s3] ss:$0 sm:$0xff] }
 0x155   : > { %v1757_v29 = vmax.f32 %v1745_v61, 0.0  ;;  %9795 = vmatmul.mubr.bf16.vlgmr.msra.gmra.mrb[24].mxu0 %v2178_v20  ;;  %v1918_v43 = vshrl.u32 %v8971_v39, 16  ;;  %v1921_v38 = vshll.u32 %v8971_v39, 16  ;;  %v2123_v46 = vsel %vm1544_vm1, %v11172_v6, %v2122_v26  ;;  %v11538_v36 = vld [vmem:[#allocation2 + $0x20] sm:$0xff]   ;;  %v10422_v28 = vld [vmem:[%s13726_s5 + $0xc8] sm:$0xff]   ;;  %v10424_v20 = vld [vmem:[%s13727_s6 + $0x18] sm:$0xff]  }
 0x156   : > { %9807 = vmatpush3.bf16.msra.mxu0 %v10731_v42  ;;  %v2126_v25 = vor.u32 %v2124_v52, %v2122_v26  ;;  %2417 = vmatprep.mubr.bf16.mxu1 %v2123_v46  ;;  %v11527_v6 = vrot.slane %v2128_v51, 1  ;;  %v1738_v50 = vmul.f32 %v11532_v63, %v11340_v56  ;;  %v1736_v7 = vmul.f32 %v11532_v63, %v11342_v8  ;;  %v1818_v51 = vpop.permute.xlu1 %1817  ;;  %v10426_v10 = vld [vmem:[%s13726_s5 + $0xd0] sm:$0xff]  }
 0x157   : > { %v2011_v49 = vld [vmem:[#allocation2 + $0x68] sm:$0xf]  ;;  %v1841_v60 = vmul.f32 %v11456_v47, %v1757_v29  ;;  %9808 = vmatprep.subr.bf16.mxu0 %v10418_v5  ;;  %v11542_v0 = vrot.slane %v1918_v43, 7  ;;  %2418 = vmatmul.mubr.bf16.vlgmr.msra.gmra.mrb[12].mxu1 %v11145_v48  ;;  %v1739_v19 = vmul.f32 %v11532_v63, %v11356_v41  ;;  %v2179_v59 = vrot.slane %v11505_v30, 1  ;;  %v11559_v48 = vld [vmem:[%s13725_s4] ss:$0 sm:$0xff] }
 0x158   : > { %v2012_v47 = vsel %vm11116_vm7, %v1897_v14, %v2011_v49  ;;  %v13762_v56 = vmov 0  ;;  %9139 = vmatpush3.bf16.msra.mxu1 %v10417_v3  ;;  %v2131_v11 = vsel %vm1544_vm1, %v2126_v25, %v11527_v6  ;;  %v1750_v41 = vadd.f32 %v11559_v48, %v1738_v50  ;;  %v1813_v14 = vpop.permute.xlu0 %1812 }
 0x159   : > { %2013 = vst [vmem:[#allocation2 + $0x68] sm:$0xf] %v2012_v47  ;;  %v13763_v56 = vsel %vm11550_vm2, 4294967295, %v13762_v56  ;;  %v8969_v8 = vpack.c.bf16 %v1841_v60, %v1841_v60  ;;  %v1748_v37 = vadd.f32 %v11559_v48, %v1736_v7  ;;  %v1923_v54 = vor.u32 %v1921_v38, %v11542_v0  ;;  %2425 = vmatprep.mubr.bf16.mxu1 %v2131_v11  ;;  %v10428_v47 = vld [vmem:[%s13727_s6 + $0x20] sm:$0xff]  }
 0x15a   : > { %13764 = vst [vmem:[#allocation6_spill] sm:$0xff] %v13763_v56  ;;  %v1925_v35 = vrot.slane %v11542_v0, 4  ;;  %9809 = vmatpush3.bf16.msra.mxu0 %v10418_v5  ;;  %v1751_v23 = vadd.f32 %v11559_v48, %v1739_v19  ;;  %v2180_v52 = vsel %vm2173_vm13, %v2177_v32, %v2179_v59  ;;  %v1762_v39 = vmax.f32 %v1750_v41, 0.0  ;;  %9140 = vmatprep.subr.bf16.mxu1 %v10420_v9  ;;  %v10699_v56 = vld [vmem:[%s13726_s5 + $0x1a0] sm:$0xff]  }
 0x15b   : > { %v1900_v61 = vshrl.u32 %v8969_v8, 16  ;;  %v1903_v57 = vshll.u32 %v8969_v8, 16  ;;  %v1760_v26 = vmax.f32 %v1748_v37, 0.0  ;;  %9798 = vmatprep.mubr.bf16.mxu0 %v2180_v52  ;;  %v1924_v32 = vsel %vm11550_vm2, %v1916_v15, %v1923_v54  ;;  %9810 = vmatprep.subr.bf16.mxu0 %v10421_v18 }
 0x15c   : > { %v1763_v5 = vmax.f32 %v1751_v23, 0.0  ;;  %v1737_v29 = vmul.f32 %v11532_v63, %v11360_v31  ;;  %v2181_v3 = vrot.slane %v11538_v36, 1  ;;  %2016 = vst [vmem:[#allocation2 + $0x74] sm:$0xf] %v1924_v32  ;;  %v1846_v38 = vmul.f32 %v1813_v14, %v1762_v39  ;;  %9141 = vmatpush3.bf16.msra.mxu1 %v10422_v28  ;;  %v11615_v54 = vpop.permute.xlu0 %1822  ;;  %v10431_v39 = vld [vmem:[%s13727_s6 + $0x28] sm:$0xff]  }
 0x15d   : > { %v1902_v43 = vrot.slane %v1900_v61, 7  ;;  %v1844_v46 = vmul.f32 %v1803_v24, %v1760_v26  ;;  %v2132_v42 = vshrl.u32 %v11472_v58, 16  ;;  %v2136_v9 = vshll.u32 %v11505_v30, 16  ;;  %9142 = vmatprep.subr.bf16.mxu1 %v10425_v40  ;;  %v10430_v24 = vld [vmem:[%s13726_s5 + $0x118] sm:$0xff]   ;;  %v11633_v32 = vld [vmem:[#allocation2 + $0x28] sm:$0xff]  }
 0x15e   : > { %v1847_v15 = vmul.f32 %v1818_v51, %v1763_v5  ;;  %v1749_v25 = vadd.f32 %v11559_v48, %v1737_v29  ;;  %v2182_v31 = vsel %vm2173_vm13, %v2179_v59, %v2181_v3  ;;  %9811 = vmatpush3.bf16.msra.mxu0 %v10421_v18  ;;  %v8974_v50 = vpack.c.bf16 %v1846_v38, %v1846_v38  ;;  %v11635_v5 = vpop.permute.xlu1 %1827  ;;  %v10435_v38 = vld [vmem:[%s13726_s5 + $0xe0] sm:$0xff]  }
 0x15f   : > { %v1905_v49 = vor.u32 %v1903_v57, %v1902_v43  ;;  %v1907_v60 = vrot.slane %v1902_v43, 4  ;;  %v8972_v7 = vpack.c.bf16 %v1844_v46, %v1844_v46  ;;  %9799 = vmatmul.mubr.bf16.gmra.mrb[28].mxu0 %v2182_v31  ;;  %9812 = vmatprep.subr.bf16.mxu0 %v10424_v20  ;;  %v2134_v18 = vor.u32 %v2132_v42, %v11527_v6  ;;  %v10434_v6 = vld [vmem:[%s13726_s5 + $0x120] sm:$0xff]  }
 0x160   : > { %v8975_v19 = vpack.c.bf16 %v1847_v15, %v1847_v15  ;;  %v1761_v59 = vmax.f32 %v1749_v25, 0.0  ;;  %2426 = vmatmul.mubr.bf16.gmra.mrb[16].mxu1 %v11452_v53  ;;  %v11600_v8 = vrot.slane %v2136_v9, 1  ;;  %v1945_v37 = vshrl.u32 %v8974_v50, 16  ;;  %v10432_v53 = vld [vmem:[%s13726_s5 + $0xd8] sm:$0xff]   ;;  %v10439_v15 = vld [vmem:[%s13726_s5 + $0x128] sm:$0xff]  }
 0x161   : > { %v1906_v11 = vsel %vm11550_vm2, %v1898_v44, %v1905_v49  ;;  %v1915_v41 = vsel %vm11550_vm2, %v1907_v60, %v11495_v17  ;;  %v1948_v28 = vshll.u32 %v8974_v50, 16  ;;  %9143 = vmatpush3.bf16.msra.mxu1 %v10426_v10  ;;  %v1927_v16 = vshrl.u32 %v8972_v7, 16  ;;  %v11645_v10 = vld [vmem:[#allocation2 + $0x30] ss:$0 sps:$4 sm:$0x11]   ;;  %v1833_v60 = vpop.permute.xlu0 %1832 }
 0x162   : > { %2014 = vst [vmem:[#allocation2 + $0x6c] sm:$0xf] %v1906_v11  ;;  %2015 = vst [vmem:[#allocation2 + $0x70] sm:$0xf] %v1915_v41  ;;  %v1930_v44 = vshll.u32 %v8972_v7, 16  ;;  %v1954_v23 = vshrl.u32 %v8975_v19, 16  ;;  %9813 = vmatpush3.bf16.msra.mxu0 %v10424_v20  ;;  %9144 = vmatprep.subr.bf16.mxu1 %v10430_v24  ;;  %v1845_v40 = vmul.f32 %v11524_v22, %v1761_v59 }
 0x163   : > { %v1957_v52 = vshll.u32 %v8975_v19, 16  ;;  %v1947_v17 = vrot.slane %v1945_v37, 7  ;;  %v2139_v61 = vsel %vm1544_vm1, %v2134_v18, %v11600_v8  ;;  %v1742_v57 = vmul.f32 %v11532_v63, %v11384_v62  ;;  %9814 = vmatprep.subr.bf16.mxu0 %v10428_v47  ;;  %v10433_v49 = vld [vmem:[%s13727_s6 + $0x30] sm:$0xff]   ;;  %v10441_v59 = vld [vmem:[%s13726_s5 + $0xe8] sm:$0xff]  }
 0x164   : > { %v11625_v26 = vrot.slane %v1927_v16, 7  ;;  %v11627_v14 = vrot.slane %v1954_v23, 7  ;;  %2433 = vmatprep.mubr.bf16.mxu1 %v2139_v61  ;;  %v1740_v20 = vmul.f32 %v11532_v63, %v11389_v21  ;;  %v1743_v22 = vmul.f32 %v11532_v63, %v11391_v45 }
 0x165   : > { %v1950_v62 = vor.u32 %v1948_v28, %v1947_v17  ;;  %v1952_v29 = vrot.slane %v1947_v17, 4  ;;  %v8973_v51 = vpack.c.bf16 %v1845_v40, %v1845_v40  ;;  %v1754_v43 = vadd.f32 %v11559_v48, %v1742_v57  ;;  %9145 = vmatpush3.bf16.msra.mxu1 %v10432_v53  ;;  %v10444_v53 = vld [vmem:[%s13726_s5 + $0x130] sm:$0xff]  }
 0x166   : > { %v1932_v46 = vor.u32 %v1930_v44, %v11625_v26  ;;  %v1934_v21 = vrot.slane %v11625_v26, 4  ;;  %v1959_v45 = vor.u32 %v1957_v52, %v11627_v14  ;;  %v1961_v42 = vrot.slane %v11627_v14, 4  ;;  %9815 = vmatpush3.bf16.msra.mxu0 %v10428_v47  ;;  %9146 = vmatprep.subr.bf16.mxu1 %v10434_v6  ;;  %v1838_v6 = vpop.permute.xlu1 %1837  ;;  %v10445_v26 = vld [vmem:[%s13726_s5 + $0xf0] sm:$0xff]  }
 0x167   : > { %v1936_v25 = vshrl.u32 %v8973_v51, 16  ;;  %v1939_v31 = vshll.u32 %v8973_v51, 16  ;;  %v1766_v9 = vmax.f32 %v1754_v43, 0.0  ;;  %v1752_v24 = vadd.f32 %v11559_v48, %v1740_v20  ;;  %9816 = vmatprep.subr.bf16.mxu0 %v10431_v39 }
 0x168   : > { %v1933_v50 = vsel %vm11550_vm2, %v1925_v35, %v1932_v46  ;;  %v1960_v7 = vsel %vm11550_vm2, %v1952_v29, %v1959_v45  ;;  %v1755_v47 = vadd.f32 %v11559_v48, %v1743_v22  ;;  %v2183_v19 = vrot.slane %v11633_v32, 1  ;;  %2434 = vmatmul.mubr.bf16.gmra.mrb[20].mxu1 %v11472_v58 }
 0x169   : > { %2017 = vst [vmem:[#allocation2 + $0x78] sm:$0xf] %v1933_v50  ;;  %2020 = vst [vmem:[#allocation2 + $0x84] sm:$0xf] %v1960_v7  ;;  %v1938_v18 = vrot.slane %v1936_v25, 7  ;;  %v1850_v0 = vmul.f32 %v1833_v60, %v1766_v9  ;;  %v1764_v11 = vmax.f32 %v1752_v24, 0.0  ;;  %v1741_v35 = vmul.f32 %v11532_v63, %v11394_v2  ;;  %9147 = vmatpush3.bf16.msra.mxu1 %v10435_v38 }
 0x16a   : > { %v1767_v41 = vmax.f32 %v1755_v47, 0.0  ;;  %v2184_v37 = vsel %vm2173_vm13, %v2181_v3, %v2183_v19  ;;  %v2185_v58 = vrot.slane %v11645_v10, 1  ;;  %v2140_v28 = vshrl.u32 %v11505_v30, 16  ;;  %9817 = vmatpush3.bf16.msra.mxu0 %v10431_v39  ;;  %9148 = vmatprep.subr.bf16.mxu1 %v10439_v15  ;;  %v10436_v3 = vld [vmem:[%s13727_s6 + $0x38] sm:$0xff]  }
 0x16b   : > { %v1941_v16 = vor.u32 %v1939_v31, %v1938_v18  ;;  %v1943_v44 = vrot.slane %v1938_v18, 4  ;;  %v8978_v2 = vpack.c.bf16 %v1850_v0, %v1850_v0  ;;  %v1848_v63 = vmul.f32 %v11615_v54, %v1764_v11  ;;  %9802 = vmatprep.mubr.bf16.mxu0 %v2184_v37  ;;  %9818 = vmatprep.subr.bf16.mxu0 %v10433_v49  ;;  %v2027_v7 = vld [vmem:[#allocation2 + $0x98] sm:$0x1] }
 0x16c   : > { %v1851_v23 = vmul.f32 %v1838_v6, %v1767_v41  ;;  %v1753_v52 = vadd.f32 %v11559_v48, %v1741_v35  ;;  %v2186_v17 = vsel %vm2173_vm13, %v2183_v19, %v2185_v58  ;;  %v2142_v40 = vor.u32 %v2140_v28, %v11600_v8  ;;  %v10447_v35 = vld [vmem:[%s10846_s14 + $0x28] sm:$0xff]   ;;  %v10453_v37 = vld [vmem:[%s13726_s5 + $0xf8] sm:$0xff]   ;;  %v11731_v6 = vld [vmem:[#allocation2 + $0x10] sm:$0xff]  }
 0x16d   : > { %v1942_v61 = vsel %vm11550_vm2, %v1934_v21, %v1941_v16  ;;  %v1951_v57 = vsel %vm11550_vm2, %v1943_v44, %v1950_v62  ;;  %v1981_v54 = vshrl.u32 %v8978_v2, 16  ;;  %v1984_v39 = vshll.u32 %v8978_v2, 16  ;;  %9803 = vmatmul.mubr.bf16.gmra.mrb[32].mxu0 %v2186_v17  ;;  %9149 = vmatpush3.bf16.msra.mxu1 %v10441_v59  ;;  %v10449_v62 = vld [vmem:[%s13726_s5 + $0x138] sm:$0xff]   ;;  %v10442_v21 = vld [vmem:[%s13726_s5 + $0x140] sm:$0xff]   ;;  %v11724_v41 = vld [vmem:[#allocation2 + $0xc] sm:$0xf] }
 0x16e   : > { %2018 = vst [vmem:[#allocation2 + $0x7c] sm:$0xf] %v1942_v61  ;;  %2019 = vst [vmem:[#allocation2 + $0x80] sm:$0xf] %v1951_v57  ;;  %v8976_v48 = vpack.c.bf16 %v1848_v63, %v1848_v63  ;;  %v8979_v20 = vpack.c.bf16 %v1851_v23, %v1851_v23  ;;  %v1765_v22 = vmax.f32 %v1753_v52, 0.0  ;;  %v2144_v8 = vshll.u32 %v11538_v36, 16  ;;  %9819 = vmatpush3.bf16.msra.mxu0 %v10433_v49 }
 0x16f   : > { %9150 = vmatprep.subr.bf16.mxu1 %v10444_v53  ;;  %v1983_v29 = vrot.slane %v1981_v54, 7  ;;  %v2148_v51 = vshrl.u32 %v11538_v36, 16  ;;  %v2152_v43 = vshll.u32 %v11633_v32, 16  ;;  %9820 = vmatprep.subr.bf16.mxu0 %v10436_v3  ;;  %v13765_v38 = vor.u32 %v11181_v13, %v11179_v12  ;;  %v10459_v16 = vld [vmem:[%s13726_s5 + $0x1c0] sm:$0xff]  }
 0x170   : > { %v1963_v45 = vshrl.u32 %v8976_v48, 16  ;;  %v1966_v15 = vshll.u32 %v8976_v48, 16  ;;  %v1990_v25 = vshrl.u32 %v8979_v20, 16  ;;  %v1993_v31 = vshll.u32 %v8979_v20, 16  ;;  %v10734_v54 = vld [vmem:[%s10846_s14 + $0x20] sm:$0xff]  }
 0x171   : > { %v2596_v46 = vsel %vm398_vm0, %v13765_v38, %v11189_v27  ;;  %v11704_v9 = vor.u32 %v1984_v39, %v1983_v29  ;;  %v1988_v24 = vrot.slane %v1983_v29, 4  ;;  %v1849_v49 = vmul.f32 %v11635_v5, %v1765_v22  ;;  %9151 = vmatpush3.bf16.msra.mxu1 %v10445_v26  ;;  %v10443_v5 = vld [vmem:[%s13726_s5 + $0x148] sm:$0xff]   ;;  %v10455_v29 = vld [vmem:[%s10846_s14 + $0x30] sm:$0xff]  }
 0x172   : > { %9822 = vmatprep.mubr.bf16.mxu0 %v2596_v46  ;;  %v2146_v60 = vrot.slane %v2144_v8, 1  ;;  %v11707_v12 = vrot.slane %v1963_v45, 7  ;;  %v1992_v13 = vrot.slane %v1990_v25, 7  ;;  %v13766_v50 = vmov 0  ;;  %9821 = vmatpush3.bf16.msra.mxu0 %v10436_v3  ;;  %v2777_v48 = vld [vmem:[#allocation2 + $0x8] sm:$0xe] }
 0x173   : > { %v13767_v50 = vsel %vm11711_vm5, 4294967295, %v13766_v50  ;;  %v2154_v47 = vrot.slane %v2152_v43, 1  ;;  %v2605_v19 = vsel %vm398_vm0, %v11189_v27, %v11194_v34  ;;  %9152 = vmatprep.subr.bf16.mxu1 %v10449_v62  ;;  %v8977_v59 = vpack.c.bf16 %v1849_v49, %v1849_v49  ;;  %9834 = vmatprep.subr.bf16.mxu0 %v10442_v21  ;;  %v11756_v8 = vld [vmem:[#allocation2 + $0x18] sm:$0xff]  }
 0x174   : > { %13768 = vst [vmem:[#allocation7_spill] sm:$0xff] %v13767_v50  ;;  %v2147_v18 = vsel %vm1544_vm1, %v2142_v40, %v2146_v60  ;;  %v2150_v0 = vor.u32 %v2148_v51, %v2146_v60  ;;  %v2156_v11 = vshrl.u32 %v11633_v32, 16  ;;  %v1968_v27 = vor.u32 %v1966_v15, %v11707_v12  ;;  %v10448_v40 = vld [vmem:[%s13726_s5 + $0x150] sm:$0xff]  }
 0x175   : > { %v1970_v58 = vrot.slane %v11707_v12, 4  ;;  %v1995_v28 = vor.u32 %v1993_v31, %v1992_v13  ;;  %v1997_v53 = vrot.slane %v1992_v13, 4  ;;  %2441 = vmatprep.mubr.bf16.mxu1 %v2147_v18  ;;  %v1972_v44 = vshrl.u32 %v8977_v59, 16  ;;  %9823 = vmatmul.mubr.bf16.vlgmr.msra.gmra.mrb[24].mxu0 %v2605_v19 }
 0x176   : > { %v1975_v2 = vshll.u32 %v8977_v59, 16  ;;  %2442 = vmatmul.mubr.bf16.gmra.mrb[24].mxu1 %v11505_v30  ;;  %v2155_v63 = vsel %vm1544_vm1, %v2150_v0, %v2154_v47  ;;  %v2158_v3 = vor.u32 %v2156_v11, %v2154_v47  ;;  %v1969_v23 = vsel %vm11550_vm2, %v1961_v42, %v1968_v27  ;;  %9835 = vmatpush3.bf16.msra.mxu0 %v10442_v21  ;;  %v13769_v42 = vld [vmem:[#allocation5_spill] sm:$0xff] }
 0x177   : > { %v1996_v52 = vsel %vm11550_vm2, %v1988_v24, %v1995_v28  ;;  %v2028_v17 = vsel %vm11711_vm5, %v1997_v53, %v2027_v7  ;;  %2449 = vmatprep.mubr.bf16.mxu1 %v2155_v63  ;;  %v2160_v30 = vshll.u32 %v11645_v10, 16  ;;  %2021 = vst [vmem:[#allocation2 + $0x88] sm:$0xf] %v1969_v23  ;;  %v1974_v14 = vrot.slane %v1972_v44, 7  ;;  %9836 = vmatprep.subr.bf16.mxu0 %v10443_v5 }
 0x178   : > { %2024 = vst [vmem:[#allocation2 + $0x94] sm:$0xf] %v1996_v52  ;;  %2029 = vst [vmem:[#allocation2 + $0x98] sm:$0x1] %v2028_v17  ;;  %v13770_v61 = vshrl.u32 %v13769_v42, 16  ;;  %v2610_v39 = vshll.u32 %v10734_v54, 16  ;;  %9153 = vmatpush3.bf16.msra.mxu1 %v10453_v37  ;;  %v11754_v22 = vcombine.low %v2777_v48, %v11724_v41 }
 0x179   : > { %v2616_v26 = vshrl.u32 %v10447_v35, 16  ;;  %v2162_v10 = vrot.slane %v2160_v30, 1  ;;  %v2619_v20 = vshll.u32 %v10447_v35, 16  ;;  %v2836_v62 = vshll.u32 %v11731_v6, 16  ;;  %9204 = vmatprep.subr.bf16.mxu1 %v10459_v16  ;;  %v11778_v16 = vld [vmem:[#allocation2 + $0x20] sm:$0xff]  }
 0x17a   : > { %v2609_v57 = vrot.slane %v13770_v61, 1  ;;  %v1977_v51 = vor.u32 %v1975_v2, %v1974_v14  ;;  %v1979_v43 = vrot.slane %v1974_v14, 4  ;;  %v2612_v38 = vrot.slane %v2610_v39, 2  ;;  %v10456_v21 = vld [vmem:[%s10846_s14 + $0x38] ss:$0 sps:$4 sm:$0x33]   ;;  %9837 = vmatpush3.bf16.msra.mxu0 %v10443_v5 }
 0x17b   : > { %v2618_v46 = vrot.slane %v2616_v26, 1  ;;  %v2163_v45 = vsel %vm1544_vm1, %v2158_v3, %v2162_v10  ;;  %v2621_v15 = vrot.slane %v2619_v20, 2  ;;  %v2829_v25 = vshrl.u32 %v11754_v22, 16  ;;  %9838 = vmatprep.subr.bf16.mxu0 %v10448_v40  ;;  %v10457_v30 = vld [vmem:[%s13726_s5 + $0x160] sm:$0xff]   ;;  %v11788_v61 = vld [vmem:[#allocation2 + $0x28] sm:$0xff]  }
 0x17c   : > { %v2831_v31 = vshll.u32 %v11754_v22, 16  ;;  %v1978_v24 = vsel %vm11550_vm2, %v1970_v58, %v1977_v51  ;;  %v1987_v49 = vsel %vm11550_vm2, %v1979_v43, %v11704_v9  ;;  %v2613_v60 = vor.u32 %v2612_v38, %v2609_v57  ;;  %v10454_v9 = vld [vmem:[%s13726_s5 + $0x158] sm:$0xff]   ;;  %v2791_v58 = vld [vmem:[#allocation2 + $0x8] sm:$0xc] }
 0x17d   : > { %v2838_v12 = vrot.slane %v2836_v62, 1  ;;  %2022 = vst [vmem:[#allocation2 + $0x8c] sm:$0xf] %v1978_v24  ;;  %2023 = vst [vmem:[#allocation2 + $0x90] sm:$0xf] %v1987_v49  ;;  %v2622_v13 = vor.u32 %v2621_v15, %v2618_v46  ;;  %v2840_v47 = vshrl.u32 %v11731_v6, 16  ;;  %v8328_v63 = vcombine.low %v2791_v58, %v11724_v41 }
 0x17e   : > { %v2833_v7 = vrot.slane %v2831_v31, 1  ;;  %v2844_v19 = vshll.u32 %v11756_v8, 16  ;;  %2450 = vmatmul.mubr.bf16.gmra.mrb[28].mxu1 %v11538_v36  ;;  %v2614_v5 = vsel %vm398_vm0, %v11194_v34, %v2613_v60  ;;  %v2625_v59 = vshrl.u32 %v10455_v29, 16  ;;  %9839 = vmatpush3.bf16.msra.mxu0 %v10448_v40  ;;  %v10460_v15 = vld [vmem:[%s13726_s5 + $0x180] sm:$0xff]   ;;  %v11815_v24 = vld [vmem:[#allocation2 + $0x30] sm:$0xff]  }
 0x17f   : > { %v2628_v18 = vshll.u32 %v10455_v29, 16  ;;  %v2634_v0 = vshrl.u32 %v10456_v21, 16  ;;  %2457 = vmatprep.mubr.bf16.mxu1 %v2163_v45  ;;  %9826 = vmatprep.mubr.bf16.mxu0 %v2614_v5  ;;  %v2623_v11 = vsel %vm398_vm0, %v2613_v60, %v2622_v13  ;;  %v2842_v37 = vor.u32 %v2840_v47, %v2838_v12  ;;  %v10462_v29 = vld [vmem:[%s13726_s5 + $0x168] sm:$0xff]   ;;  %v10464_v45 = vld [vmem:[%s13726_s5 + $0x170] sm:$0xff]   ;;  %v10467_v47 = vld [vmem:[%s13726_s5 + $0x178] sm:$0xff]  }
 0x180   : > { %v2834_v35 = vor.u32 %v2833_v7, %v2829_v25  ;;  %v2846_v27 = vrot.slane %v2844_v19, 1  ;;  %9827 = vmatmul.mubr.bf16.gmra.mrb[28].mxu0 %v2623_v11  ;;  %v2627_v36 = vrot.slane %v2625_v59, 1  ;;  %v2637_v34 = vshll.u32 %v10456_v21, 16  ;;  %9840 = vmatprep.subr.bf16.mxu0 %v10454_v9  ;;  %v10465_v19 = vld [vmem:[%s13726_s5 + $0x188] sm:$0xff]   ;;  %v10468_v59 = vld [vmem:[%s13726_s5 + $0x1d0] sm:$0xff]  }
 0x181   : > { %v2630_v28 = vrot.slane %v2628_v18, 2  ;;  %v2636_v53 = vrot.slane %v2634_v0, 1  ;;  %v2887_v3 = vrot.slane %v11731_v6, 1  ;;  %v2886_v42 = vrot.slane %v8328_v63, 1  ;;  %v10469_v58 = vld [vmem:[%s13726_s5 + $0x190] sm:$0xff]  }
 0x182   : > { %v2839_v44 = vsel %vm1544_vm1, %v2834_v35, %v2838_v12  ;;  %v2847_v2 = vsel %vm1544_vm1, %v2842_v37, %v2846_v27  ;;  %v2639_v17 = vrot.slane %v2637_v34, 2  ;;  %v2889_v40 = vrot.slane %v11756_v8, 1  ;;  %9841 = vmatpush3.bf16.msra.mxu0 %v10454_v9  ;;  %v11842_v35 = vld [vmem:[#allocation2 + $0x38] ss:$0 sps:$4 sm:$0x33]  }
 0x183   : > { %v2951_v23 = vrot.slane %v2847_v2, 1  ;;  %v2631_v52 = vor.u32 %v2630_v28, %v2627_v36  ;;  %v2950_v14 = vrot.slane %v2839_v44, 1  ;;  %v2848_v41 = vshrl.u32 %v11756_v8, 16  ;;  %9842 = vmatprep.subr.bf16.mxu0 %v10457_v30  ;;  %v10472_v44 = vld [vmem:[%s13726_s5 + $0x1d8] sm:$0xff]  }
 0x184   : > { %v2640_v54 = vor.u32 %v2639_v17, %v2636_v53  ;;  %v2852_v6 = vshll.u32 %v11778_v16, 16  ;;  %v2888_v26 = vsel %vm2173_vm13, %v2886_v42, %v2887_v3  ;;  %v11796_v48 = vsel %vm2173_vm13, %v2887_v3, %v2889_v40  ;;  %v10473_v17 = vld [vmem:[%s13726_s5 + $0x198] sm:$0xff]  }
 0x185   : > { %v2632_v57 = vsel %vm398_vm0, %v2622_v13, %v2631_v52  ;;  %v2952_v39 = vsel %vm2173_vm13, %v2950_v14, %v2951_v23  ;;  %v2953_v20 = vrot.slane %v2888_v26, 1  ;;  %v2954_v62 = vrot.slane %v11796_v48, 1 }
 0x186   : > { %9830 = vmatprep.mubr.bf16.mxu0 %v2632_v57  ;;  %2458 = vmatmul.mubr.bf16.gmra.mrb[32].mxu1 %v11633_v32  ;;  %v2641_v10 = vsel %vm398_vm0, %v2631_v52, %v2640_v54  ;;  %v2850_v8 = vor.u32 %v2848_v41, %v2846_v27  ;;  %v2854_v51 = vrot.slane %v2852_v6, 1  ;;  %v2860_v43 = vshll.u32 %v11788_v61, 16  ;;  %v10470_v27 = vld [vmem:[%s13726_s5 + $0x200] sm:$0xff]   ;;  %v3328_v41 = vld [vmem:[#allocation2 + $0x10] sm:$0x8]  ;;  %v11888_v6 = vld [vmem:[#allocation2 + $0x18] sm:$0xff]  }
 0x187   : > { %3172 = vmatprep.mubr.bf16.mxu1 %v2952_v39  ;;  %v2955_v38 = vsel %vm2173_vm13, %v2953_v20, %v2954_v62  ;;  %9843 = vmatpush3.bf16.msra.mxu0 %v10457_v30  ;;  %v2948_v32 = vrot.slane %v11754_v22, 1  ;;  %v2856_v25 = vshrl.u32 %v11778_v16, 16  ;;  %v10463_v22 = vld [vmem:[%s13726_s5 + $0x1c8] sm:$0xff]   ;;  %v2891_v49 = vrot.slane %v11778_v16, 1  ;;  %v10478_v54 = vld [vmem:[%s13726_s5 + $0x1a0] sm:$0xff]  }
 0x188   : > { %9831 = vmatmul.mubr.bf16.gmra.mrb[32].mxu0 %v2641_v10  ;;  %v2855_v46 = vsel %vm1544_vm1, %v2850_v8, %v2854_v51  ;;  %9844 = vmatprep.subr.bf16.mxu0 %v10462_v29  ;;  %v2862_v31 = vrot.slane %v2860_v43, 1  ;;  %v2893_v13 = vrot.slane %v11788_v61, 1  ;;  %v2868_v9 = vshll.u32 %v11815_v24, 16  ;;  %v11890_v39 = vld [vmem:[#allocation2 + $0x20] sm:$0xff]   ;;  %v3315_v10 = vld [vmem:[#allocation2 + $0x14] sm:$0xf] }
 0x189   : > { %9850 = vmatprep.mubr.bf16.mxu0 %v2955_v38  ;;  %v2956_v21 = vrot.slane %v2855_v46, 1  ;;  %v2949_v60 = vsel %vm2173_vm13, %v2948_v32, %v2887_v3  ;;  %v2858_v12 = vor.u32 %v2856_v25, %v2854_v51  ;;  %v2892_v18 = vsel %vm2173_vm13, %v2889_v40, %v2891_v49  ;;  %v10474_v3 = vld [vmem:[%s13726_s5 + $0x208] sm:$0xff]   ;;  %v10475_v40 = vld [vmem:[%s13726_s5 + $0x210] sm:$0xff]   ;;  %v10479_v46 = vld [vmem:[%s13726_s5 + $0x218] sm:$0xff]  }
 0x18a   : > { %v11839_v0 = vsel %vm2173_vm13, %v2891_v49, %v2893_v13  ;;  %v2864_v11 = vshrl.u32 %v11788_v61, 16  ;;  %v2958_v36 = vrot.slane %v2892_v18, 1  ;;  %v2870_v53 = vrot.slane %v2868_v9, 1  ;;  %v10477_v61 = vld [vmem:[%s13726_s5 + $0x1e0] sm:$0xff]  }
 0x18b   : > { %9845 = vmatpush3.bf16.msra.mxu0 %v10462_v29  ;;  %v2957_v7 = vsel %vm2173_vm13, %v2951_v23, %v2956_v21  ;;  %v11831_v5 = vsel %vm1544_vm1, %v2858_v12, %v2862_v31  ;;  %v11852_v34 = vrot.slane %v11815_v24, 1  ;;  %v2962_v16 = vrot.slane %v11839_v0, 1  ;;  %v10480_v29 = vld [vmem:[%s13726_s5 + $0x1e8] sm:$0xff]  }
 0x18c   : > { %9846 = vmatprep.subr.bf16.mxu0 %v10464_v45  ;;  %v2960_v37 = vrot.slane %v11831_v5, 1  ;;  %v2866_v28 = vor.u32 %v2864_v11, %v2862_v31  ;;  %v2897_v2 = vrot.slane %v11842_v35, 1  ;;  %v2959_v23 = vsel %vm2173_vm13, %v2954_v62, %v2958_v36  ;;  %v10489_v5 = vld [vmem:[%s13726_s5 + $0x1b0] sm:$0xff]   ;;  %v10492_v11 = vld [vmem:[%s13726_s5 + $0x1f8] sm:$0xff]  }
 0x18d   : > { %v11873_v30 = vsel %vm2173_vm13, %v2893_v13, %v11852_v34  ;;  %v2876_v14 = vshll.u32 %v11842_v35, 16  ;;  %v2963_v42 = vsel %vm2173_vm13, %v2958_v36, %v2962_v16  ;;  %v2872_v20 = vshrl.u32 %v11815_v24, 16  ;;  %v3314_v24 = vld [vmem:[#allocation2 + $0x10] sm:$0xc]  ;;  %v10482_v13 = vld [vmem:[%s13726_s5 + $0x220] sm:$0xff]  }
 0x18e   : > { %3173 = vmatmul.mubr.bf16.vlgmr.msra.gmra.mrb[36].mxu1 %v2949_v60  ;;  %v2961_v63 = vsel %vm2173_vm13, %v2956_v21, %v2960_v37  ;;  %v11866_v52 = vsel %vm1544_vm1, %v2866_v28, %v2870_v53  ;;  %v2898_v57 = vsel %vm2173_vm13, %v11852_v34, %v2897_v2  ;;  %v8409_v43 = vcombine.low %v3328_v41, %v3315_v10 }
 0x18f   : > { %9205 = vmatpush3.bf16.msra.mxu1 %v10460_v15  ;;  %3180 = vmatprep.mubr.bf16.mxu1 %v2957_v7  ;;  %v2964_v26 = vrot.slane %v11866_v52, 1  ;;  %v2878_v62 = vrot.slane %v2876_v14, 1  ;;  %v2970_v8 = vrot.slane %v2898_v57, 1  ;;  %v2874_v51 = vor.u32 %v2872_v20, %v2870_v53  ;;  %v10481_v15 = vld [vmem:[%s13726_s5 + $0x1a8] sm:$0xff]  }
 0x190   : > { %9206 = vmatprep.subr.bf16.mxu1 %v10463_v22  ;;  %9847 = vmatpush3.bf16.msra.mxu0 %v10464_v45  ;;  %v3426_v38 = vrot.slane %v11890_v39, 1  ;;  %v3424_v25 = vrot.slane %v11888_v6, 1  ;;  %v10488_v22 = vld [vmem:[%s13726_s5 + $0x1f0] sm:$0xff]   ;;  %v3423_v49 = vrot.slane %v8409_v43, 1  ;;  %v2976_v7 = vrot.slane %v2897_v2, 1  ;;  %v11950_v2 = vld [vmem:[#allocation2 + $0x28] sm:$0xff]  }
 0x191   : > { %9848 = vmatprep.subr.bf16.mxu0 %v10467_v47  ;;  %v2965_v32 = vsel %vm2173_vm13, %v2960_v37, %v2964_v26  ;;  %v11905_v45 = vsel %vm1544_vm1, %v2874_v51, %v2878_v62  ;;  %v3373_v9 = vshll.u32 %v11888_v6, 16  ;;  %v10487_v37 = vld [vmem:[%s13726_s5 + $0x228] sm:$0xff]   ;;  %v3428_v57 = vrot.slane %v11950_v2, 1 }
 0x192   : > { %v11918_v60 = vsel %vm2173_vm13, %v3424_v25, %v3426_v38  ;;  %v2968_v12 = vrot.slane %v11905_v45, 1 }
 0x193   : > { %9207 = vmatpush3.bf16.msra.mxu1 %v10465_v19  ;;  %v3425_v19 = vsel %vm2173_vm13, %v3423_v49, %v3424_v25  ;;  %v3375_v53 = vrot.slane %v3373_v9, 1 }
 0x194   : > { %9208 = vmatprep.subr.bf16.mxu1 %v10468_v59  ;;  %9849 = vmatpush3.bf16.msra.mxu0 %v10467_v47  ;;  %v11924_v47 = vcombine.low %v3314_v24, %v3315_v10  ;;  %v3493_v59 = vrot.slane %v11918_v60, 2  ;;  %v3393_v60 = vshrl.u32 %v11950_v2, 16 }
 0x195   : > { %9862 = vmatprep.subr.bf16.mxu0 %v10470_v27 }
 0x196   : > { %3181 = vmatmul.mubr.bf16.gmra.mrb[40].mxu1 %v11796_v48  ;;  %v2966_v48 = vrot.slane %v11873_v30, 1  ;;  %v3368_v28 = vshll.u32 %v11924_v47, 16 }
 0x197   : > { %3188 = vmatprep.mubr.bf16.mxu1 %v2961_v63  ;;  %9209 = vmatpush3.bf16.msra.mxu1 %v10469_v58  ;;  %v3492_v58 = vrot.slane %v3425_v19, 2  ;;  %v10498_v63 = vld [vmem:[%s13726_s5 + $0x40] sm:$0xff]  }
 0x198   : > { %9851 = vmatmul.mubr.bf16.vlgmr.msra.gmra.mrb[24].mxu0 %v2959_v23  ;;  %9210 = vmatprep.subr.bf16.mxu1 %v10472_v44  ;;  %v2967_v21 = vsel %vm2173_vm13, %v2962_v16, %v2966_v48  ;;  %v2971_v31 = vsel %vm2173_vm13, %v2966_v48, %v2970_v8  ;;  %v3381_v16 = vshll.u32 %v11890_v39, 16  ;;  %v10493_v44 = vld [vmem:[%s13726_s5 + $0x1b8] sm:$0xff]   ;;  %v11956_v23 = vld [vmem:[#allocation2 + $0x30] sm:$0xff]   ;;  %v3370_v14 = vrot.slane %v3368_v28, 1 }
 0x199   : > { %9854 = vmatprep.mubr.bf16.mxu0 %v2963_v42  ;;  %9863 = vmatpush3.bf16.msra.mxu0 %v10470_v27  ;;  %v2969_v27 = vsel %vm2173_vm13, %v2964_v26, %v2968_v12  ;;  %v3430_v41 = vrot.slane %v11956_v23, 1  ;;  %v10494_v48 = vld [vmem:[%s13726_s5 + $0x238] sm:$0xff]  }
 0x19a   : > { %9864 = vmatprep.subr.bf16.mxu0 %v10474_v3 }
 0x19b   : > { %9211 = vmatpush3.bf16.msra.mxu1 %v10473_v17  ;;  %v10490_v17 = vld [vmem:[%s13726_s5 + $0x230] sm:$0xff]   ;;  %v3431_v43 = vsel %vm2173_vm13, %v3428_v57, %v3430_v41 }
 0x19c   : > { %9212 = vmatprep.subr.bf16.mxu1 %v10477_v61  ;;  %v10491_v61 = vld [vmem:[#allocation2 + $0x38] ss:$0 sps:$4 sm:$0x11]  }
 0x19d   : > { %9865 = vmatpush3.bf16.msra.mxu0 %v10474_v3  ;;  %v3377_v3 = vshrl.u32 %v11888_v6, 16 }
 0x19e   : > { %3189 = vmatmul.mubr.bf16.gmra.mrb[44].mxu1 %v2892_v18  ;;  %9866 = vmatprep.subr.bf16.mxu0 %v10475_v40  ;;  %v2880_v18 = vshrl.u32 %v11842_v35, 16  ;;  %v2977_v35 = vsel %vm2173_vm13, %v2970_v8, %v2976_v7  ;;  %v3429_v8 = vsel %vm2173_vm13, %v3426_v38, %v3428_v57  ;;  %v3495_v57 = vrot.slane %v11890_v39, 2 }
 0x19f   : > { %3196 = vmatprep.mubr.bf16.mxu1 %v2965_v32  ;;  %9213 = vmatpush3.bf16.msra.mxu1 %v10478_v54  ;;  %v3379_v42 = vor.u32 %v3377_v3, %v3375_v53  ;;  %v3366_v54 = vshrl.u32 %v11924_v47, 16  ;;  %v11978_v32 = vld [vmem:[#allocation2 + $0x40] ss:$0 sps:$4 sm:$0x77]   ;;  %v3499_v45 = vrot.slane %v3429_v8, 2  ;;  %v10503_v3 = vld [vmem:[%s13726_s5 + $0x8] sm:$0xff]  }
 0x1a0   : > { %9855 = vmatmul.mubr.bf16.gmra.mrb[28].mxu0 %v2967_v21  ;;  %9214 = vmatprep.subr.bf16.mxu1 %v10480_v29  ;;  %v2882_v36 = vor.u32 %v2880_v18, %v2878_v62  ;;  %v3389_v62 = vshll.u32 %v11950_v2, 16  ;;  %v11974_v29 = vld [vmem:[#allocation2 + $0x38] sm:$0xff]   ;;  %v10496_v21 = vld [vmem:[%s13726_s5 + $0x80] sm:$0xff]  }
 0x1a1   : > { %9858 = vmatprep.mubr.bf16.mxu0 %v2971_v31  ;;  %9867 = vmatpush3.bf16.msra.mxu0 %v10475_v40  ;;  %v3383_v40 = vrot.slane %v3381_v16, 1  ;;  %v3371_v10 = vor.u32 %v3370_v14, %v3366_v54  ;;  %v3505_v31 = vrot.slane %v3431_v43, 2  ;;  %v3432_v24 = vrot.slane %v11974_v29, 1  ;;  %v12030_v54 = vld [vmem:[#allocation2 + $0x34] sm:$0xf]  ;;  %v10513_v8 = vld [vmem:[%s13726_s5 + $0x58] sm:$0xff]  }
 0x1a2   : > { %9868 = vmatprep.subr.bf16.mxu0 %v10479_v46  ;;  %v2974_v52 = vrot.slane %v2882_v36, 1  ;;  %v3391_v38 = vrot.slane %v3389_v62, 1  ;;  %v3500_v7 = vsel %vm3485_vm6, %v3493_v59, %v3499_v45  ;;  %v10499_v36 = vld [vmem:[%s13726_s5] sm:$0xff]   ;;  %v3405_v14 = vshll.u32 %v11974_v29, 16 }
 0x1a3   : > { %9215 = vmatpush3.bf16.msra.mxu1 %v10481_v15  ;;  %v3384_v20 = vsel %vm1544_vm1, %v3379_v42, %v3383_v40  ;;  %v3376_v51 = vsel %vm1544_vm1, %v3371_v10, %v3375_v53  ;;  %v3385_v15 = vshrl.u32 %v11890_v39, 16  ;;  %v3506_v9 = vsel %vm3485_vm6, %v3499_v45, %v3505_v31  ;;  %v10508_v10 = vld [vmem:[%s13726_s5 + $0x10] sm:$0xff]   ;;  %v10515_v45 = vld [vmem:[%s13726_s5 + $0xa8] sm:$0xff]  }
 0x1a4   : > { %9216 = vmatprep.subr.bf16.mxu1 %v10488_v22  ;;  %v2975_v26 = vsel %vm2173_vm13, %v2968_v12, %v2974_v52  ;;  %v3489_v25 = vrot.slane %v3376_v51, 2  ;;  %v3433_v18 = vsel %vm2173_vm13, %v3430_v41, %v3432_v24  ;;  %v3395_v28 = vor.u32 %v3393_v60, %v3391_v38  ;;  %v10521_v60 = vld [vmem:[%s13726_s5 + $0x28] sm:$0xff]  }
 0x1a5   : > { %9869 = vmatpush3.bf16.msra.mxu0 %v10479_v46  ;;  %v3490_v46 = vrot.slane %v3384_v20, 2  ;;  %v3387_v49 = vor.u32 %v3385_v15, %v3383_v40  ;;  %v10507_v40 = vld [vmem:[%s13726_s5 + $0x50] sm:$0xff]   ;;  %v3401_v20 = vshrl.u32 %v11956_v23, 16  ;;  %v3407_v62 = vrot.slane %v3405_v14, 1 }
 0x1a6   : > { %3197 = vmatmul.mubr.bf16.gmra.mrb[48].mxu1 %v11839_v0  ;;  %9870 = vmatprep.subr.bf16.mxu0 %v10482_v13  ;;  %v3494_v0 = vsel %vm3485_vm6, %v3492_v58, %v3493_v59  ;;  %v3486_v58 = vrot.slane %v11924_v47, 2  ;;  %v10506_v47 = vld [vmem:[%s13726_s5 + $0x98] sm:$0xff]  }
 0x1a7   : > { %3204 = vmatprep.mubr.bf16.mxu1 %v2969_v27  ;;  %9217 = vmatpush3.bf16.msra.mxu1 %v10489_v5  ;;  %v3491_v12 = vsel %vm3485_vm6, %v3489_v25, %v3490_v46  ;;  %v3392_v19 = vsel %vm1544_vm1, %v3387_v49, %v3391_v38  ;;  %v3434_v5 = vrot.slane %v11978_v32, 1  ;;  %v10504_v27 = vld [vmem:[%s13726_s5 + $0x90] sm:$0xff]   ;;  %v10514_v25 = vld [vmem:[%s13726_s5 + $0x18] sm:$0xff]   ;;  %v3409_v49 = vshrl.u32 %v11974_v29, 16 }
 0x1a8   : > { %9859 = vmatmul.mubr.bf16.gmra.mrb[32].mxu0 %v2977_v35  ;;  %9218 = vmatprep.subr.bf16.mxu1 %v10492_v11  ;;  %v3487_v11 = vrot.slane %v11888_v6, 2  ;;  %v3497_v59 = vrot.slane %v3392_v19, 2  ;;  %v3511_v35 = vrot.slane %v3433_v18, 2  ;;  %v10501_v6 = vld [vmem:[%s13726_s5 + $0x48] sm:$0xff]   ;;  %v10518_v19 = vld [vmem:[%s13726_s5 + $0x20] sm:$0xff]  }
 0x1a9   : > { %9871 = vmatpush3.bf16.msra.mxu0 %v10482_v13  ;;  %9878 = vmatprep.mubr.bf16.mxu0 %v3494_v0  ;;  %v10500_v13 = vld [vmem:[%s13726_s5 + $0x88] sm:$0xff]   ;;  %v3523_v51 = vrot.slane %v3434_v5, 2 }
 0x1aa   : > { %9872 = vmatprep.subr.bf16.mxu0 %v10487_v37  ;;  %v3498_v0 = vsel %vm3485_vm6, %v3490_v46, %v3497_v59 }
 0x1ab   : > { %9219 = vmatpush3.bf16.msra.mxu1 %v10493_v44  ;;  %v3488_v44 = vsel %vm3485_vm6, %v3486_v58, %v3487_v11  ;;  %v3507_v58 = vrot.slane %v11956_v23, 2 }
 0x1ac   : > { %9270 = vmatprep.subr.bf16.mxu1 %v10498_v63  ;;  %v3512_v63 = vsel %vm3485_vm6, %v3505_v31, %v3511_v35 }
 0x1ad   : > { %9873 = vmatpush3.bf16.msra.mxu0 %v10487_v37  ;;  %v3435_v37 = vsel %vm2173_vm13, %v3432_v24, %v3434_v5  ;;  %v10517_v24 = vld [vmem:[%s13726_s5 + $0x60] sm:$0xff]   ;;  %v3411_v5 = vor.u32 %v3409_v49, %v3407_v62 }
 0x1ae   : > { %3205 = vmatmul.mubr.bf16.gmra.mrb[52].mxu1 %v11873_v30  ;;  %9874 = vmatprep.subr.bf16.mxu0 %v10490_v17  ;;  %v2972_v30 = vrot.slane %v10491_v61, 1  ;;  %v3517_v16 = vrot.slane %v3435_v37, 2  ;;  %v12027_v61 = vld [vmem:[#allocation2 + $0x38] sm:$0xff]   ;;  %v10531_v49 = vld [vmem:[#allocation2 + $0x40] ss:$0 sps:$4 sm:$0x33]  }
 0x1af   : > { %3212 = vmatprep.mubr.bf16.mxu1 %v2975_v26  ;;  %v10509_v26 = vld [vmem:[%s13726_s5 + $0xa0] sm:$0xff]   ;;  %v4220_v39 = vrot.slane %v12027_v61, 1 }
 0x1b0   : > { %v2973_v22 = vsel %vm2173_vm13, %v11852_v34, %v2972_v30  ;;  %v3397_v34 = vshll.u32 %v11956_v23, 16  ;;  %v3518_v42 = vsel %vm3485_vm6, %v3511_v35, %v3517_v16  ;;  %v3496_v30 = vsel %vm3485_vm6, %v3487_v11, %v3495_v57  ;;  %v10519_v11 = vld [vmem:[%s13726_s5 + $0xb8] sm:$0xff]  }
 0x1b1   : > { %9875 = vmatpush3.bf16.msra.mxu0 %v10490_v17  ;;  %v4118_v17 = vld [vmem:[#allocation2 + $0x30] sm:$0xe]  ;;  %v3524_v15 = vsel %vm3485_vm6, %v3517_v16, %v3523_v51  ;;  %v10532_v23 = vld [vmem:[%s13726_s5 + $0x78] sm:$0xff]  }
 0x1b2   : > { %9876 = vmatprep.subr.bf16.mxu0 %v10494_v48  ;;  %v3399_v53 = vrot.slane %v3397_v34, 1  ;;  %v4105_v16 = vld [vmem:[#allocation2 + $0x30] sm:$0xf] }
 0x1b4   : > { %v3400_v52 = vsel %vm1544_vm1, %v3395_v28, %v3399_v53  ;;  %v3403_v43 = vor.u32 %v3401_v20, %v3399_v53  ;;  %v10523_v28 = vld [vmem:[%s13727_s6] sm:$0xff]   ;;  %v10527_v53 = vld [vmem:[%s13726_s5 + $0x30] sm:$0xff]  }
 0x1b5   : > { %9877 = vmatpush3.bf16.msra.mxu0 %v10494_v48  ;;  %v3503_v41 = vrot.slane %v3400_v52, 2  ;;  %v8502_v48 = vcombine.low %v4118_v17, %v12030_v54  ;;  %v10546_v52 = vld [vmem:[%s10846_s14 + $0x38] sm:$0xfe]   ;;  %v10547_v17 = vld [vmem:[%s10846_s14 + $0x40] sm:$0xff]  }
 0x1b6   : > { %3213 = vmatmul.mubr.bf16.gmra.mrb[56].mxu1 %v2973_v22  ;;  %9890 = vmatprep.subr.bf16.mxu0 %v10496_v21  ;;  %v3408_v38 = vsel %vm1544_vm1, %v3403_v43, %v3407_v62  ;;  %v3501_v22 = vrot.slane %v11950_v2, 2  ;;  %v10520_v2 = vld [vmem:[%s13726_s5 + $0x68] sm:$0xff]   ;;  %v4626_v20 = vshrl.u32 %v10546_v52, 16  ;;  %v4629_v62 = vshll.u32 %v10546_v52, 16 }
 0x1b7   : > { %3719 = vmatprep.mubr.bf16.mxu1 %v3491_v12  ;;  %v3504_v46 = vsel %vm3485_vm6, %v3497_v59, %v3503_v41  ;;  %v3413_v12 = vshll.u32 %v11978_v32, 16  ;;  %v12081_v59 = vld [vmem:[#allocation2 + $0x48] sm:$0xff]  }
 0x1b8   : > { %9879 = vmatmul.mubr.bf16.vlgmr.msra.gmra.mrb[24].mxu0 %v3500_v7  ;;  %v10516_v7 = vld [vmem:[%s13726_s5 + $0xb0] sm:$0xff]   ;;  %v3502_v34 = vsel %vm3485_vm6, %v3495_v57, %v3501_v22  ;;  %v12117_v57 = vcombine.low %v4105_v16, %v12030_v54 }
 0x1b9   : > { %9882 = vmatprep.mubr.bf16.mxu0 %v3506_v9  ;;  %9891 = vmatpush3.bf16.msra.mxu0 %v10496_v21  ;;  %v4219_v21 = vrot.slane %v8502_v48, 1  ;;  %v3415_v9 = vrot.slane %v3413_v12, 1  ;;  %v10537_v48 = vld [vmem:[%s13726_s5 + $0x100] sm:$0xff]   ;;  %v10529_v54 = vld [vmem:[%s13727_s6 + $0x10] sm:$0xff]  }
 0x1ba   : > { %9892 = vmatprep.subr.bf16.mxu0 %v10500_v13  ;;  %v12139_v12 = vld [vmem:[#allocation2 + $0x60] ss:$0 sps:$4 sm:$0x11]  }
 0x1bb   : > { %v4221_v31 = vsel %vm2173_vm13, %v4219_v21, %v4220_v39  ;;  %v3416_v37 = vsel %vm1544_vm1, %v3411_v5, %v3415_v9 }
 0x1bc   : > { %v3515_v35 = vrot.slane %v3416_v37, 2 }
 0x1bd   : > { %9893 = vmatpush3.bf16.msra.mxu0 %v10500_v13  ;;  %v3509_v13 = vrot.slane %v3408_v38, 2  ;;  %v4628_v38 = vrot.slane %v4626_v20, 1  ;;  %v10543_v20 = vld [vmem:[%s13727_s6 + $0x38] sm:$0xff]  }
 0x1be   : > { %3720 = vmatmul.mubr.bf16.vlgmr.msra.gmra.mrb[60].mxu1 %v3488_v44  ;;  %9894 = vmatprep.subr.bf16.mxu0 %v10504_v27  ;;  %v3508_v44 = vsel %vm3485_vm6, %v3501_v22, %v3507_v58 }
 0x1bf   : > { %9271 = vmatpush3.bf16.msra.mxu1 %v10499_v36  ;;  %3727 = vmatprep.mubr.bf16.mxu1 %v3498_v0  ;;  %v3510_v18 = vsel %vm3485_vm6, %v3503_v41, %v3509_v13  ;;  %v12087_v36 = vld [vmem:[#allocation2 + $0x40] sm:$0xff]  }
 0x1c0   : > { %9272 = vmatprep.subr.bf16.mxu1 %v10501_v6  ;;  %9883 = vmatmul.mubr.bf16.gmra.mrb[28].mxu0 %v3512_v63  ;;  %v4224_v6 = vrot.slane %v12081_v59, 1  ;;  %v4222_v0 = vrot.slane %v12087_v36, 1  ;;  %v3516_v63 = vsel %vm3485_vm6, %v3509_v13, %v3515_v35  ;;  %v4174_v16 = vshll.u32 %v12087_v36, 16 }
 0x1c1   : > { %9886 = vmatprep.mubr.bf16.mxu0 %v3518_v42  ;;  %9895 = vmatpush3.bf16.msra.mxu0 %v10504_v27  ;;  %v10526_v27 = vld [vmem:[%s13726_s5 + $0x70] sm:$0xff]  }
 0x1c2   : > { %9896 = vmatprep.subr.bf16.mxu0 %v10506_v47  ;;  %v4223_v14 = vsel %vm2173_vm13, %v4220_v39, %v4222_v0  ;;  %v4225_v41 = vsel %vm2173_vm13, %v4222_v0, %v4224_v6  ;;  %v4634_v39 = vshrl.u32 %v10547_v17, 16 }
 0x1c3   : > { %9273 = vmatpush3.bf16.msra.mxu1 %v10503_v3  ;;  %v10525_v3 = vld [vmem:[%s13727_s6 + $0x8] sm:$0xff]  }
 0x1c4   : > { %9274 = vmatprep.subr.bf16.mxu1 %v10507_v40  ;;  %v12111_v40 = vld [vmem:[#allocation2 + $0x50] sm:$0xff]  }
 0x1c5   : > { %9897 = vmatpush3.bf16.msra.mxu0 %v10506_v47  ;;  %v3417_v47 = vshrl.u32 %v11978_v32, 16  ;;  %v10533_v32 = vld [vmem:[%s13726_s5 + $0x38] sm:$0xff]   ;;  %v4226_v51 = vrot.slane %v12111_v40, 1 }
 0x1c6   : > { %3728 = vmatmul.mubr.bf16.gmra.mrb[64].mxu1 %v3496_v30  ;;  %9898 = vmatprep.subr.bf16.mxu0 %v10509_v26 }
 0x1c7   : > { %3735 = vmatprep.mubr.bf16.mxu1 %v3504_v46  ;;  %9275 = vmatpush3.bf16.msra.mxu1 %v10508_v10  ;;  %v3419_v42 = vor.u32 %v3417_v47, %v3415_v9  ;;  %v3513_v10 = vrot.slane %v11974_v29, 2  ;;  %v4161_v46 = vshll.u32 %v12117_v57, 16  ;;  %v4227_v22 = vsel %vm2173_vm13, %v4224_v6, %v4226_v51 }
 0x1c8   : > { %9887 = vmatmul.mubr.bf16.gmra.mrb[32].mxu0 %v3524_v15  ;;  %9276 = vmatprep.subr.bf16.mxu1 %v10513_v8  ;;  %v4637_v8 = vshll.u32 %v10547_v17, 16  ;;  %v10534_v15 = vld [vmem:[%s13727_s6 + $0x18] sm:$0xff]   ;;  %v10538_v17 = vld [vmem:[%s13726_s5 + $0xc0] sm:$0xff]  }
 0x1c9   : > { %9899 = vmatpush3.bf16.msra.mxu0 %v10509_v26  ;;  %9906 = vmatprep.mubr.bf16.mxu0 %v4221_v31  ;;  %v12120_v26 = vld [vmem:[#allocation2 + $0x58] sm:$0xff]   ;;  %v3521_v30 = vrot.slane %v3419_v42, 2  ;;  %v3514_v29 = vsel %vm3485_vm6, %v3507_v58, %v3513_v10  ;;  %v4636_v31 = vrot.slane %v4634_v39, 1  ;;  %v10540_v42 = vld [vmem:[%s13726_s5 + $0x108] sm:$0xff]  }
 0x1ca   : > { %9900 = vmatprep.subr.bf16.mxu0 %v10515_v45  ;;  %v4228_v43 = vrot.slane %v12120_v26, 1 }
 0x1cb   : > { %9277 = vmatpush3.bf16.msra.mxu1 %v10514_v25  ;;  %v3522_v21 = vsel %vm3485_vm6, %v3515_v35, %v3521_v30  ;;  %v4631_v25 = vrot.slane %v4629_v62, 2  ;;  %v10539_v35 = vld [vmem:[%s13727_s6 + $0x28] sm:$0xff]  }
 0x1cc   : > { %9278 = vmatprep.subr.bf16.mxu1 %v10517_v24  ;;  %v4639_v24 = vrot.slane %v4637_v8, 2  ;;  %v4229_v13 = vsel %vm2173_vm13, %v4226_v51, %v4228_v43  ;;  %v10559_v8 = vld [vmem:[%s10846_s14 + $0x60] sm:$0xff]   ;;  %v10542_v30 = vld [vmem:[%s13726_s5 + $0xc8] sm:$0xff]   ;;  %v4178_v51 = vshrl.u32 %v12087_v36, 16 }
 0x1cd   : > { %9901 = vmatpush3.bf16.msra.mxu0 %v10515_v45  ;;  %v4166_v45 = vshll.u32 %v12027_v61, 16 }
 0x1ce   : > { %3736 = vmatmul.mubr.bf16.gmra.mrb[68].mxu1 %v3502_v34  ;;  %9902 = vmatprep.subr.bf16.mxu0 %v10516_v7  ;;  %v4632_v34 = vor.u32 %v4631_v25, %v4628_v38  ;;  %v12146_v9 = vor.u32 %v4639_v24, %v4636_v31  ;;  %v4670_v38 = vshrl.u32 %v10559_v8, 16  ;;  %v4673_v25 = vshll.u32 %v10559_v8, 16  ;;  %v10545_v24 = vld [vmem:[%s13726_s5 + $0xd0] sm:$0xff]  }
 0x1cf   : > { %3743 = vmatprep.mubr.bf16.mxu1 %v3510_v18  ;;  %9279 = vmatpush3.bf16.msra.mxu1 %v10518_v19  ;;  %v4159_v19 = vshrl.u32 %v12117_v57, 16  ;;  %v4168_v5 = vrot.slane %v4166_v45, 1  ;;  %v3519_v18 = vrot.slane %v10531_v49, 2  ;;  %v10549_v45 = vld [vmem:[%s13726_s5 + $0x140] sm:$0xff]  }
 0x1d0   : > { %9280 = vmatprep.subr.bf16.mxu1 %v10520_v2  ;;  %v10536_v2 = vld [vmem:[%s13727_s6 + $0x20] sm:$0xff]  }
 0x1d1   : > { %9903 = vmatpush3.bf16.msra.mxu0 %v10516_v7  ;;  %v4163_v7 = vrot.slane %v4161_v46, 1 }
 0x1d2   : > { %9904 = vmatprep.subr.bf16.mxu0 %v10519_v11 }
 0x1d3   : > { %9281 = vmatpush3.bf16.msra.mxu1 %v10521_v60  ;;  %v4164_v37 = vor.u32 %v4163_v7, %v4159_v19  ;;  %v3520_v60 = vsel %vm3485_vm6, %v3513_v10, %v3519_v18  ;;  %v10554_v10 = vld [vmem:[%s10846_s14 + $0x58] sm:$0xff]  }
 0x1d4   : > { %9282 = vmatprep.subr.bf16.mxu1 %v10526_v27  ;;  %v10548_v27 = vld [vmem:[%s10846_s14 + $0x48] sm:$0xff]  }
 0x1d5   : > { %9905 = vmatpush3.bf16.msra.mxu0 %v10519_v11  ;;  %v4230_v11 = vrot.slane %v12139_v12, 1  ;;  %v4169_v58 = vsel %vm1544_vm1, %v4164_v37, %v4168_v5  ;;  %v4646_v0 = vshll.u32 %v10548_v27, 16  ;;  %v4675_v37 = vrot.slane %v4673_v25, 2 }
 0x1d6   : > { %3744 = vmatmul.mubr.bf16.gmra.mrb[72].mxu1 %v3508_v44  ;;  %9918 = vmatprep.subr.bf16.mxu0 %v10523_v28  ;;  %v4643_v44 = vshrl.u32 %v10548_v27, 16  ;;  %v10556_v27 = vld [vmem:[%s13726_s5 + $0x120] sm:$0xff]  }
 0x1d7   : > { %3751 = vmatprep.mubr.bf16.mxu1 %v3516_v63  ;;  %9283 = vmatpush3.bf16.msra.mxu1 %v10527_v53  ;;  %v10553_v53 = vld [vmem:[%s10846_s14 + $0x50] sm:$0xff]   ;;  %v4231_v6 = vsel %vm2173_vm13, %v4228_v43, %v4230_v11  ;;  %v4672_v11 = vrot.slane %v4670_v38, 1 }
 0x1d8   : > { %9907 = vmatmul.mubr.bf16.vlgmr.msra.gmra.mrb[36].mxu0 %v4223_v14  ;;  %9284 = vmatprep.subr.bf16.mxu1 %v10532_v23  ;;  %v4170_v23 = vshrl.u32 %v12027_v61, 16  ;;  %v10541_v63 = vld [vmem:[%s13727_s6 + $0x30] sm:$0xff]   ;;  %v4655_v52 = vshll.u32 %v10553_v53, 16  ;;  %v4176_v14 = vrot.slane %v4174_v16, 1 }
 0x1d9   : > { %9910 = vmatprep.mubr.bf16.mxu0 %v4225_v41  ;;  %9919 = vmatpush3.bf16.msra.mxu0 %v10523_v28  ;;  %v4641_v28 = vsel %vm398_vm0, %v4632_v34, %v12146_v9  ;;  %v4645_v41 = vrot.slane %v4643_v44, 1  ;;  %v10552_v34 = vld [vmem:[%s13726_s5 + $0x148] sm:$0xff]   ;;  %v10555_v44 = vld [vmem:[%s13726_s5 + $0x150] sm:$0xff]  }
 0x1da   : > { %9920 = vmatprep.subr.bf16.mxu0 %v10525_v3  ;;  %v4172_v47 = vor.u32 %v4170_v23, %v4168_v5  ;;  %v4657_v39 = vrot.slane %v4655_v52, 2  ;;  %v4180_v31 = vor.u32 %v4178_v51, %v4176_v14  ;;  %v10561_v5 = vld [vmem:[%s10846_s14 + $0x68] ss:$0 sps:$4 sm:$0x33]  }
 0x1db   : > { %9285 = vmatpush3.bf16.msra.mxu1 %v10533_v32  ;;  %v4182_v32 = vshll.u32 %v12081_v59, 16  ;;  %v10560_v52 = vld [vmem:[%s13726_s5 + $0x128] sm:$0xff]  }
 0x1dc   : > { %9350 = vmatprep.subr.bf16.mxu1 %v10537_v48  ;;  %v4648_v48 = vrot.slane %v4646_v0, 2  ;;  %v4676_v0 = vor.u32 %v4675_v37, %v4672_v11 }
 0x1dd   : > { %9921 = vmatpush3.bf16.msra.mxu0 %v10525_v3  ;;  %v4652_v3 = vshrl.u32 %v10553_v53, 16  ;;  %v4184_v43 = vrot.slane %v4182_v32, 1  ;;  %v4682_v53 = vshll.u32 %v10561_v5, 16 }
 0x1de   : > { %3752 = vmatmul.mubr.bf16.gmra.mrb[76].mxu1 %v3514_v29  ;;  %9922 = vmatprep.subr.bf16.mxu0 %v10529_v54  ;;  %v4649_v46 = vor.u32 %v4648_v48, %v4645_v41  ;;  %v4661_v29 = vshrl.u32 %v10554_v10, 16 }
 0x1df   : > { %3759 = vmatprep.mubr.bf16.mxu1 %v3522_v21  ;;  %v4654_v62 = vrot.slane %v4652_v3, 1  ;;  %v4664_v21 = vshll.u32 %v10554_v10, 16  ;;  %v4185_v49 = vsel %vm1544_vm1, %v4180_v31, %v4184_v43  ;;  %v12219_v3 = vld [vmem:[#allocation2 + $0x48] sm:$0xff]   ;;  %v4684_v32 = vrot.slane %v4682_v53, 2  ;;  %v10572_v31 = vld [vmem:[%s13726_s5 + $0x138] sm:$0xff]  }
 0x1e0   : > { %9911 = vmatmul.mubr.bf16.gmra.mrb[40].mxu0 %v4227_v22  ;;  %v10550_v22 = vld [vmem:[%s13726_s5 + $0x118] sm:$0xff]   ;;  %v4663_v7 = vrot.slane %v4661_v29, 1  ;;  %v4198_v10 = vshll.u32 %v12120_v26, 16  ;;  %v4934_v8 = vrot.slane %v12219_v3, 1  ;;  %v10563_v29 = vld [vmem:[%s13726_s5 + $0x160] sm:$0xff]   ;;  %v4889_v37 = vshll.u32 %v12219_v3, 16 }
 0x1e1   : > { %9914 = vmatprep.mubr.bf16.mxu0 %v4229_v13  ;;  %9923 = vmatpush3.bf16.msra.mxu0 %v10529_v54  ;;  %v4177_v54 = vsel %vm1544_vm1, %v4172_v47, %v4176_v14  ;;  %v4650_v13 = vsel %vm398_vm0, %v12146_v9, %v4649_v46  ;;  %v4666_v19 = vrot.slane %v4664_v21, 2  ;;  %v10551_v9 = vld [vmem:[%s13726_s5 + $0xd8] sm:$0xff]   ;;  %v10557_v47 = vld [vmem:[%s13726_s5 + $0xe0] sm:$0xff]  }
 0x1e2   : > { %9924 = vmatprep.subr.bf16.mxu0 %v10534_v15 }
 0x1e5   : > { %9925 = vmatpush3.bf16.msra.mxu0 %v10534_v15  ;;  %v4658_v15 = vor.u32 %v4657_v39, %v4654_v62  ;;  %v10562_v62 = vld [vmem:[%s13726_s5 + $0xe8] sm:$0xff]  }
 0x1e6   : > { %3760 = vmatmul.mubr.bf16.gmra.mrb[80].mxu1 %v3520_v60  ;;  %9926 = vmatprep.subr.bf16.mxu0 %v10536_v2  ;;  %v4836_v60 = vld [vmem:[#allocation2 + $0x38] sm:$0xc] }
 0x1e7   : > { %4462 = vmatprep.mubr.bf16.mxu1 %v4169_v58  ;;  %v4659_v18 = vsel %vm398_vm0, %v4649_v46, %v4658_v15  ;;  %v4823_v58 = vld [vmem:[#allocation2 + $0x3c] sm:$0xf]  ;;  %v4200_v46 = vrot.slane %v4198_v10, 1  ;;  %v328_v10 = vld [vmem:[%s10822_s22 + $0x8] sm:$0x3] }
 0x1e8   : > { %9915 = vmatmul.mubr.bf16.gmra.mrb[44].mxu0 %v4231_v6  ;;  %v8550_v6 = vcombine.low %v4836_v60, %v4823_v58  ;;  %v12286_v60 = vld [vmem:[#allocation2 + $0x58] sm:$0xff]  }
 0x1e9   : > { %9927 = vmatpush3.bf16.msra.mxu0 %v10536_v2  ;;  %9934 = vmatprep.mubr.bf16.mxu0 %v4641_v28  ;;  %v4190_v2 = vshll.u32 %v12111_v40, 16  ;;  %v4679_v28 = vshrl.u32 %v10561_v5, 16 }
 0x1ea   : > { %9928 = vmatprep.subr.bf16.mxu0 %v10539_v35  ;;  %v4931_v41 = vrot.slane %v8550_v6, 1  ;;  %v4891_v6 = vrot.slane %v4889_v37, 1 }
 0x1eb   : > { %v4192_v16 = vrot.slane %v4190_v2, 1 }
 0x1ed   : > { %9929 = vmatpush3.bf16.msra.mxu0 %v10539_v35  ;;  %v4667_v35 = vor.u32 %v4666_v19, %v4663_v7  ;;  %v10568_v7 = vld [vmem:[%s13726_s5 + $0x168] sm:$0xff]  }
 0x1ee   : > { %4463 = vmatmul.mubr.bf16.vlgmr.msra.gmra.mrb[84].mxu1 %v12117_v57  ;;  %9930 = vmatprep.subr.bf16.mxu0 %v10541_v63  ;;  %v10544_v57 = vld [vmem:[%s13726_s5 + $0x110] sm:$0xff]  }
 0x1ef   : > { %9351 = vmatpush3.bf16.msra.mxu1 %v10538_v17  ;;  %4470 = vmatprep.mubr.bf16.mxu1 %v4177_v54  ;;  %v4822_v17 = vld [vmem:[#allocation2 + $0x38] sm:$0xe]  ;;  %v4668_v14 = vsel %vm398_vm0, %v4658_v15, %v4667_v35 }
 0x1f0   : > { %9352 = vmatprep.subr.bf16.mxu1 %v10540_v42  ;;  %v4681_v42 = vrot.slane %v4679_v28, 1  ;;  %v10558_v54 = vld [vmem:[%s13726_s5 + $0x158] sm:$0xff]   ;;  %v12235_v39 = vcombine.low %v4822_v17, %v4823_v58 }
 0x1f1   : > { %9931 = vmatpush3.bf16.msra.mxu0 %v10541_v63  ;;  %v12217_v63 = vld [vmem:[#allocation2 + $0x40] sm:$0xff]  }
 0x1f2   : > { %9932 = vmatprep.subr.bf16.mxu0 %v10543_v20  ;;  %v4685_v51 = vor.u32 %v4684_v32, %v4681_v42  ;;  %v4876_v15 = vshll.u32 %v12235_v39, 16  ;;  %v4881_v5 = vshll.u32 %v12217_v63, 16  ;;  %v4874_v11 = vshrl.u32 %v12235_v39, 16  ;;  %v12313_v32 = vld [vmem:[#allocation2 + $0x68] ss:$0 sps:$4 sm:$0x33]  }
 0x1f3   : > { %9353 = vmatpush3.bf16.msra.mxu1 %v10542_v30  ;;  %v10569_v30 = vld [vmem:[%s13726_s5 + $0x130] sm:$0xff]   ;;  %v4885_v53 = vshrl.u32 %v12217_v63, 16  ;;  %v4893_v42 = vshrl.u32 %v12219_v3, 16 }
 0x1f4   : > { %9354 = vmatprep.subr.bf16.mxu1 %v10544_v57  ;;  %v4878_v19 = vrot.slane %v4876_v15, 1  ;;  %v4905_v15 = vshll.u32 %v12286_v60, 16 }
 0x1f5   : > { %9933 = vmatpush3.bf16.msra.mxu0 %v10543_v20  ;;  %v4677_v20 = vsel %vm398_vm0, %v4667_v35, %v4676_v0  ;;  %v4883_v35 = vrot.slane %v4881_v5, 1 }
 0x1f6   : > { %4471 = vmatmul.mubr.bf16.gmra.mrb[88].mxu1 %v12027_v61  ;;  %9946 = vmatprep.subr.bf16.mxu0 %v10549_v45  ;;  %v4186_v61 = vshrl.u32 %v12081_v59, 16  ;;  %v4879_v58 = vor.u32 %v4878_v19, %v4874_v11  ;;  %v4907_v5 = vrot.slane %v4905_v15, 1 }
 0x1f7   : > { %4478 = vmatprep.mubr.bf16.mxu1 %v4185_v49  ;;  %9355 = vmatpush3.bf16.msra.mxu1 %v10545_v24  ;;  %v4686_v24 = vsel %vm398_vm0, %v4676_v0, %v4685_v51  ;;  %vm6312_vm0 = vcmask 1044480  }
 0x1f8   : > { %9935 = vmatmul.mubr.bf16.vlgmr.msra.gmra.mrb[36].mxu0 %v4650_v13  ;;  %9356 = vmatprep.subr.bf16.mxu1 %v10550_v22  ;;  %v4188_v23 = vor.u32 %v4186_v61, %v4184_v43  ;;  %v4194_v43 = vshrl.u32 %v12111_v40, 16  ;;  %v4206_v13 = vshll.u32 %v12139_v12, 16  ;;  %v4202_v12 = vshrl.u32 %v12120_v26, 16 }
 0x1f9   : > { %9947 = vmatpush3.bf16.msra.mxu0 %v10549_v45  ;;  %9938 = vmatprep.mubr.bf16.mxu0 %v4659_v18  ;;  %v10570_v45 = vld [vmem:[%s13726_s5 + $0xf0] sm:$0xff]   ;;  %v10578_v18 = vld [vmem:[%s13726_s5 + $0x1c0] sm:$0xff]   ;;  %v4884_v0 = vsel %vm1544_vm1, %v4879_v58, %v4883_v35 }
 0x1fa   : > { %9948 = vmatprep.subr.bf16.mxu0 %v10552_v34  ;;  %v4193_v48 = vsel %vm1544_vm1, %v4188_v23, %v4192_v16  ;;  %v4196_v38 = vor.u32 %v4194_v43, %v4192_v16  ;;  %v4208_v61 = vrot.slane %v4206_v13, 1  ;;  %v4938_v23 = vrot.slane %v12286_v60, 1  ;;  %v5372_v13 = vld [vmem:[#allocation2 + $0x40] sm:$0x8] }
 0x1fb   : > { %9357 = vmatpush3.bf16.msra.mxu1 %v10551_v9  ;;  %v4204_v9 = vor.u32 %v4202_v12, %v4200_v46 }
 0x1fc   : > { %9358 = vmatprep.subr.bf16.mxu1 %v10556_v27  ;;  %v4201_v22 = vsel %vm1544_vm1, %v4196_v38, %v4200_v46  ;;  %v10571_v27 = vld [vmem:[%s13726_s5 + $0x170] sm:$0xff]   ;;  %v10580_v46 = vld [vmem:[%s13726_s5 + $0x208] sm:$0xff]  }
 0x1fd   : > { %9949 = vmatpush3.bf16.msra.mxu0 %v10552_v34  ;;  %v12279_v34 = vld [vmem:[#allocation2 + $0x50] sm:$0xff]   ;;  %v4209_v16 = vsel %vm1544_vm1, %v4204_v9, %v4208_v61 }
 0x1fe   : > { %4479 = vmatmul.mubr.bf16.gmra.mrb[92].mxu1 %v12087_v36  ;;  %9950 = vmatprep.subr.bf16.mxu0 %v10555_v44  ;;  %v12238_v36 = vrot.slane %v12217_v63, 1  ;;  %v4936_v28 = vrot.slane %v12279_v34, 1 }
 0x1ff   : > { %4486 = vmatprep.mubr.bf16.mxu1 %v4193_v48  ;;  %9359 = vmatpush3.bf16.msra.mxu1 %v10557_v47  ;;  %v4887_v47 = vor.u32 %v4885_v53, %v4883_v35  ;;  %v10576_v48 = vld [vmem:[%s13726_s5 + $0x200] sm:$0xff]  }
 0x200   : > { %9939 = vmatmul.mubr.bf16.gmra.mrb[40].mxu0 %v4668_v14  ;;  %9360 = vmatprep.subr.bf16.mxu1 %v10560_v52  ;;  %v4933_v57 = vsel %vm2173_vm13, %v4931_v41, %v12238_v36  ;;  %v12254_v21 = vsel %vm2173_vm13, %v12238_v36, %v4934_v8  ;;  %v4897_v52 = vshll.u32 %v12279_v34, 16  ;;  %v12304_v63 = vsel %vm2173_vm13, %v4934_v8, %v4936_v28 }
 0x201   : > { %9951 = vmatpush3.bf16.msra.mxu0 %v10555_v44  ;;  %9942 = vmatprep.mubr.bf16.mxu0 %v4677_v20  ;;  %v4997_v25 = vrot.slane %v4933_v57, 1  ;;  %v4998_v49 = vrot.slane %v12254_v21, 1  ;;  %v10574_v44 = vld [vmem:[%s13726_s5 + $0x178] sm:$0xff]   ;;  %v4892_v17 = vsel %vm1544_vm1, %v4887_v47, %v4891_v6  ;;  %v12310_v14 = vsel %vm2173_vm13, %v4936_v28, %v4938_v23 }
 0x202   : > { %9952 = vmatprep.subr.bf16.mxu0 %v10558_v54  ;;  %v4994_v41 = vrot.slane %v4884_v0, 1  ;;  %v4895_v20 = vor.u32 %v4893_v42, %v4891_v6  ;;  %v329_v8 = vsel %vm11035_vm4, 0, %v328_v10  ;;  %v5006_v51 = vrot.slane %v12310_v14, 1 }
 0x203   : > { %9361 = vmatpush3.bf16.msra.mxu1 %v10562_v62  ;;  %v4999_v2 = vsel %vm2173_vm13, %v4997_v25, %v4998_v49  ;;  %v4899_v62 = vrot.slane %v4897_v52, 1  ;;  %330 = vst [vmem:[%s10822_s22 + $0x8] sm:$0x3] %v329_v8  ;;  %v4942_v57 = vrot.slane %v12313_v32, 1  ;;  %v4992_v25 = vrot.slane %v12235_v39, 1  ;;  %v10589_v52 = vld [vmem:[%s13726_s5 + $0x220] sm:$0xff]  }
 0x204   : > { %9362 = vmatprep.subr.bf16.mxu1 %v10569_v30  ;;  %v4995_v30 = vrot.slane %v4892_v17, 1  ;;  %v4901_v39 = vshrl.u32 %v12279_v34, 16  ;;  %v4909_v0 = vshrl.u32 %v12286_v60, 16  ;;  %v10588_v17 = vld [vmem:[%s13726_s5 + $0x190] sm:$0xff]   ;;  %v10594_v60 = vld [vmem:[%s13726_s5 + $0x1d8] sm:$0xff]   ;;  %v10596_v8 = vld [vmem:[%s13726_s5 + $0x228] sm:$0xff]  }
 0x205   : > { %9953 = vmatpush3.bf16.msra.mxu0 %v10558_v54  ;;  %v5002_v54 = vrot.slane %v12304_v63, 1  ;;  %v4993_v11 = vsel %vm2173_vm13, %v4992_v25, %v12238_v36  ;;  %v10583_v36 = vld [vmem:[%s13726_s5 + $0x188] sm:$0xff]   ;;  %v5020_v42 = vrot.slane %v4942_v57, 1  ;;  %v10599_v25 = vld [vmem:[%s13726_s5 + $0x1a0] sm:$0xff]  }
 0x206   : > { %4487 = vmatmul.mubr.bf16.gmra.mrb[96].mxu1 %v12081_v59  ;;  %9954 = vmatprep.subr.bf16.mxu0 %v10563_v29  ;;  %v10573_v59 = vld [vmem:[%s13726_s5 + $0xf8] sm:$0xff]   ;;  %v4996_v43 = vsel %vm2173_vm13, %v4994_v41, %v4995_v30  ;;  %v4903_v37 = vor.u32 %v4901_v39, %v4899_v62 }
 0x207   : > { %4494 = vmatprep.mubr.bf16.mxu1 %v4201_v22  ;;  %9363 = vmatpush3.bf16.msra.mxu1 %v10570_v45  ;;  %v12337_v45 = vsel %vm1544_vm1, %v4895_v20, %v4899_v62 }
 0x208   : > { %9943 = vmatmul.mubr.bf16.gmra.mrb[44].mxu0 %v4686_v24  ;;  %9364 = vmatprep.subr.bf16.mxu1 %v10572_v31  ;;  %v12348_v24 = vld [vmem:[#allocation2 + $0x50] sm:$0xff]   ;;  %v5000_v22 = vrot.slane %v12337_v45, 1  ;;  %v4908_v35 = vsel %vm1544_vm1, %v4903_v37, %v4907_v5  ;;  %v12423_v45 = vld [vmem:[#allocation2 + $0x60] sm:$0xff]   ;;  %v12447_v37 = vld [vmem:[#allocation2 + $0x68] sm:$0xff]  }
 0x209   : > { %9955 = vmatpush3.bf16.msra.mxu0 %v10563_v29  ;;  %9962 = vmatprep.mubr.bf16.mxu0 %v4999_v2  ;;  %v5003_v29 = vsel %vm2173_vm13, %v4998_v49, %v5002_v54  ;;  %v10584_v49 = vld [vmem:[%s13726_s5 + $0x210] sm:$0xff]   ;;  %v10581_v2 = vld [vmem:[%s13726_s5 + $0x1c8] sm:$0xff]   ;;  %v5470_v61 = vrot.slane %v12348_v24, 1  ;;  %v5004_v47 = vrot.slane %v4908_v35, 1 }
 0x20a   : > { %9956 = vmatprep.subr.bf16.mxu0 %v10568_v7  ;;  %v5001_v34 = vsel %vm2173_vm13, %v4995_v30, %v5000_v22 }
 0x20b   : > { %9365 = vmatpush3.bf16.msra.mxu1 %v10573_v59  ;;  %v12359_v59 = vld [vmem:[#allocation2 + $0x48] sm:$0xff]   ;;  %v5005_v20 = vsel %vm2173_vm13, %v5000_v22, %v5004_v47 }
 0x20c   : > { %9416 = vmatprep.subr.bf16.mxu1 %v10578_v18  ;;  %v12364_v18 = vld [vmem:[#allocation2 + $0x44] sm:$0xf]  ;;  %v5468_v28 = vrot.slane %v12359_v59, 1 }
 0x20d   : > { %9957 = vmatpush3.bf16.msra.mxu0 %v10568_v7  ;;  %v10579_v7 = vld [vmem:[%s13726_s5 + $0x180] sm:$0xff]   ;;  %v8631_v9 = vcombine.low %v5372_v13, %v12364_v18  ;;  %v10601_v13 = vld [vmem:[%s13726_s5 + $0x1e8] sm:$0xff]  }
 0x20e   : > { %4495 = vmatmul.mubr.bf16.gmra.mrb[100].mxu1 %v12111_v40  ;;  %9958 = vmatprep.subr.bf16.mxu0 %v10571_v27  ;;  %v12306_v40 = vld [vmem:[#allocation2 + $0x60] sm:$0xff]  }
 0x20f   : > { %4502 = vmatprep.mubr.bf16.mxu1 %v4209_v16  ;;  %v12324_v3 = vrot.slane %v12306_v40, 1  ;;  %v4913_v53 = vshll.u32 %v12306_v40, 16  ;;  %v5467_v16 = vrot.slane %v8631_v9, 1  ;;  %v12449_v9 = vld [vmem:[#allocation2 + $0x68] sm:$0xf] }
 0x211   : > { %9959 = vmatpush3.bf16.msra.mxu0 %v10571_v27  ;;  %v12343_v38 = vsel %vm2173_vm13, %v4938_v23, %v12324_v3  ;;  %v4943_v31 = vsel %vm2173_vm13, %v12324_v3, %v4942_v57  ;;  %v10586_v27 = vld [vmem:[%s13726_s5 + $0x218] sm:$0xff]   ;;  %v10587_v23 = vld [vmem:[%s13726_s5 + $0x1d0] sm:$0xff]   ;;  %v5469_v41 = vsel %vm2173_vm13, %v5467_v16, %v5468_v28  ;;  %v4915_v10 = vrot.slane %v4913_v53, 1  ;;  %v12472_v16 = vld [vmem:[#allocation2 + $0x60] sm:$0xf] }
 0x212   : > { %9960 = vmatprep.subr.bf16.mxu0 %v10574_v44  ;;  %v5010_v19 = vrot.slane %v12343_v38, 1  ;;  %v5014_v12 = vrot.slane %v4943_v31, 1  ;;  %v5534_v62 = vrot.slane %v5469_v41, 2  ;;  %v10595_v57 = vld [vmem:[%s13726_s5 + $0x198] sm:$0xff]   ;;  %v4917_v31 = vshrl.u32 %v12306_v40, 16 }
 0x213   : > { %v12465_v53 = vld [vmem:[#allocation2 + $0x70] ss:$0 sps:$4 sm:$0x77]  }
 0x214   : > { %v5011_v58 = vsel %vm2173_vm13, %v5006_v51, %v5010_v19  ;;  %v5015_v6 = vsel %vm2173_vm13, %v5010_v19, %v5014_v12  ;;  %v5021_v30 = vsel %vm2173_vm13, %v5014_v12, %v5020_v42  ;;  %v4919_v39 = vor.u32 %v4917_v31, %v4915_v10  ;;  %v12485_v42 = vld [vmem:[#allocation2 + $0x70] sm:$0xf] }
 0x215   : > { %9961 = vmatpush3.bf16.msra.mxu0 %v10574_v44  ;;  %v12388_v44 = vsel %vm2173_vm13, %v5468_v28, %v5470_v61  ;;  %v10608_v28 = vld [vmem:[%s13726_s5 + $0x1f0] sm:$0xff]  }
 0x216   : > { %4503 = vmatmul.mubr.bf16.gmra.mrb[104].mxu1 %v12120_v26  ;;  %9974 = vmatprep.subr.bf16.mxu0 %v10576_v48  ;;  %v5007_v26 = vsel %vm2173_vm13, %v5002_v54, %v5006_v51  ;;  %v5535_v54 = vrot.slane %v12388_v44, 2 }
 0x217   : > { %5216 = vmatprep.mubr.bf16.mxu1 %v4996_v43 }
 0x218   : > { %9963 = vmatmul.mubr.bf16.vlgmr.msra.gmra.mrb[36].mxu0 %v5003_v29  ;;  %v5536_v43 = vsel %vm3485_vm6, %v5534_v62, %v5535_v54  ;;  %v12421_v29 = vld [vmem:[#allocation2 + $0x58] sm:$0xff]  }
 0x219   : > { %9966 = vmatprep.mubr.bf16.mxu0 %v5007_v26  ;;  %9975 = vmatpush3.bf16.msra.mxu0 %v10576_v48  ;;  %v4911_v48 = vor.u32 %v4909_v0, %v4907_v5  ;;  %v10597_v26 = vld [vmem:[%s13726_s5 + $0x230] sm:$0xff]   ;;  %v5474_v5 = vrot.slane %v12423_v45, 1  ;;  %v12474_v0 = vld [vmem:[#allocation2 + $0x6c] sm:$0xf] }
 0x21a   : > { %9976 = vmatprep.subr.bf16.mxu0 %v10580_v46 }
 0x21b   : > { %v12409_v51 = vsel %vm1544_vm1, %v4911_v48, %v4915_v10  ;;  %v4925_v10 = vshrl.u32 %v12313_v32, 16 }
 0x21c   : > { %v5008_v15 = vrot.slane %v12409_v51, 1 }
 0x21d   : > { %9977 = vmatpush3.bf16.msra.mxu0 %v10580_v46  ;;  %v10598_v46 = vld [vmem:[%s13726_s5 + $0x1e0] sm:$0xff]  }
 0x21e   : > { %5217 = vmatmul.mubr.bf16.vlgmr.msra.gmra.mrb[108].mxu1 %v4993_v11  ;;  %9978 = vmatprep.subr.bf16.mxu0 %v10584_v49  ;;  %v5009_v40 = vsel %vm2173_vm13, %v5004_v47, %v5008_v15  ;;  %v10600_v11 = vld [vmem:[%s13726_s5 + $0x238] sm:$0xff]  }
 0x21f   : > { %9417 = vmatpush3.bf16.msra.mxu1 %v10579_v7  ;;  %5224 = vmatprep.mubr.bf16.mxu1 %v5001_v34  ;;  %v5472_v7 = vrot.slane %v12421_v29, 1  ;;  %v5358_v34 = vld [vmem:[#allocation2 + $0x40] sm:$0xc] }
 0x220   : > { %9418 = vmatprep.subr.bf16.mxu1 %v10581_v2  ;;  %9967 = vmatmul.mubr.bf16.gmra.mrb[40].mxu0 %v5011_v58  ;;  %v10602_v58 = vld [vmem:[%s13726_s5 + $0x1a8] sm:$0xff]   ;;  %v12488_v41 = vcombine.low %v5358_v34, %v12364_v18  ;;  %v10616_v18 = vld [vmem:[%s13726_s5 + $0x1f8] sm:$0xff]   ;;  %v5421_v34 = vshrl.u32 %v12359_v59, 16 }
 0x221   : > { %9970 = vmatprep.mubr.bf16.mxu0 %v5015_v6  ;;  %9979 = vmatpush3.bf16.msra.mxu0 %v10584_v49  ;;  %v5473_v35 = vsel %vm2173_vm13, %v5470_v61, %v5472_v7  ;;  %v12467_v6 = vld [vmem:[#allocation2 + $0x64] sm:$0xf] }
 0x222   : > { %9980 = vmatprep.subr.bf16.mxu0 %v10586_v27  ;;  %v12478_v47 = vcombine.low %v12467_v6, %v12449_v9  ;;  %v5541_v48 = vrot.slane %v5473_v35, 2  ;;  %v5412_v51 = vshll.u32 %v12488_v41, 16 }
 0x223   : > { %9419 = vmatpush3.bf16.msra.mxu1 %v10583_v36 }
 0x224   : > { %9420 = vmatprep.subr.bf16.mxu1 %v10587_v23  ;;  %v12470_v23 = vsel %vm2173_vm13, %v5472_v7, %v5474_v5 }
 0x225   : > { %9981 = vmatpush3.bf16.msra.mxu0 %v10586_v27 }
 0x226   : > { %5225 = vmatmul.mubr.bf16.gmra.mrb[112].mxu1 %v12254_v21  ;;  %9982 = vmatprep.subr.bf16.mxu0 %v10589_v52  ;;  %v4921_v21 = vshll.u32 %v12313_v32, 16  ;;  %v10606_v32 = vld [vmem:[%s13726_s5] sm:$0xff]  }
 0x227   : > { %5232 = vmatprep.mubr.bf16.mxu1 %v5005_v20  ;;  %9421 = vmatpush3.bf16.msra.mxu1 %v10588_v17  ;;  %v5476_v17 = vrot.slane %v12447_v37, 1  ;;  %v5417_v20 = vshll.u32 %v12359_v59, 16 }
 0x228   : > { %9971 = vmatmul.mubr.bf16.gmra.mrb[44].mxu0 %v5021_v30  ;;  %9422 = vmatprep.subr.bf16.mxu1 %v10594_v60  ;;  %v4923_v22 = vrot.slane %v4921_v21, 1  ;;  %v10610_v60 = vld [vmem:[%s13726_s5 + $0x1b0] sm:$0xff]   ;;  %v5478_v30 = vrot.slane %v12465_v53, 1 }
 0x229   : > { %9983 = vmatpush3.bf16.msra.mxu0 %v10589_v52  ;;  %9990 = vmatprep.mubr.bf16.mxu0 %v5536_v43  ;;  %v10604_v52 = vld [vmem:[%s13726_s5 + $0x40] sm:$0xff]   ;;  %v5477_v7 = vsel %vm2173_vm13, %v5474_v5, %v5476_v17 }
 0x22a   : > { %9984 = vmatprep.subr.bf16.mxu0 %v10596_v8  ;;  %v9074_v49 = vpop.f32.mrb[12].mxu1  ;;  %v4927_v43 = vor.u32 %v4925_v10, %v4923_v22  ;;  %v12539_v44 = vsel %vm2173_vm13, %v5476_v17, %v5478_v30  ;;  %v10612_v17 = vld [vmem:[%s13726_s5 + $0x50] sm:$0xff]  }
 0x22b   : > { %9423 = vmatpush3.bf16.msra.mxu1 %v10595_v57  ;;  %v9075_v19 = vpop.f32.mrb[13].mxu1  ;;  %v6141_v57 = vld [vmem:[#allocation2 + $0x5c] sm:$0x8] }
 0x22c   : > { %9424 = vmatprep.subr.bf16.mxu1 %v10598_v46  ;;  %v12442_v2 = vadd.f32 %v9075_v19, %v9074_v49  ;;  %v9077_v12 = vpop.f32.mrb[14].mxu1  ;;  %v12504_v46 = vcombine.low %v6141_v57, %v12472_v16  ;;  %v10615_v57 = vld [vmem:[#allocation2 + $0x68] ss:$0 sps:$4 sm:$0x11]  }
 0x22d   : > { %9985 = vmatpush3.bf16.msra.mxu0 %v10596_v8  ;;  %v9078_v27 = vpop.f32.mrb[15].mxu1  ;;  %v5547_v8 = vrot.slane %v12470_v23, 2 }
 0x22e   : > { %5233 = vmatmul.mubr.bf16.gmra.mrb[116].mxu1 %v12304_v63  ;;  %9986 = vmatprep.subr.bf16.mxu0 %v10597_v26  ;;  %v12452_v63 = vsel %vm1544_vm1, %v4919_v39, %v4923_v22  ;;  %v12457_v36 = vadd.f32 %v9078_v27, %v9077_v12  ;;  %v5425_v39 = vshll.u32 %v12348_v24, 16  ;;  %v6194_v27 = vshll.u32 %v12504_v46, 16 }
 0x22f   : > { %5240 = vmatprep.mubr.bf16.mxu1 %v5009_v40  ;;  %9425 = vmatpush3.bf16.msra.mxu1 %v10599_v25  ;;  %v5012_v61 = vrot.slane %v12452_v63, 1  ;;  %v6199_v25 = vshll.u32 %v12478_v47, 16  ;;  %v10617_v40 = vld [vmem:[%s13726_s5 + $0x1b8] sm:$0xff]   ;;  %v5548_v5 = vsel %vm3485_vm6, %v5541_v48, %v5547_v8  ;;  %v6192_v63 = vshrl.u32 %v12504_v46, 16 }
 0x230   : > { %9426 = vmatprep.subr.bf16.mxu1 %v10601_v13  ;;  %v10607_v13 = vld [vmem:[%s13726_s5 + $0x48] sm:$0xff]  }
 0x231   : > { %9987 = vmatpush3.bf16.msra.mxu0 %v10597_v26  ;;  %v12508_v26 = vcombine.low %v12474_v0, %v12485_v42  ;;  %v5013_v31 = vsel %vm2173_vm13, %v5008_v15, %v5012_v61  ;;  %v5419_v15 = vrot.slane %v5417_v20, 1  ;;  %v6203_v20 = vshrl.u32 %v12478_v47, 16 }
 0x232   : > { %9988 = vmatprep.subr.bf16.mxu0 %v10600_v11 }
 0x233   : > { %9427 = vmatpush3.bf16.msra.mxu1 %v10602_v58  ;;  %v9080_v62 = vpop.f32.mrb[16].mxu1  ;;  %v6201_v58 = vrot.slane %v6199_v25, 1  ;;  %v6207_v35 = vshll.u32 %v12508_v26, 16  ;;  %v5423_v10 = vor.u32 %v5421_v34, %v5419_v15  ;;  %v6196_v25 = vrot.slane %v6194_v27, 1 }
 0x234   : > { %9428 = vmatprep.subr.bf16.mxu1 %v10608_v28  ;;  %v9081_v21 = vpop.f32.mrb[17].mxu1  ;;  %v5018_v28 = vrot.slane %v4927_v43, 1  ;;  %v5410_v43 = vshrl.u32 %v12488_v41, 16 }
 0x235   : > { %9989 = vmatpush3.bf16.msra.mxu0 %v10600_v11  ;;  %v12517_v49 = vadd.f32 %v9081_v21, %v9080_v62  ;;  %v9083_v22 = vpop.f32.mrb[18].mxu1  ;;  %v10609_v11 = vld [vmem:[%s13726_s5 + $0x8] sm:$0xff]   ;;  %v6197_v34 = vor.u32 %v6196_v25, %v6192_v63 }
 0x236   : > { %5241 = vmatmul.mubr.bf16.gmra.mrb[120].mxu1 %v12310_v14  ;;  %9482 = vmatprep.subr.bf16.mxu0 %v10604_v52  ;;  %v9084_v19 = vpop.f32.mrb[19].mxu1  ;;  %v5542_v14 = vsel %vm3485_vm6, %v5535_v54, %v5541_v48  ;;  %v12544_v54 = vld [vmem:[%s13726_s5 + $0x80] sm:$0xff]   ;;  %v5553_v52 = vrot.slane %v5477_v7, 2  ;;  %v5414_v48 = vrot.slane %v5412_v51, 1  ;;  %v10618_v51 = vld [vmem:[%s13726_s5 + $0x58] sm:$0xff]  }
 0x237   : > { %5248 = vmatprep.mubr.bf16.mxu1 %v5013_v31  ;;  %9429 = vmatpush3.bf16.msra.mxu1 %v10610_v60  ;;  %v12531_v12 = vadd.f32 %v9084_v19, %v9083_v22  ;;  %v5427_v60 = vrot.slane %v5425_v39, 1  ;;  %v6205_v31 = vor.u32 %v6203_v20, %v6201_v58  ;;  %v12562_v22 = vrot.slane %v6207_v35, 1 }
 0x238   : > { %9991 = vmatmul.mubr.bf16.vlgmr.msra.gmra.mrb[36].mxu0 %v5542_v14  ;;  %9430 = vmatprep.subr.bf16.mxu1 %v10616_v18  ;;  %v5559_v18 = vrot.slane %v12539_v44, 2  ;;  %v5554_v14 = vsel %vm3485_vm6, %v5547_v8, %v5553_v52  ;;  %v5016_v8 = vrot.slane %v10615_v57, 1  ;;  %v12603_v57 = vld [vmem:[#allocation2 + $0x74] sm:$0xf] }
 0x239   : > { %9994 = vmatprep.mubr.bf16.mxu0 %v5548_v5  ;;  %9483 = vmatpush3.bf16.msra.mxu0 %v10606_v32  ;;  %v10614_v32 = vld [vmem:[%s13726_s5 + $0x10] sm:$0xff]   ;;  %v12590_v27 = vsel %vm1544_vm1, %v6205_v31, %v12562_v22  ;;  %v10626_v31 = vld [vmem:[%s13726_s5 + $0x68] sm:$0xff]  }
 0x23a   : > { %9484 = vmatprep.subr.bf16.mxu0 %v10607_v13  ;;  %v5019_v13 = vsel %vm2173_vm13, %v5012_v61, %v5018_v28  ;;  %v5433_v61 = vshll.u32 %v12421_v29, 16  ;;  %v5560_v23 = vsel %vm3485_vm6, %v5553_v52, %v5559_v18  ;;  %v10620_v28 = vld [vmem:[%s13726_s5 + $0x60] sm:$0xff]   ;;  %v12596_v52 = vld [vmem:[#allocation2 + $0x78] sm:$0xf] }
 0x23b   : > { %9431 = vmatpush3.bf16.msra.mxu1 %v10617_v40  ;;  %v9086_v62 = vpop.f32.mrb[20].mxu1  ;;  %v5415_v40 = vor.u32 %v5414_v48, %v5410_v43  ;;  %v5429_v48 = vshrl.u32 %v12348_v24, 16 }
 0x23c   : > { %10002 = vmatprep.subr.bf16.mxu1 %v12544_v54  ;;  %v9087_v21 = vpop.f32.mrb[21].mxu1 }
 0x23d   : > { %9485 = vmatpush3.bf16.msra.mxu0 %v10609_v11  ;;  %v12568_v7 = vadd.f32 %v9087_v21, %v9086_v62  ;;  %v9089_v19 = vpop.f32.mrb[22].mxu1  ;;  %v5420_v44 = vsel %vm1544_vm1, %v5415_v40, %v5419_v15  ;;  %v10619_v11 = vld [vmem:[%s13726_s5 + $0x18] sm:$0xff]   ;;  %v5565_v15 = vrot.slane %v5478_v30, 2  ;;  %v6317_v62 = vrot.slane %v12590_v27, 3  ;;  %v10641_v27 = vld [vmem:[%s13726_s5 + $0xc8] sm:$0xff]  }
 0x23e   : > { %5249 = vmatmul.mubr.bf16.gmra.mrb[124].mxu1 %v12343_v38  ;;  %9486 = vmatprep.subr.bf16.mxu0 %v10612_v17  ;;  %v9090_v39 = vpop.f32.mrb[23].mxu1  ;;  %v12577_v38 = vsel %vm1544_vm1, %v5423_v10, %v5427_v60  ;;  %v6202_v17 = vsel %vm1544_vm1, %v6197_v34, %v6201_v58  ;;  %v5435_v10 = vrot.slane %v5433_v61, 1  ;;  %v5531_v20 = vrot.slane %v5420_v44, 2 }
 0x23f   : > { %5256 = vmatprep.mubr.bf16.mxu1 %v5019_v13  ;;  %v12581_v5 = vadd.f32 %v9090_v39, %v9089_v19  ;;  %v5532_v35 = vrot.slane %v12577_v38, 2  ;;  %v5017_v21 = vsel %vm2173_vm13, %v12324_v3, %v5016_v8  ;;  %v5431_v43 = vor.u32 %v5429_v48, %v5427_v60  ;;  %v12632_v38 = vld [vmem:[#allocation2 + $0x7c] sm:$0xf]  ;;  %v12639_v8 = vld [vmem:[#allocation2 + $0x80] sm:$0xf] }
 0x240   : > { %9995 = vmatmul.mubr.bf16.gmra.mrb[40].mxu0 %v5554_v14  ;;  %v12612_v30 = vcombine.low %v12603_v57, %v12596_v52  ;;  %v6316_v25 = vrot.slane %v6202_v17, 3  ;;  %v5566_v3 = vsel %vm3485_vm6, %v5559_v18, %v5565_v15  ;;  %v5441_v60 = vshll.u32 %v12423_v45, 16  ;;  %v10627_v18 = vld [vmem:[%s13726_s5 + $0x28] sm:$0xff]  }
 0x241   : > { %9998 = vmatprep.mubr.bf16.mxu0 %v5560_v23  ;;  %9487 = vmatpush3.bf16.msra.mxu0 %v10614_v32  ;;  %v10621_v32 = vld [vmem:[%s13726_s5 + $0x20] sm:$0xff]   ;;  %v5533_v58 = vsel %vm3485_vm6, %v5531_v20, %v5532_v35  ;;  %v12620_v13 = vsel %vm1544_vm1, %v5431_v43, %v5435_v10  ;;  %v5529_v14 = vrot.slane %v12359_v59, 2  ;;  %v5437_v39 = vshrl.u32 %v12421_v29, 16  ;;  %v10629_v59 = vld [vmem:[%s13726_s5 + $0x70] sm:$0xff]  }
 0x242   : > { %9488 = vmatprep.subr.bf16.mxu0 %v10618_v51  ;;  %v6318_v19 = vsel %vm6312_vm0, %v6316_v25, %v6317_v62  ;;  %v6215_v40 = vshll.u32 %v12612_v30, 16  ;;  %v5528_v61 = vrot.slane %v12488_v41, 2  ;;  %v5539_v23 = vrot.slane %v12620_v13, 2  ;;  %v10628_v41 = vld [vmem:[%s13726_s5 + $0x88] sm:$0xff]   ;;  %v10630_v20 = vld [vmem:[%s13726_s5 + $0x30] sm:$0xff]  }
 0x243   : > { %v5439_v34 = vor.u32 %v5437_v39, %v5435_v10  ;;  %v12655_v10 = vcombine.low %v12632_v38, %v12639_v8  ;;  %v5537_v13 = vrot.slane %v12348_v24, 2  ;;  %v5445_v39 = vshrl.u32 %v12423_v45, 16  ;;  %v10645_v24 = vld [vmem:[%s13726_s5 + $0xd0] sm:$0xff]  }
 0x244   : > { %v5530_v17 = vsel %vm3485_vm6, %v5528_v61, %v5529_v14  ;;  %v5540_v43 = vsel %vm3485_vm6, %v5532_v35, %v5539_v23  ;;  %v10633_v35 = vld [vmem:[%s13726_s5 + $0x90] sm:$0xff]  }
 0x245   : > { %9489 = vmatpush3.bf16.msra.mxu0 %v10619_v11 }
 0x246   : > { %5257 = vmatmul.mubr.bf16.gmra.mrb[128].mxu1 %v5017_v21  ;;  %9490 = vmatprep.subr.bf16.mxu0 %v10620_v28  ;;  %v5443_v28 = vrot.slane %v5441_v60, 1  ;;  %v6211_v21 = vshrl.u32 %v12508_v26, 16 }
 0x247   : > { %5761 = vmatprep.mubr.bf16.mxu1 %v5533_v58  ;;  %v10631_v58 = vld [vmem:[%s13726_s5 + $0x78] sm:$0xff]  }
 0x248   : > { %9999 = vmatmul.mubr.bf16.gmra.mrb[44].mxu0 %v5566_v3  ;;  %v12663_v25 = vsel %vm1544_vm1, %v5439_v34, %v5443_v28  ;;  %v5449_v3 = vshll.u32 %v12447_v37, 16 }
 0x249   : > { %v9092_v51 = vpop.f32.mrb[24].mxu1  ;;  %9491 = vmatpush3.bf16.msra.mxu0 %v10621_v32  ;;  %6546 = vmatprep.mubr.bf16.mxu0 %v6318_v19  ;;  %v6217_v32 = vrot.slane %v6215_v40, 1  ;;  %v10636_v40 = vld [vmem:[%s13726_s5 + $0x100] sm:$0xff]  }
 0x24a   : > { %v9093_v63 = vpop.f32.mrb[25].mxu1  ;;  %9492 = vmatprep.subr.bf16.mxu0 %v10626_v31  ;;  %v6213_v31 = vor.u32 %v6211_v21, %v12562_v22  ;;  %v6223_v22 = vshll.u32 %v12655_v10, 16  ;;  %v5451_v34 = vrot.slane %v5449_v3, 1  ;;  %v6313_v21 = vrot.slane %v12504_v46, 3 }
 0x24b   : > { %v12641_v44 = vadd.f32 %v9093_v63, %v9092_v51  ;;  %v9095_v11 = vpop.f32.mrb[26].mxu1  ;;  %v12683_v63 = vld [vmem:[#allocation2 + $0x88] sm:$0xf] }
 0x24c   : > { %v9096_v15 = vpop.f32.mrb[27].mxu1  ;;  %v12675_v19 = vsel %vm1544_vm1, %v6213_v31, %v6217_v32  ;;  %v12697_v31 = vld [vmem:[#allocation2 + $0x84] sm:$0xf] }
 0x24d   : > { %v12647_v48 = vadd.f32 %v9096_v15, %v9095_v11  ;;  %9493 = vmatpush3.bf16.msra.mxu0 %v10627_v18  ;;  %v13733_v18 = vrot.slane %v12663_v25, 2  ;;  %v13732_v11 = vrot.slane %v12478_v47, 3  ;;  %v6219_v15 = vshrl.u32 %v12612_v30, 16 }
 0x24e   : > { %5762 = vmatmul.mubr.bf16.vlgmr.msra.gmra.mrb[132].mxu1 %v5530_v17  ;;  %9494 = vmatprep.subr.bf16.mxu0 %v10629_v59  ;;  %v12706_v46 = vcombine.low %v12697_v31, %v12683_v63 }
 0x24f   : > { %10003 = vmatpush3.bf16.msra.mxu1 %v12544_v54  ;;  %5769 = vmatprep.mubr.bf16.mxu1 %v5540_v43  ;;  %v10632_v54 = vld [vmem:[%s13726_s5 + $0x38] sm:$0xff]   ;;  %v13731_v43 = vrot.slane %v12675_v19, 3 }
 0x250   : > { %10004 = vmatprep.subr.bf16.mxu1 %v10628_v41 }
 0x251   : > { %v9098_v60 = vpop.f32.mrb[28].mxu1  ;;  %9495 = vmatpush3.bf16.msra.mxu0 %v10630_v20  ;;  %v5538_v20 = vsel %vm3485_vm6, %v5529_v14, %v5537_v13  ;;  %v6221_v14 = vor.u32 %v6219_v15, %v6217_v32  ;;  %v6315_v32 = vsel %vm6312_vm0, %v6313_v21, %v13732_v11 }
 0x252   : > { %v9099_v51 = vpop.f32.mrb[29].mxu1  ;;  %9496 = vmatprep.subr.bf16.mxu0 %v10631_v58  ;;  %v5447_v58 = vor.u32 %v5445_v39, %v5443_v28  ;;  %v5546_v28 = vsel %vm3485_vm6, %v5539_v23, %v13733_v18  ;;  %v6325_v23 = vsel %vm6312_vm0, %v6317_v62, %v13731_v43  ;;  %v5543_v39 = vrot.slane %v12421_v29, 2  ;;  %v10655_v29 = vld [vmem:[%s13726_s5 + $0xe0] sm:$0xff]  }
 0x253   : > { %v12685_v61 = vadd.f32 %v9099_v51, %v9098_v60  ;;  %v9101_v59 = vpop.f32.mrb[30].mxu1  ;;  %10005 = vmatpush3.bf16.msra.mxu1 %v10628_v41  ;;  %v10635_v41 = vld [vmem:[%s13726_s5 + $0x98] sm:$0xff]   ;;  %v10637_v60 = vld [vmem:[%s13726_s5 + $0xc0] sm:$0xff]   ;;  %v6225_v51 = vrot.slane %v6223_v22, 1  ;;  %v6231_v62 = vshll.u32 %v12706_v46, 16 }
 0x254   : > { %v9102_v17 = vpop.f32.mrb[31].mxu1  ;;  %10006 = vmatprep.subr.bf16.mxu1 %v10633_v35  ;;  %v12718_v22 = vsel %vm1544_vm1, %v5447_v58, %v5451_v34  ;;  %v10643_v58 = vld [vmem:[%s13726_s5 + $0x110] sm:$0xff]  }
 0x255   : > { %v12699_v3 = vadd.f32 %v9102_v17, %v9101_v59  ;;  %9497 = vmatpush3.bf16.msra.mxu0 %v10632_v54  ;;  %v10640_v54 = vld [vmem:[%s13726_s5 + $0x108] sm:$0xff]   ;;  %v12731_v15 = vsel %vm1544_vm1, %v6221_v14, %v6225_v51  ;;  %v5453_v17 = vshrl.u32 %v12447_v37, 16  ;;  %v13736_v21 = vrot.slane %v12718_v22, 2 }
 0x256   : > { %5770 = vmatmul.mubr.bf16.gmra.mrb[136].mxu1 %v5538_v20  ;;  %9562 = vmatprep.subr.bf16.mxu0 %v10636_v40  ;;  %v5457_v40 = vshll.u32 %v12465_v53, 16  ;;  %v13734_v11 = vrot.slane %v12731_v15, 3 }
 0x257   : > { %5777 = vmatprep.mubr.bf16.mxu1 %v5546_v28  ;;  %10007 = vmatpush3.bf16.msra.mxu1 %v10633_v35  ;;  %v10639_v35 = vld [vmem:[%s13726_s5 + $0xa0] sm:$0xff]  }
 0x258   : > { %6547 = vmatmul.mubr.bf16.vlgmr.msra.gmra.mrb[48].mxu0 %v6315_v32  ;;  %10008 = vmatprep.subr.bf16.mxu1 %v10635_v41  ;;  %v13735_v32 = vrot.slane %v12508_v26, 3  ;;  %v5459_v18 = vrot.slane %v5457_v40, 1  ;;  %v13771_v40 = vrot.slane %v12663_v25, 2  ;;  %v13773_v25 = vrot.slane %v12675_v19, 3 }
 0x259   : > { %v9104_v59 = vpop.f32.mrb[32].mxu1  ;;  %6554 = vmatprep.mubr.bf16.mxu0 %v6325_v23  ;;  %9563 = vmatpush3.bf16.msra.mxu0 %v10637_v60  ;;  %v12742_v60 = vld [vmem:[#allocation2 + $0x8c] sm:$0xf]  ;;  %v5455_v23 = vor.u32 %v5453_v17, %v5451_v34  ;;  %v6227_v34 = vshrl.u32 %v12655_v10, 16  ;;  %v10647_v17 = vld [vmem:[%s13726_s5 + $0x118] sm:$0xff]  }
 0x25a   : > { %v9105_v20 = vpop.f32.mrb[33].mxu1  ;;  %9564 = vmatprep.subr.bf16.mxu0 %v10640_v54  ;;  %v5544_v54 = vsel %vm3485_vm6, %v5537_v13, %v5543_v39  ;;  %v12764_v13 = vcombine.low %v12742_v60, %v12742_v60 }
 0x25b   : > { %v12744_v14 = vadd.f32 %v9105_v20, %v9104_v59  ;;  %v9107_v28 = vpop.f32.mrb[34].mxu1  ;;  %10009 = vmatpush3.bf16.msra.mxu1 %v10635_v41  ;;  %v10642_v59 = vld [vmem:[%s13726_s5 + $0xa8] sm:$0xff]   ;;  %v6233_v41 = vrot.slane %v6231_v62, 1 }
 0x25c   : > { %v9108_v43 = vpop.f32.mrb[35].mxu1  ;;  %10010 = vmatprep.subr.bf16.mxu1 %v10639_v35  ;;  %v6239_v19 = vshll.u32 %v12764_v13, 16 }
 0x25d   : > { %v12756_v20 = vadd.f32 %v9108_v43, %v9107_v28  ;;  %9565 = vmatpush3.bf16.msra.mxu0 %v10641_v27  ;;  %v5552_v43 = vsel %vm3485_vm6, %v13771_v40, %v13736_v21  ;;  %v13772_v27 = vrot.slane %v12478_v47, 3  ;;  %v12780_v28 = vsel %vm1544_vm1, %v5455_v23, %v5459_v18  ;;  %v10646_v47 = vld [vmem:[%s13726_s5 + $0xb0] sm:$0xff]  }
 0x25e   : > { %5778 = vmatmul.mubr.bf16.gmra.mrb[140].mxu1 %v5544_v54  ;;  %9566 = vmatprep.subr.bf16.mxu0 %v10643_v58  ;;  %v6229_v54 = vor.u32 %v6227_v34, %v6225_v51  ;;  %v6331_v58 = vsel %vm6312_vm0, %v13773_v25, %v13734_v11  ;;  %v13737_v40 = vrot.slane %v12423_v45, 2  ;;  %v10648_v51 = vld [vmem:[%s13726_s5 + $0xd8] sm:$0xff]   ;;  %v5557_v34 = vrot.slane %v12780_v28, 2 }
 0x25f   : > { %5785 = vmatprep.mubr.bf16.mxu1 %v5552_v43  ;;  %v6323_v62 = vsel %vm6312_vm0, %v13772_v27, %v13735_v32  ;;  %10011 = vmatpush3.bf16.msra.mxu1 %v10639_v35  ;;  %v10654_v27 = vld [vmem:[%s13726_s5 + $0x120] sm:$0xff]   ;;  %v5461_v32 = vshrl.u32 %v12465_v53, 16  ;;  %v6241_v21 = vrot.slane %v6239_v19, 1  ;;  %v13774_v53 = vrot.slane %v12718_v22, 2 }
 0x260   : > { %6555 = vmatmul.mubr.bf16.gmra.mrb[52].mxu0 %v6323_v62  ;;  %10012 = vmatprep.subr.bf16.mxu1 %v10642_v59  ;;  %v12792_v35 = vsel %vm1544_vm1, %v6229_v54, %v6233_v41  ;;  %v5550_v11 = vsel %vm3485_vm6, %v5543_v39, %v13737_v40  ;;  %v8725_v22 = vcombine.low %v12449_v9, %v12474_v0  ;;  %v10660_v0 = vld [vmem:[%s13726_s5 + $0xe8] sm:$0xff]  }
 0x261   : > { %v9154_v43 = vpop.f32.mrb[36].mxu1  ;;  %6562 = vmatprep.mubr.bf16.mxu0 %v6331_v58  ;;  %9567 = vmatpush3.bf16.msra.mxu0 %v10645_v24  ;;  %v6235_v24 = vshrl.u32 %v12706_v46, 16  ;;  %v5558_v39 = vsel %vm3485_vm6, %v13774_v53, %v5557_v34  ;;  %v5463_v40 = vor.u32 %v5461_v32, %v5459_v18  ;;  %v13777_v18 = vrot.slane %v12731_v15, 3 }
 0x262   : > { %v9155_v23 = vpop.f32.mrb[37].mxu1  ;;  %9568 = vmatprep.subr.bf16.mxu0 %v10647_v17  ;;  %v6336_v17 = vrot.slane %v12792_v35, 3  ;;  %v8724_v9 = vcombine.low %v12472_v16, %v12467_v6  ;;  %v10650_v16 = vld [vmem:[#allocation2 + $0x70] ss:$0 sps:$4 sm:$0x33]  }
 0x263   : > { %v9156_v62 = vadd.f32 %v9155_v23, %v9154_v43  ;;  %v9157_v25 = vpop.f32.mrb[38].mxu1  ;;  %10013 = vmatpush3.bf16.msra.mxu1 %v10642_v59  ;;  %v10651_v43 = vld [vmem:[%s13726_s5 + $0xb8] sm:$0xff]   ;;  %v6237_v54 = vor.u32 %v6235_v24, %v6233_v41 }
 0x264   : > { %v9158_v58 = vpop.f32.mrb[39].mxu1  ;;  %10014 = vmatprep.subr.bf16.mxu1 %v10646_v47  ;;  %v6337_v32 = vsel %vm6312_vm0, %v13777_v18, %v6336_v17  ;;  %v13779_v18 = vrot.slane %v12612_v30, 3 }
 0x265   : > { %v12815_v59 = vadd.f32 %v9156_v62, %v12442_v2  ;;  %v9159_v23 = vadd.f32 %v9158_v58, %v9157_v25  ;;  %9569 = vmatpush3.bf16.msra.mxu0 %v10648_v51  ;;  %v10658_v2 = vld [vmem:[%s13726_s5 + $0x128] sm:$0xff]   ;;  %v13775_v51 = vrot.slane %v12612_v30, 3  ;;  %v5563_v62 = vrot.slane %v5463_v40, 2  ;;  %v10663_v25 = vld [vmem:[%s13726_s5 + $0x130] sm:$0xff]  }
 0x266   : > { %5786 = vmatmul.mubr.bf16.gmra.mrb[144].mxu1 %v5550_v11  ;;  %9570 = vmatprep.subr.bf16.mxu0 %v10654_v27  ;;  %v13776_v11 = vrot.slane %v12508_v26, 3  ;;  %v12850_v27 = vsel %vm1544_vm1, %v6237_v54, %v6241_v21  ;;  %v6334_v54 = vrot.slane %v12655_v10, 3  ;;  %v6253_v10 = vrot.slane %v8724_v9, 5 }
 0x267   : > { %v12829_v41 = vadd.f32 %v9159_v23, %v12457_v36  ;;  %5793 = vmatprep.mubr.bf16.mxu1 %v5558_v39  ;;  %10015 = vmatpush3.bf16.msra.mxu1 %v10646_v47  ;;  %v12846_v36 = vld [vmem:[%s13727_s6] sm:$0xff]   ;;  %v5555_v47 = vrot.slane %v12447_v37, 2  ;;  %v6254_v23 = vrot.slane %v8725_v22, 5  ;;  %v6342_v6 = vrot.slane %v12850_v27, 3  ;;  %v12942_v27 = vld [vmem:[#allocation2 + $0x78] sm:$0xff]  }
 0x268   : > { %v6329_v19 = vsel %vm6312_vm0, %v13776_v11, %v13775_v51  ;;  %10016 = vmatprep.subr.bf16.mxu1 %v10651_v43  ;;  %v13778_v39 = vrot.slane %v12423_v45, 2  ;;  %v12874_v51 = vld [vmem:[#allocation2 + $0x6c] sm:$0xf]  ;;  %v6243_v11 = vshrl.u32 %v12764_v13, 16  ;;  %v8726_v45 = vcombine.low %v12485_v42, %v12603_v57  ;;  %v6896_v42 = vld [vmem:[#allocation2 + $0x68] sm:$0xf] }
 0x269   : > { %6563 = vmatmul.mubr.bf16.gmra.mrb[56].mxu0 %v6329_v19  ;;  %v9160_v26 = vpop.f32.mrb[40].mxu1  ;;  %v10670_v19 = vld [vmem:[%s13726_s5 + $0x138] sm:$0xff]   ;;  %v6335_v28 = vsel %vm6312_vm0, %v13779_v18, %v6334_v54  ;;  %v8727_v13 = vcombine.low %v12596_v52, %v12632_v38 }
 0x26a   : > { %6570 = vmatprep.mubr.bf16.mxu0 %v6337_v32  ;;  %9571 = vmatpush3.bf16.msra.mxu0 %v10655_v29  ;;  %v9161_v15 = vpop.f32.mrb[41].mxu1  ;;  %v6245_v57 = vor.u32 %v6243_v11, %v6241_v21  ;;  %v12902_v32 = vcombine.low %v6896_v42, %v12874_v51  ;;  %v10672_v52 = vld [vmem:[%s13726_s5 + $0xf8] sm:$0xff]   ;;  %v10675_v21 = vld [vmem:[%s13726_s5 + $0x1c0] sm:$0xff]   ;;  %v8729_v11 = vcombine.low %v12683_v63, %v12742_v60  ;;  %v10661_v42 = vld [vmem:[%s13727_s6 + $0x8] sm:$0xff]  }
 0x26b   : > { %9572 = vmatprep.subr.bf16.mxu0 %v10658_v2  ;;  %v9162_v24 = vadd.f32 %v9161_v15, %v9160_v26  ;;  %v9163_v58 = vpop.f32.mrb[42].mxu1  ;;  %10017 = vmatpush3.bf16.msra.mxu1 %v10651_v43  ;;  %v5556_v2 = vsel %vm3485_vm6, %v13778_v39, %v5555_v47  ;;  %v10665_v43 = vld [vmem:[%s13726_s5 + $0xf0] sm:$0xff]   ;;  %v5561_v26 = vrot.slane %v10650_v16, 2  ;;  %v6340_v15 = vrot.slane %v12706_v46, 3 }
 0x26c   : > { %v9164_v53 = vpop.f32.mrb[43].mxu1  ;;  %10030 = vmatprep.subr.bf16.mxu1 %v12846_v36 }
 0x26d   : > { %v12864_v40 = vadd.f32 %v9162_v24, %v12517_v49  ;;  %v9165_v29 = vadd.f32 %v9164_v53, %v9163_v58  ;;  %v5564_v49 = vsel %vm3485_vm6, %v5557_v34, %v5563_v62  ;;  %v12892_v34 = vsel %vm6252_vm8, %v6253_v10, %v6254_v23 }
 0x26e   : > { %9573 = vmatpush3.bf16.msra.mxu0 %v10660_v0  ;;  %5794 = vmatmul.mubr.bf16.gmra.mrb[148].mxu1 %v5556_v2  ;;  %v6320_v9 = vrot.slane %v12892_v34, 3  ;;  %v6256_v0 = vrot.slane %v8726_v45, 5  ;;  %v6258_v62 = vrot.slane %v8727_v13, 5  ;;  %v6319_v24 = vrot.slane %v6253_v10, 3 }
 0x26f   : > { %9574 = vmatprep.subr.bf16.mxu0 %v10663_v25  ;;  %v12886_v22 = vadd.f32 %v9165_v29, %v12531_v12  ;;  %5801 = vmatprep.mubr.bf16.mxu1 %v5564_v49  ;;  %v6343_v12 = vsel %vm6312_vm0, %v6336_v17, %v6342_v6  ;;  %v6348_v58 = vrot.slane %v6245_v57, 3  ;;  %v6952_v53 = vshll.u32 %v12902_v32, 16  ;;  %v10662_v49 = vld [vmem:[#allocation2 + $0x8c] ss:$0 sps:$4 sm:$0x77]  }
 0x270   : > { %v5562_v39 = vsel %vm3485_vm6, %v5555_v47, %v5561_v26  ;;  %v6321_v2 = vsel %vm6312_vm0, %v6319_v24, %v6320_v9  ;;  %v6257_v46 = vsel %vm6252_vm8, %v6254_v23, %v6256_v0  ;;  %v8728_v10 = vcombine.low %v12639_v8, %v12697_v31  ;;  %v10683_v57 = vld [vmem:[%s10846_s14 + $0x68] sm:$0xff]  }
 0x271   : > { %6571 = vmatmul.mubr.bf16.gmra.mrb[60].mxu0 %v6335_v28  ;;  %v9166_v30 = vpop.f32.mrb[44].mxu1  ;;  %v6341_v37 = vsel %vm6312_vm0, %v6334_v54, %v6340_v15  ;;  %v12930_v47 = vsel %vm6252_vm8, %v6256_v0, %v6258_v62  ;;  %v6349_v23 = vsel %vm6312_vm0, %v6342_v6, %v6348_v58  ;;  %v6954_v8 = vrot.slane %v6952_v53, 1  ;;  %v12971_v24 = vld [vmem:[#allocation2 + $0x88] sm:$0xff]  }
 0x272   : > { %6578 = vmatprep.mubr.bf16.mxu0 %v6343_v12  ;;  %9575 = vmatpush3.bf16.msra.mxu0 %v10665_v43  ;;  %v9167_v38 = vpop.f32.mrb[45].mxu1  ;;  %v12921_v43 = vld [vmem:[#allocation2 + $0x70] sm:$0xff]   ;;  %v6332_v54 = vrot.slane %v12930_v47, 3  ;;  %v6260_v28 = vrot.slane %v8728_v10, 5  ;;  %v6346_v60 = vrot.slane %v10662_v49, 3  ;;  %v12940_v13 = vrot.slane %v8729_v11, 5 }
 0x273   : > { %9576 = vmatprep.subr.bf16.mxu0 %v10670_v19  ;;  %v9168_v35 = vadd.f32 %v9167_v38, %v9166_v30  ;;  %v9169_v17 = vpop.f32.mrb[46].mxu1  ;;  %v6950_v19 = vshrl.u32 %v12902_v32, 16  ;;  %v6957_v18 = vshll.u32 %v12921_v43, 16  ;;  %v6961_v53 = vshrl.u32 %v12921_v43, 16 }
 0x274   : > { %v9170_v25 = vpop.f32.mrb[47].mxu1 }
 0x275   : > { %v12914_v16 = vadd.f32 %v9168_v35, %v12568_v7  ;;  %v9171_v29 = vadd.f32 %v9170_v25, %v9169_v17  ;;  %v6955_v12 = vor.u32 %v6954_v8, %v6950_v19  ;;  %v6959_v0 = vrot.slane %v6957_v18, 1  ;;  %v12969_v25 = vld [vmem:[%s10846_s14 + $0x70] sm:$0xff]  }
 0x276   : > { %9577 = vmatpush3.bf16.msra.mxu0 %v10672_v52  ;;  %5802 = vmatmul.mubr.bf16.gmra.mrb[152].mxu1 %v5562_v39  ;;  %v6347_v17 = vsel %vm6312_vm0, %v6340_v15, %v6346_v60  ;;  %v6710_v8 = vshrl.u32 %v10683_v57, 16  ;;  %v7395_v60 = vld [vmem:[#allocation2 + $0x70] sm:$0xe] }
 0x277   : > { %9628 = vmatprep.subr.bf16.mxu0 %v10675_v21  ;;  %v12926_v7 = vadd.f32 %v9171_v29, %v12581_v5  ;;  %10018 = vmatprep.mubr.bf16.mxu1 %v6321_v2  ;;  %v6326_v5 = vrot.slane %v6257_v46, 3  ;;  %v6261_v21 = vsel %vm6252_vm8, %v6258_v62, %v6260_v28  ;;  %v10664_v62 = vld [vmem:[%s13727_s6 + $0x10] sm:$0xff]   ;;  %v12977_v46 = vld [vmem:[#allocation2 + $0x80] sm:$0xff]   ;;  %v6963_v47 = vor.u32 %v6961_v53, %v6959_v0 }
 0x278   : > { %v6338_v58 = vrot.slane %v6261_v21, 3  ;;  %v12974_v29 = vld [vmem:[#allocation2 + $0x90] sm:$0xff]  }
 0x279   : > { %6579 = vmatmul.mubr.bf16.gmra.mrb[64].mxu0 %v6341_v37  ;;  %v9172_v31 = vpop.f32.mrb[48].mxu1  ;;  %v6327_v52 = vsel %vm6312_vm0, %v6320_v9, %v6326_v5  ;;  %v6333_v38 = vsel %vm6312_vm0, %v6326_v5, %v6332_v54  ;;  %v6965_v9 = vshll.u32 %v12942_v27, 16  ;;  %v6717_v5 = vshll.u32 %v12969_v25, 16 }
 0x27a   : > { %6586 = vmatprep.mubr.bf16.mxu0 %v6349_v23  ;;  %v9173_v45 = vpop.f32.mrb[49].mxu1  ;;  %v10671_v23 = vld [vmem:[%s13727_s6 + $0x18] sm:$0xff]  }
 0x27b   : > { %v9174_v34 = vadd.f32 %v9173_v45, %v9172_v31  ;;  %v9175_v63 = vpop.f32.mrb[50].mxu1  ;;  %v6967_v49 = vrot.slane %v6965_v9, 1  ;;  %v6981_v45 = vshll.u32 %v12971_v24, 16  ;;  %v13013_v21 = vrot.slane %v6717_v5, 1  ;;  %v6909_v9 = vld [vmem:[#allocation2 + $0x68] sm:$0xe] }
 0x27c   : > { %v9176_v6 = vpop.f32.mrb[51].mxu1  ;;  %v6993_v5 = vshrl.u32 %v12974_v29, 16 }
 0x27d   : > { %v12949_v30 = vadd.f32 %v9174_v34, %v12641_v44  ;;  %v9177_v26 = vadd.f32 %v9176_v6, %v9175_v63  ;;  %v12961_v44 = vsel %vm6252_vm8, %v6260_v28, %v12940_v13  ;;  %v6339_v28 = vsel %vm6312_vm0, %v6332_v54, %v6338_v58  ;;  %v10677_v34 = vld [vmem:[%s13726_s5 + $0x180] sm:$0xff]   ;;  %v12992_v6 = vld [vmem:[#allocation2 + $0x74] sm:$0xf]  ;;  %v10680_v54 = vld [vmem:[%s13726_s5 + $0x1c8] sm:$0xff]  }
 0x27e   : > { %10019 = vmatmul.mubr.bf16.vlgmr.msra.gmra.mrb[156].mxu1 %v6327_v52  ;;  %v6344_v2 = vrot.slane %v12961_v44, 3  ;;  %v6989_v63 = vshll.u32 %v12974_v29, 16  ;;  %v13007_v52 = vld [vmem:[#allocation2 + $0x98] ss:$0 sps:$4 sm:$0x11]  }
 0x27f   : > { %v12955_v35 = vadd.f32 %v9177_v26, %v12647_v48  ;;  %10031 = vmatpush3.bf16.msra.mxu1 %v12846_v36  ;;  %10022 = vmatprep.mubr.bf16.mxu1 %v6333_v38  ;;  %v6960_v48 = vsel %vm1544_vm1, %v6955_v12, %v6959_v0  ;;  %v6712_v36 = vshll.u32 %v10683_v57, 16  ;;  %v13001_v12 = vld [vmem:[#allocation2 + $0x78] sm:$0xff]   ;;  %v6968_v26 = vsel %vm1544_vm1, %v6963_v47, %v6967_v49  ;;  %v10673_v38 = vld [vmem:[%s13727_s6 + $0x20] sm:$0xff]  }
 0x280   : > { %10032 = vmatprep.subr.bf16.mxu1 %v10661_v42  ;;  %13780 = vst [vmem:[#allocation5_spill] sm:$0xff] %v13007_v52  ;;  %v10691_v44 = vld [vmem:[%s13726_s5 + $0x1d8] sm:$0xff]  }
 0x281   : > { %6587 = vmatmul.mubr.bf16.gmra.mrb[68].mxu0 %v6347_v17  ;;  %v9178_v15 = vpop.f32.mrb[52].mxu1  ;;  %v6714_v31 = vrot.slane %v6712_v36, 1  ;;  %v6983_v17 = vrot.slane %v6981_v45, 1  ;;  %v6969_v36 = vshrl.u32 %v12942_v27, 16  ;;  %v6997_v45 = vshll.u32 %v13007_v52, 16  ;;  %v10710_v52 = vld [vmem:[%s13726_s5 + $0x1b0] sm:$0xff]  }
 0x282   : > { %7253 = vmatprep.mubr.bf16.mxu0 %v6960_v48  ;;  %v9179_v39 = vpop.f32.mrb[53].mxu1  ;;  %v6350_v48 = vrot.slane %v12940_v13, 3  ;;  %v7454_v13 = vshll.u32 %v13001_v12, 16 }
 0x283   : > { %v9180_v10 = vadd.f32 %v9179_v39, %v9178_v15  ;;  %10033 = vmatpush3.bf16.msra.mxu1 %v10661_v42  ;;  %v9181_v37 = vpop.f32.mrb[54].mxu1  ;;  %v6345_v42 = vsel %vm6312_vm0, %v6338_v58, %v6344_v2  ;;  %v6715_v0 = vor.u32 %v6714_v31, %v6710_v8  ;;  %v6991_v15 = vrot.slane %v6989_v63, 1  ;;  %v10685_v39 = vld [vmem:[%s13726_s5 + $0x1d0] sm:$0xff]  }
 0x284   : > { %v9182_v11 = vpop.f32.mrb[55].mxu1  ;;  %10034 = vmatprep.subr.bf16.mxu1 %v10664_v62  ;;  %v6971_v31 = vor.u32 %v6969_v36, %v6967_v49  ;;  %v6977_v49 = vshrl.u32 %v12977_v46, 16  ;;  %v13058_v36 = vld [vmem:[%s10846_s14 + $0x78] sm:$0xff]  }
 0x285   : > { %v12985_v19 = vadd.f32 %v9180_v10, %v12685_v61  ;;  %v9183_v18 = vadd.f32 %v9182_v11, %v9181_v37  ;;  %v6973_v61 = vshll.u32 %v12977_v46, 16  ;;  %v6985_v10 = vshrl.u32 %v12971_v24, 16 }
 0x286   : > { %10023 = vmatmul.mubr.bf16.gmra.mrb[160].mxu1 %v6339_v28  ;;  %v8776_v37 = vcombine.low %v6909_v9, %v12874_v51  ;;  %v10676_v51 = vld [vmem:[%s13727_s6 + $0x28] sm:$0xff]   ;;  %v6995_v9 = vor.u32 %v6993_v5, %v6991_v15 }
 0x287   : > { %v13004_v57 = vadd.f32 %v9183_v18, %v12699_v3  ;;  %10035 = vmatpush3.bf16.msra.mxu1 %v10664_v62  ;;  %10026 = vmatprep.mubr.bf16.mxu1 %v6345_v42  ;;  %v13016_v3 = vcombine.low %v7395_v60, %v12992_v6  ;;  %v6975_v53 = vrot.slane %v6973_v61, 1  ;;  %v13033_v18 = vld [vmem:[#allocation2 + $0x80] sm:$0xff]   ;;  %v6987_v63 = vor.u32 %v6985_v10, %v6983_v17 }
 0x288   : > { %10036 = vmatprep.subr.bf16.mxu1 %v10671_v23  ;;  %13781 = vst [vmem:[#allocation8_spill] sm:$0xff] %v13033_v18 }
 0x289   : > { %7254 = vmatmul.mubr.bf16.vlgmr.msra.gmra.mrb[72].mxu0 %v12902_v32  ;;  %v9184_v62 = vpop.f32.mrb[56].mxu1  ;;  %v10681_v32 = vld [vmem:[%s13726_s5 + $0x188] sm:$0xff]   ;;  %v7449_v60 = vshll.u32 %v13016_v3, 16  ;;  %v6976_v10 = vsel %vm1544_vm1, %v6971_v31, %v6975_v53 }
 0x28a   : > { %7261 = vmatprep.mubr.bf16.mxu0 %v6968_v26  ;;  %9629 = vmatpush3.bf16.msra.mxu0 %v10677_v34  ;;  %v9185_v58 = vpop.f32.mrb[57].mxu1  ;;  %v13085_v31 = vld [vmem:[#allocation2 + $0x88] sm:$0xff]  }
 0x28b   : > { %9630 = vmatprep.subr.bf16.mxu0 %v10680_v54  ;;  %v9186_v47 = vadd.f32 %v9185_v58, %v9184_v62  ;;  %10037 = vmatpush3.bf16.msra.mxu1 %v10671_v23  ;;  %v9187_v11 = vpop.f32.mrb[58].mxu1  ;;  %v13029_v8 = vpop.f32.mrb[24].mxu0  ;;  %v6720_v23 = vsel %vm1544_vm1, %v6715_v0, %v13013_v21  ;;  %v6351_v54 = vsel %vm6312_vm0, %v6344_v2, %v6350_v48  ;;  %v10689_v0 = vld [vmem:[%s13726_s5 + $0x190] sm:$0xff]   ;;  %v7010_v2 = vrot.slane %v8776_v37, 1 }
 0x28c   : > { %v9188_v28 = vpop.f32.mrb[59].mxu1  ;;  %10038 = vmatprep.subr.bf16.mxu1 %v10673_v38  ;;  %v13035_v34 = vpop.f32.mrb[25].mxu0  ;;  %v7011_v48 = vrot.slane %v12921_v43, 1  ;;  %v10678_v37 = vld [vmem:[%s13727_s6 + $0x30] sm:$0xff]  }
 0x28d   : > { %v13045_v42 = vadd.f32 %v9186_v47, %v12744_v14  ;;  %v9189_v61 = vadd.f32 %v9188_v28, %v9187_v11  ;;  %v13050_v26 = vpop.f32.mrb[26].mxu0  ;;  %v6979_v14 = vor.u32 %v6977_v49, %v6975_v53  ;;  %v7462_v47 = vshll.u32 %v13033_v18, 16  ;;  %v13079_v11 = vld [vmem:[%s10846_s14 + $0x80] sm:$0xff]  }
 0x28e   : > { %9631 = vmatpush3.bf16.msra.mxu0 %v10681_v32  ;;  %10027 = vmatmul.mubr.bf16.gmra.mrb[164].mxu1 %v6351_v54  ;;  %v13055_v62 = vpop.f32.mrb[27].mxu0  ;;  %v13064_v32 = vrot.slane %v7454_v13, 1  ;;  %v7458_v53 = vshrl.u32 %v13001_v12, 16  ;;  %v6721_v49 = vshrl.u32 %v12969_v25, 16 }
 0x28f   : > { %9632 = vmatprep.subr.bf16.mxu0 %v10685_v39  ;;  %v13067_v58 = vadd.f32 %v9189_v61, %v12756_v20  ;;  %10039 = vmatpush3.bf16.msra.mxu1 %v10673_v38  ;;  %v6999_v39 = vrot.slane %v6997_v45, 1  ;;  %v13076_v13 = vsel %vm1544_vm1, %v6979_v14, %v6983_v17  ;;  %v13082_v20 = vsel %vm1544_vm1, %v6987_v63, %v6991_v15  ;;  %v13110_v14 = vld [vmem:[%s10846_s14 + $0x88] sm:$0xff]  }
 0x290   : > { %10046 = vmatprep.mubr.bf16.mxu1 %v6720_v23  ;;  %10040 = vmatprep.subr.bf16.mxu1 %v10676_v51  ;;  %v7451_v38 = vrot.slane %v7449_v60, 1  ;;  %v7447_v45 = vshrl.u32 %v13016_v3, 16  ;;  %v13095_v15 = vrot.slane %v13001_v12, 1  ;;  %v6725_v63 = vshll.u32 %v13058_v36, 16  ;;  %v10697_v60 = vld [vmem:[%s13726_s5 + $0x1e0] sm:$0xff]  }
 0x291   : > { %13782 = vst [vmem:[#allocation9_spill] sm:$0xff] %v13067_v58  ;;  %7262 = vmatmul.mubr.bf16.gmra.mrb[76].mxu0 %v12921_v43  ;;  %v9220_v5 = vpop.f32.mrb[60].mxu1  ;;  %v10692_v43 = vld [vmem:[%s13726_s5 + $0x198] sm:$0xff]   ;;  %v13091_v17 = vsel %vm1544_vm1, %v6995_v9, %v6999_v39  ;;  %v13104_v61 = vsel %vm2173_vm13, %v7010_v2, %v7011_v48  ;;  %v7460_v54 = vor.u32 %v7458_v53, %v13064_v32  ;;  %v7464_v25 = vrot.slane %v7462_v47, 1 }
 0x292   : > { %7269 = vmatprep.mubr.bf16.mxu0 %v6976_v10  ;;  %9633 = vmatpush3.bf16.msra.mxu0 %v10689_v0  ;;  %13783 = vst [vmem:[#allocation10_spill] sm:$0xff] %v13095_v15  ;;  %v9221_v23 = vpop.f32.mrb[61].mxu1  ;;  %v7565_v10 = vrot.slane %v13016_v3, 1  ;;  %v10682_v2 = vld [vmem:[%s13727_s6 + $0x38] sm:$0xff]   ;;  %v6733_v53 = vshll.u32 %v13079_v11, 16  ;;  %v6741_v4 = vshll.u32 %v13110_v14, 16 }
 0x293   : > { %9634 = vmatprep.subr.bf16.mxu0 %v10691_v44  ;;  %v9222_v0 = vadd.f32 %v9221_v23, %v9220_v5  ;;  %10041 = vmatpush3.bf16.msra.mxu1 %v10676_v51  ;;  %v9223_v12 = vpop.f32.mrb[62].mxu1  ;;  %v13107_v9 = vpop.f32.mrb[28].mxu0  ;;  %v7466_v44 = vshrl.u32 %v13033_v18, 16  ;;  %v6729_v51 = vshrl.u32 %v13058_v36, 16  ;;  %v7452_v5 = vor.u32 %v7451_v38, %v7447_v45 }
 0x294   : > { %v9224_v39 = vpop.f32.mrb[63].mxu1  ;;  %10042 = vmatprep.subr.bf16.mxu1 %v10678_v37  ;;  %v13114_v28 = vpop.f32.mrb[29].mxu0  ;;  %v7470_v23 = vshll.u32 %v13085_v31, 16  ;;  %v13130_v33 = vsel %vm2173_vm13, %v7565_v10, %v13095_v15  ;;  %v13784_v36 = vrot.slane %v12942_v27, 1  ;;  %v13149_v10 = vsel %vm1544_vm1, %v7460_v54, %v7464_v25  ;;  %v13165_v54 = vld [vmem:[%s10846_s14 + $0x90] sm:$0xff]  }
 0x295   : > { %v10118_v47 = vadd.f32 %v12815_v59, %v9222_v0  ;;  %v9225_v3 = vadd.f32 %v9224_v39, %v9223_v12  ;;  %v13123_v50 = vpop.f32.mrb[30].mxu0  ;;  %v13140_v59 = vld [vmem:[%s13728_s7] ss:$0 sm:$0xff]  ;;  %v6727_v0 = vrot.slane %v6725_v63, 1  ;;  %v10705_v12 = vld [vmem:[%s13726_s5 + $0x1e8] sm:$0xff]  }
 0x296   : > { %9635 = vmatpush3.bf16.msra.mxu0 %v10692_v43  ;;  %v13135_v38 = vsel %vm2173_vm13, %v7011_v48, %v13784_v36  ;;  %v13142_v45 = vpop.f32.mrb[31].mxu0  ;;  %v6723_v43 = vor.u32 %v6721_v49, %v13013_v21  ;;  %v13157_v21 = vsel %vm1544_vm1, %v7452_v5, %v13064_v32  ;;  %v10688_v49 = vld [vmem:[%s13726_s5 + $0x140] sm:$0xff]   ;;  %v10706_v5 = vld [vmem:[%s13726_s5 + $0x1a8] sm:$0xff]  }
 0x297   : > { %9636 = vmatprep.subr.bf16.mxu0 %v10697_v60  ;;  %v10119_v39 = vadd.f32 %v10118_v47, %v13035_v34  ;;  %v10124_v36 = vadd.f32 %v12829_v41, %v9225_v3  ;;  %10043 = vmatpush3.bf16.msra.mxu1 %v10678_v37  ;;  %v6731_v63 = vor.u32 %v6729_v51, %v6727_v0  ;;  %v6735_v60 = vrot.slane %v6733_v53, 1 }
 0x298   : > { %10044 = vmatprep.subr.bf16.mxu1 %v10682_v2  ;;  %v6737_v34 = vshrl.u32 %v13079_v11, 16  ;;  %v7468_v41 = vor.u32 %v7466_v44, %v7464_v25  ;;  %v13173_v3 = vrot.slane %v7470_v23, 1  ;;  %v6728_v53 = vsel %vm1544_vm1, %v6723_v43, %v6727_v0  ;;  %v10690_v25 = vld [vmem:[%s13726_s5 + $0x148] sm:$0xff]  }
 0x299   : > { %7270 = vmatmul.mubr.bf16.gmra.mrb[80].mxu0 %v12942_v27  ;;  %v3867_v37 = vadd.f32 %v10119_v39, %v13140_v59  ;;  %v10125_v47 = vadd.f32 %v10124_v36, %v13055_v62  ;;  %v9226_v32 = vpop.f32.mrb[64].mxu1  ;;  %v10708_v62 = vld [vmem:[%s13726_s5 + $0x1f0] sm:$0xff]   ;;  %v6743_v43 = vrot.slane %v6741_v4, 1 }
 0x29a   : > { %7277 = vmatprep.mubr.bf16.mxu0 %v13076_v13  ;;  %9637 = vmatpush3.bf16.msra.mxu0 %v10699_v56  ;;  %v9227_v11 = vpop.f32.mrb[65].mxu1  ;;  %v6736_v56 = vsel %vm1544_vm1, %v6731_v63, %v6735_v60  ;;  %v13203_v63 = vld [vmem:[%s10846_s14 + $0x98] ss:$0 sps:$4 sm:$0x11]  }
 0x29b   : > { %9638 = vmatprep.subr.bf16.mxu0 %v10705_v12  ;;  %v3879_v44 = vmax.f32 %v3867_v37, 0.0  ;;  %v3868_v23 = vadd.f32 %v10125_v47, %v13140_v59  ;;  %v9228_v39 = vadd.f32 %v9227_v11, %v9226_v32  ;;  %10045 = vmatpush3.bf16.msra.mxu1 %v10682_v2  ;;  %v9229_v36 = vpop.f32.mrb[66].mxu1  ;;  %v13184_v51 = vpop.f32.mrb[32].mxu0  ;;  %v6739_v37 = vor.u32 %v6737_v34, %v6735_v60 }
 0x29c   : > { %v9230_v0 = vpop.f32.mrb[67].mxu1  ;;  %10058 = vmatprep.subr.bf16.mxu1 %v10688_v49  ;;  %v13186_v12 = vpop.f32.mrb[33].mxu0  ;;  %v6745_v47 = vshrl.u32 %v13110_v14, 16  ;;  %v6749_v2 = vshll.u32 %v13165_v54, 16  ;;  %v10714_v14 = vld [vmem:[%s13726_s5 + $0x1f8] sm:$0xff]   ;;  %v13785_v60 = vrot.slane %v12977_v46, 1 }
 0x29d   : > { %v8980_v32 = vpack.c.bf16 %v3879_v44, %v3879_v44  ;;  %v3880_v11 = vmax.f32 %v3868_v23, 0.0  ;;  %v10115_v4 = vadd.f32 %v12864_v40, %v9228_v39  ;;  %v9231_v13 = vadd.f32 %v9230_v0, %v9229_v36  ;;  %v13195_v48 = vpop.f32.mrb[34].mxu0 }
 0x29e   : > { %9639 = vmatpush3.bf16.msra.mxu0 %v10706_v5  ;;  %10047 = vmatmul.mubr.bf16.vlgmr.msra.gmra.mrb[156].mxu1 %v6728_v53  ;;  %v13200_v58 = vpop.f32.mrb[35].mxu0  ;;  %v13210_v40 = vsel %vm1544_vm1, %v7468_v41, %v13173_v3  ;;  %v13786_v34 = vrot.slane %v12942_v27, 1  ;;  %v13787_v53 = vrot.slane %v13033_v18, 1  ;;  %v6744_v0 = vsel %vm1544_vm1, %v6739_v37, %v6743_v43 }
 0x29f   : > { %9640 = vmatprep.subr.bf16.mxu0 %v10708_v62  ;;  %v3928_v23 = vshrl.u32 %v8980_v32, 16  ;;  %v3931_v39 = vshll.u32 %v8980_v32, 16  ;;  %v8981_v36 = vpack.c.bf16 %v3880_v11, %v3880_v11  ;;  %v10116_v41 = vadd.f32 %v10115_v4, %v13029_v8  ;;  %10059 = vmatpush3.bf16.msra.mxu1 %v10688_v49 }
 0x2a0   : > { %v13217_v5 = vsel %vm2173_vm13, %v13786_v34, %v13785_v60  ;;  %v13223_v62 = vsel %vm2173_vm13, %v13095_v15, %v13787_v53  ;;  %10050 = vmatprep.mubr.bf16.mxu1 %v6736_v56  ;;  %v10121_v27 = vadd.f32 %v12886_v22, %v9231_v13  ;;  %10060 = vmatprep.subr.bf16.mxu1 %v10690_v25  ;;  %v10696_v60 = vld [vmem:[%s13726_s5 + $0x150] sm:$0xff]   ;;  %v6751_v53 = vrot.slane %v6749_v2, 1  ;;  %v10716_v22 = vld [vmem:[%s13726_s5 + $0x1b8] sm:$0xff]   ;;  %v4059_v56 = vld [vmem:[%s10822_s22 + $0x8] sm:$0xe] }
 0x2a1   : > { %7278 = vmatmul.mubr.bf16.gmra.mrb[84].mxu0 %v12977_v46  ;;  %v6747_v34 = vor.u32 %v6745_v47, %v6743_v43  ;;  %v3930_v32 = vrot.slane %v3928_v23, 6  ;;  %v3933_v11 = vrot.slane %v3931_v39, 7  ;;  %v3937_v44 = vshrl.u32 %v8981_v36, 16  ;;  %v9232_v49 = vpop.f32.mrb[68].mxu1 }
 0x2a2   : > { %v3940_v8 = vshll.u32 %v8981_v36, 16  ;;  %7285 = vmatprep.mubr.bf16.mxu0 %v13082_v20  ;;  %9641 = vmatpush3.bf16.msra.mxu0 %v10710_v52  ;;  %v3869_v13 = vadd.f32 %v10116_v41, %v13140_v59  ;;  %v10122_v37 = vadd.f32 %v10121_v27, %v13050_v26  ;;  %v9233_v4 = vpop.f32.mrb[69].mxu1  ;;  %v6753_v43 = vshrl.u32 %v13165_v54, 16  ;;  %v10698_v26 = vld [vmem:[%s13726_s5 + $0x158] sm:$0xff]   ;;  %v13251_v27 = vld [vmem:[#allocation2 + $0x90] sm:$0xff]  }
 0x2a3   : > { %v6757_v47 = vshll.u32 %v13203_v63, 16  ;;  %9642 = vmatprep.subr.bf16.mxu0 %v10714_v14  ;;  %v3934_v2 = vor.u32 %v3933_v11, %v3930_v32  ;;  %v3939_v23 = vrot.slane %v3937_v44, 6  ;;  %v9234_v20 = vadd.f32 %v9233_v4, %v9232_v49  ;;  %10061 = vmatpush3.bf16.msra.mxu1 %v10690_v25  ;;  %v9235_v52 = vpop.f32.mrb[70].mxu1 }
 0x2a4   : > { %v3942_v39 = vrot.slane %v3940_v8, 7  ;;  %v3881_v36 = vmax.f32 %v3869_v13, 0.0  ;;  %v3870_v15 = vadd.f32 %v10122_v37, %v13140_v59  ;;  %v9236_v18 = vpop.f32.mrb[71].mxu1  ;;  %10062 = vmatprep.subr.bf16.mxu1 %v10696_v60  ;;  %v6752_v54 = vsel %vm1544_vm1, %v6747_v34, %v6751_v53 }
 0x2a5   : > { %v7573_v63 = vrot.slane %v13210_v40, 1  ;;  %v3935_v14 = vrot.slane %v3934_v2, 4  ;;  %v4060_v44 = vsel %vm11233_vm11, %v3934_v2, %v4059_v56  ;;  %v10130_v25 = vadd.f32 %v12914_v16, %v9234_v20 }
 0x2a6   : > { %v3943_v41 = vor.u32 %v3942_v39, %v3939_v23  ;;  %9643 = vmatpush3.bf16.msra.mxu0 %v10716_v22  ;;  %4061 = vst [vmem:[%s10822_s22 + $0x8] sm:$0xe] %v4060_v44  ;;  %v8982_v32 = vpack.c.bf16 %v3881_v36, %v3881_v36  ;;  %v3882_v11 = vmax.f32 %v3870_v15, 0.0  ;;  %v9237_v8 = vadd.f32 %v9236_v18, %v9235_v52 }
 0x2a7   : > { %10051 = vmatmul.mubr.bf16.gmra.mrb[160].mxu1 %v6744_v0  ;;  %v13788_v34 = vrot.slane %v12971_v24, 1  ;;  %v13789_v49 = vrot.slane %v12977_v46, 1  ;;  %v10131_v16 = vadd.f32 %v10130_v25, %v13114_v28  ;;  %v6755_v22 = vor.u32 %v6753_v43, %v6751_v53  ;;  %v10703_v46 = vld [vmem:[%s13726_s5 + $0x160] sm:$0xff]  }
 0x2a8   : > { %v3944_v56 = vsel %vm11257_vm12, %v3935_v14, %v3943_v41  ;;  %10063 = vmatpush3.bf16.msra.mxu1 %v10696_v60  ;;  %10054 = vmatprep.mubr.bf16.mxu1 %v6752_v54  ;;  %v6759_v37 = vrot.slane %v6757_v47, 1  ;;  %v3947_v15 = vshrl.u32 %v8982_v32, 16  ;;  %v3950_v18 = vshll.u32 %v8982_v32, 16 }
 0x2a9   : > { %v13259_v13 = vsel %vm2173_vm13, %v13789_v49, %v13788_v34  ;;  %4062 = vst [vmem:[%s10822_s22 + $0xc] sm:$0xf] %v3944_v56  ;;  %v8983_v0 = vpack.c.bf16 %v3882_v11, %v3882_v11  ;;  %v10136_v4 = vadd.f32 %v12926_v7, %v9237_v8  ;;  %10064 = vmatprep.subr.bf16.mxu1 %v10698_v26  ;;  %v9238_v28 = vpop.f32.mrb[72].mxu1  ;;  %v13790_v60 = vrot.slane %v13149_v10, 1  ;;  %v10707_v49 = vld [vmem:[%s13726_s5 + $0x168] sm:$0xff]  }
 0x2aa   : > { %7286 = vmatmul.mubr.bf16.gmra.mrb[88].mxu0 %v12971_v24  ;;  %v3871_v2 = vadd.f32 %v10131_v16, %v13140_v59  ;;  %v13791_v53 = vrot.slane %v13157_v21, 1  ;;  %v13792_v7 = vshrl.u32 %v13085_v31, 16  ;;  %v7478_v23 = vshll.u32 %v13251_v27, 16  ;;  %v9239_v54 = vpop.f32.mrb[73].mxu1 }
 0x2ab   : > { %7293 = vmatprep.mubr.bf16.mxu0 %v13091_v17  ;;  %v3949_v39 = vrot.slane %v3947_v15, 6  ;;  %v3952_v20 = vrot.slane %v3950_v18, 7  ;;  %v3957_v52 = vshrl.u32 %v8983_v0, 16  ;;  %v3960_v36 = vshll.u32 %v8983_v0, 16  ;;  %v9241_v21 = vpop.f32.mrb[74].mxu1 }
 0x2ac   : > { %v7569_v43 = vsel %vm2173_vm13, %v13791_v53, %v13790_v60  ;;  %v13280_v47 = vor.u32 %v13792_v7, %v13173_v3  ;;  %v3883_v14 = vmax.f32 %v3871_v2, 0.0  ;;  %v10137_v17 = vadd.f32 %v10136_v4, %v13142_v45  ;;  %10065 = vmatpush3.bf16.msra.mxu1 %v10698_v26  ;;  %v9242_v34 = vpop.f32.mrb[75].mxu1  ;;  %v10709_v60 = vld [vmem:[%s13726_s5 + $0x170] sm:$0xff]  }
 0x2ad   : > { %v9240_v44 = vadd.f32 %v9239_v54, %v9238_v28  ;;  %v6760_v25 = vsel %vm1544_vm1, %v6755_v22, %v6759_v37  ;;  %v3945_v32 = vrot.slane %v3943_v41, 4  ;;  %v3953_v11 = vor.u32 %v3952_v20, %v3949_v39  ;;  %10066 = vmatprep.subr.bf16.mxu1 %v10703_v46 }
 0x2ae   : > { %v3959_v3 = vrot.slane %v3957_v52, 6  ;;  %v3962_v8 = vrot.slane %v3960_v36, 7  ;;  %v8984_v56 = vpack.c.bf16 %v3883_v14, %v3883_v14  ;;  %v3872_v16 = vadd.f32 %v10137_v17, %v13140_v59 }
 0x2af   : > { %v10127_v45 = vadd.f32 %v12949_v30, %v9240_v44  ;;  %v9243_v26 = vadd.f32 %v9242_v34, %v9241_v21  ;;  %v3954_v22 = vsel %vm11257_vm12, %v3945_v32, %v3953_v11  ;;  %v3955_v41 = vrot.slane %v3953_v11, 4  ;;  %10055 = vmatmul.mubr.bf16.gmra.mrb[164].mxu1 %v6760_v25 }
 0x2b0   : > { %v3963_v37 = vor.u32 %v3962_v8, %v3959_v3  ;;  %v7019_v15 = vrot.slane %v12974_v29, 1  ;;  %4063 = vst [vmem:[%s10822_s22 + $0x10] sm:$0xf] %v3954_v22  ;;  %v3967_v18 = vshrl.u32 %v8984_v56, 16  ;;  %v3970_v0 = vshll.u32 %v8984_v56, 16  ;;  %10067 = vmatpush3.bf16.msra.mxu1 %v10703_v46  ;;  %10074 = vmatprep.mubr.bf16.mxu1 %v13104_v61  ;;  %v13309_v46 = vld [vmem:[#allocation2 + $0x98] sm:$0xff]  }
 0x2b1   : > { %v3884_v4 = vmax.f32 %v3872_v16, 0.0  ;;  %v10128_v2 = vadd.f32 %v10127_v45, %v13107_v9  ;;  %v10133_v28 = vadd.f32 %v12955_v35, %v9243_v26  ;;  %10068 = vmatprep.subr.bf16.mxu1 %v10707_v49  ;;  %v13793_v53 = vrot.slane %v13149_v10, 1  ;;  %v9244_v52 = vpop.f32.mrb[76].mxu1  ;;  %v13324_v56 = vld [vmem:[#allocation2 + $0x70] sm:$0xc] }
 0x2b2   : > { %v3964_v30 = vsel %vm11257_vm12, %v3955_v41, %v3963_v37  ;;  %7294 = vmatmul.mubr.bf16.gmra.mrb[92].mxu0 %v12974_v29  ;;  %v7509_v61 = vrot.slane %v13085_v31, 1  ;;  %v3969_v7 = vrot.slane %v3967_v18, 6  ;;  %v3972_v35 = vrot.slane %v3970_v0, 7  ;;  %v9245_v14 = vpop.f32.mrb[77].mxu1 }
 0x2b3   : > { %v7574_v9 = vsel %vm2173_vm13, %v13793_v53, %v7573_v63  ;;  %4064 = vst [vmem:[%s10822_s22 + $0x14] sm:$0xf] %v3964_v30  ;;  %v8985_v39 = vpack.c.bf16 %v3884_v4, %v3884_v4  ;;  %v3873_v20 = vadd.f32 %v10128_v2, %v13140_v59  ;;  %7789 = vmatprep.mubr.bf16.mxu0 %v7569_v43  ;;  %v3965_v36 = vrot.slane %v3963_v37, 4  ;;  %v9247_v11 = vpop.f32.mrb[78].mxu1 }
 0x2b4   : > { %v10134_v54 = vadd.f32 %v10133_v28, %v13123_v50  ;;  %v7480_v17 = vrot.slane %v7478_v23, 1  ;;  %v7482_v10 = vshrl.u32 %v13251_v27, 16  ;;  %v3973_v44 = vor.u32 %v3972_v35, %v3969_v7  ;;  %10069 = vmatpush3.bf16.msra.mxu1 %v10707_v49  ;;  %v9248_v34 = vpop.f32.mrb[79].mxu1  ;;  %v10715_v50 = vld [vmem:[%s13726_s5 + $0x178] sm:$0xff]  }
 0x2b5   : > { %v3977_v21 = vshrl.u32 %v8985_v39, 16  ;;  %v3980_v25 = vshll.u32 %v8985_v39, 16  ;;  %v3885_v32 = vmax.f32 %v3873_v20, 0.0  ;;  %v9246_v8 = vadd.f32 %v9245_v14, %v9244_v52  ;;  %10070 = vmatprep.subr.bf16.mxu1 %v10709_v60  ;;  %v13339_v28 = vld [vmem:[#allocation2 + $0xa0] ss:$0 sps:$4 sm:$0x33]  }
 0x2b6   : > { %v3874_v3 = vadd.f32 %v10134_v54, %v13140_v59  ;;  %v13321_v43 = vsel %vm1544_vm1, %v13280_v47, %v7480_v17  ;;  %v7486_v23 = vshll.u32 %v13309_v46, 16  ;;  %v3974_v49 = vsel %vm11257_vm12, %v3965_v36, %v3973_v44 }
 0x2b7   : > { %v3975_v16 = vrot.slane %v3973_v44, 4  ;;  %v3979_v45 = vrot.slane %v3977_v21, 6  ;;  %v3982_v26 = vrot.slane %v3980_v25, 7  ;;  %4065 = vst [vmem:[%s10822_s22 + $0x18] sm:$0xf] %v3974_v49  ;;  %v8986_v22 = vpack.c.bf16 %v3885_v32, %v3885_v32 }
 0x2b8   : > { %v3886_v41 = vmax.f32 %v3874_v3, 0.0  ;;  %v10142_v37 = vadd.f32 %v12985_v19, %v9246_v8  ;;  %v9249_v18 = vadd.f32 %v9248_v34, %v9247_v11  ;;  %10071 = vmatpush3.bf16.msra.mxu1 %v10709_v60  ;;  %v13794_v47 = vrot.slane %v12971_v24, 1  ;;  %v10718_v24 = vld [vmem:[%s13726_s5 + $0x200] sm:$0xff]   ;;  %v10719_v8 = vld [vmem:[%s13726_s5 + $0x208] sm:$0xff]  }
 0x2b9   : > { %v3983_v0 = vor.u32 %v3982_v26, %v3979_v45  ;;  %v7484_v2 = vor.u32 %v7482_v10, %v7480_v17  ;;  %v8857_v30 = vcombine.low %v13324_v56, %v12992_v6  ;;  %v3987_v53 = vshrl.u32 %v8986_v22, 16  ;;  %10072 = vmatprep.subr.bf16.mxu1 %v10715_v50  ;;  %v9250_v6 = vpop.f32.mrb[80].mxu1 }
 0x2ba   : > { %v13335_v4 = vsel %vm2173_vm13, %v13794_v47, %v7019_v15  ;;  %v3990_v7 = vshll.u32 %v8986_v22, 16  ;;  %v8987_v19 = vpack.c.bf16 %v3886_v41, %v3886_v41  ;;  %v10143_v35 = vadd.f32 %v10142_v37, %v13186_v12  ;;  %7790 = vmatmul.mubr.bf16.vlgmr.msra.gmra.mrb[96].mxu0 %v13130_v33  ;;  %v9251_v33 = vpop.f32.mrb[81].mxu1  ;;  %v13795_v37 = vld [vmem:[#allocation9_spill] sm:$0xff] }
 0x2bb   : > { %v3984_v60 = vsel %vm11257_vm12, %v3975_v16, %v3983_v0  ;;  %v10148_v39 = vadd.f32 %v13004_v57, %v9249_v18  ;;  %7797 = vmatprep.mubr.bf16.mxu0 %v7574_v9  ;;  %v7577_v20 = vrot.slane %v13321_v43, 1  ;;  %v7488_v52 = vrot.slane %v7486_v23, 1  ;;  %v9253_v21 = vpop.f32.mrb[82].mxu1 }
 0x2bc   : > { %4066 = vst [vmem:[%s10822_s22 + $0x1c] sm:$0xf] %v3984_v60  ;;  %v3989_v36 = vrot.slane %v3987_v53, 6  ;;  %v3992_v12 = vrot.slane %v3990_v7, 7  ;;  %v3997_v54 = vshrl.u32 %v8987_v19, 16  ;;  %v4000_v14 = vshll.u32 %v8987_v19, 16  ;;  %10073 = vmatpush3.bf16.msra.mxu1 %v10715_v50 }
 0x2bd   : > { %v3875_v17 = vadd.f32 %v10143_v35, %v13140_v59  ;;  %v10149_v10 = vadd.f32 %v10148_v39, %v13200_v58  ;;  %v9252_v44 = vadd.f32 %v9251_v33, %v9250_v6  ;;  %v7494_v57 = vshll.u32 %v13339_v28, 16  ;;  %v9254_v3 = vpop.f32.mrb[83].mxu1  ;;  %10086 = vmatprep.subr.bf16.mxu1 %v10718_v24 }
 0x2be   : > { %v3985_v25 = vrot.slane %v3983_v0, 4  ;;  %v3993_v9 = vor.u32 %v3992_v12, %v3989_v36  ;;  %v3999_v32 = vrot.slane %v3997_v54, 6  ;;  %v4002_v11 = vrot.slane %v4000_v14, 7 }
 0x2bf   : > { %v3887_v34 = vmax.f32 %v3875_v17, 0.0  ;;  %v3876_v23 = vadd.f32 %v10149_v10, %v13140_v59  ;;  %v10139_v58 = vadd.f32 %v13045_v42, %v9252_v44  ;;  %v9255_v50 = vadd.f32 %v9254_v3, %v9253_v21  ;;  %10075 = vmatmul.mubr.bf16.vlgmr.msra.gmra.mrb[156].mxu1 %v13135_v38 }
 0x2c0   : > { %v3994_v56 = vsel %vm11257_vm12, %v3985_v25, %v3993_v9  ;;  %v3995_v49 = vrot.slane %v3993_v9, 4  ;;  %v4003_v16 = vor.u32 %v4002_v11, %v3999_v32  ;;  %v13363_v45 = vsel %vm1544_vm1, %v7484_v2, %v7488_v52  ;;  %10078 = vmatprep.mubr.bf16.mxu1 %v13217_v5  ;;  %10087 = vmatpush3.bf16.msra.mxu1 %v10718_v24  ;;  %v13796_v32 = vld [vmem:[#allocation8_spill] sm:$0xff] }
 0x2c1   : > { %4067 = vst [vmem:[%s10822_s22 + $0x20] sm:$0xf] %v3994_v56  ;;  %v8988_v26 = vpack.c.bf16 %v3887_v34, %v3887_v34  ;;  %v3888_v22 = vmax.f32 %v3876_v23, 0.0  ;;  %v10140_v41 = vadd.f32 %v10139_v58, %v13184_v51  ;;  %v10145_v18 = vadd.f32 %v13795_v37, %v9255_v50  ;;  %10088 = vmatprep.subr.bf16.mxu1 %v10719_v8  ;;  %v10721_v51 = vld [vmem:[%s13726_s5 + $0x210] sm:$0xff]   ;;  %v9286_v19 = vpop.f32.mrb[84].mxu1 }
 0x2c2   : > { %v4004_v42 = vsel %vm11257_vm12, %v3995_v49, %v4003_v16  ;;  %7798 = vmatmul.mubr.bf16.gmra.mrb[100].mxu0 %v13223_v62  ;;  %v7578_v38 = vsel %vm2173_vm13, %v7573_v63, %v7577_v20  ;;  %v7504_v0 = vrot.slane %v8857_v30, 1  ;;  %v7490_v5 = vshrl.u32 %v13309_v46, 16  ;;  %v9287_v40 = vpop.f32.mrb[85].mxu1 }
 0x2c3   : > { %4068 = vst [vmem:[%s10822_s22 + $0x24] sm:$0xf] %v4004_v42  ;;  %v4007_v47 = vshrl.u32 %v8988_v26, 16  ;;  %v4010_v2 = vshll.u32 %v8988_v26, 16  ;;  %v8989_v53 = vpack.c.bf16 %v3888_v22, %v3888_v22  ;;  %v3877_v7 = vadd.f32 %v10140_v41, %v13140_v59  ;;  %7805 = vmatprep.mubr.bf16.mxu0 %v7578_v38  ;;  %v9289_v12 = vpop.f32.mrb[86].mxu1  ;;  %v10724_v26 = vld [vmem:[%s13726_s5 + $0x220] sm:$0xff]  }
 0x2c4   : > { %v10146_v35 = vadd.f32 %v10145_v18, %v13195_v48  ;;  %v7581_v63 = vrot.slane %v13363_v45, 1  ;;  %v7492_v24 = vor.u32 %v7490_v5, %v7488_v52  ;;  %v13385_v60 = vrot.slane %v7494_v57, 1  ;;  %10089 = vmatpush3.bf16.msra.mxu1 %v10719_v8  ;;  %v9290_v10 = vpop.f32.mrb[87].mxu1  ;;  %v10722_v48 = vld [vmem:[%s13726_s5 + $0x218] sm:$0xff]  }
 0x2c5   : > { %v4009_v39 = vrot.slane %v4007_v47, 6  ;;  %v4012_v30 = vrot.slane %v4010_v2, 7  ;;  %v4017_v6 = vshrl.u32 %v8989_v53, 16  ;;  %v4020_v36 = vshll.u32 %v8989_v53, 16  ;;  %10090 = vmatprep.subr.bf16.mxu1 %v10721_v51  ;;  %v13798_v8 = vld [vmem:[#allocation10_spill] sm:$0xff]  ;;  %v13799_v41 = vld [vmem:[#allocation5_spill] sm:$0xff] }
 0x2c6   : > { %v4005_v54 = vrot.slane %v4003_v16, 4  ;;  %v3889_v14 = vmax.f32 %v3877_v7, 0.0  ;;  %v3878_v33 = vadd.f32 %v10146_v35, %v13140_v59  ;;  %v13388_v17 = vadd.f32 %v9287_v40, %v9286_v19 }
 0x2c7   : > { %v4013_v52 = vor.u32 %v4012_v30, %v4009_v39  ;;  %v4019_v44 = vrot.slane %v4017_v6, 6  ;;  %v4022_v21 = vrot.slane %v4020_v36, 7  ;;  %v13393_v57 = vadd.f32 %v9290_v10, %v9289_v12  ;;  %10079 = vmatmul.mubr.bf16.gmra.mrb[160].mxu1 %v13259_v13  ;;  %v10726_v6 = vld [vmem:[%s13726_s5 + $0x228] sm:$0xff]   ;;  %v4073_v10 = vld [vmem:[%s10822_s22 + $0x38] sm:$0x3] }
 0x2c8   : > { %v8990_v25 = vpack.c.bf16 %v3889_v14, %v3889_v14  ;;  %v3890_v9 = vmax.f32 %v3878_v33, 0.0  ;;  %v13797_v11 = vrot.slane %v13796_v32, 1  ;;  %v7506_v34 = vsel %vm2173_vm13, %v7504_v0, %v13798_v8  ;;  %10082 = vmatprep.mubr.bf16.mxu1 %v13335_v4  ;;  %10091 = vmatpush3.bf16.msra.mxu1 %v10721_v51 }
 0x2c9   : > { %v4014_v23 = vsel %vm11257_vm12, %v4005_v54, %v4013_v52  ;;  %v4015_v58 = vrot.slane %v4013_v52, 4  ;;  %v4023_v50 = vor.u32 %v4022_v21, %v4019_v44  ;;  %v7582_v13 = vsel %vm2173_vm13, %v7577_v20, %v7581_v63  ;;  %10092 = vmatprep.subr.bf16.mxu1 %v10722_v48  ;;  %v9292_v22 = vpop.f32.mrb[88].mxu1  ;;  %v10728_v44 = vld [vmem:[%s13726_s5 + $0x230] sm:$0xff]  }
 0x2ca   : > { %v13401_v3 = vsel %vm2173_vm13, %v13797_v11, %v7509_v61  ;;  %4069 = vst [vmem:[%s10822_s22 + $0x28] sm:$0xf] %v4014_v23  ;;  %v4027_v56 = vshrl.u32 %v8990_v25, 16  ;;  %v4030_v49 = vshll.u32 %v8990_v25, 16  ;;  %v8991_v16 = vpack.c.bf16 %v3890_v9, %v3890_v9  ;;  %v9293_v5 = vpop.f32.mrb[89].mxu1 }
 0x2cb   : > { %7806 = vmatmul.mubr.bf16.gmra.mrb[104].mxu0 %v13401_v3  ;;  %v13420_v4 = vsel %vm1544_vm1, %v7492_v24, %v13385_v60  ;;  %v4024_v43 = vsel %vm11257_vm12, %v4015_v58, %v4023_v50  ;;  %v7571_v20 = vrot.slane %v13223_v62, 1  ;;  %v7021_v37 = vrot.slane %v13799_v41, 1  ;;  %v9295_v2 = vpop.f32.mrb[90].mxu1  ;;  %v10730_v58 = vld [vmem:[#allocation2 + $0xa0] ss:$0 sps:$4 sm:$0x11]  }
 0x2cc   : > { %7813 = vmatprep.mubr.bf16.mxu0 %v7582_v13  ;;  %v7570_v18 = vrot.slane %v7506_v34, 1  ;;  %4070 = vst [vmem:[%s10822_s22 + $0x2c] sm:$0xf] %v4024_v43  ;;  %v4029_v42 = vrot.slane %v4027_v56, 6  ;;  %v4032_v38 = vrot.slane %v4030_v49, 7  ;;  %v4037_v51 = vshrl.u32 %v8991_v16, 16  ;;  %10093 = vmatpush3.bf16.msra.mxu1 %v10722_v48 }
 0x2cd   : > { %v4040_v0 = vshll.u32 %v8991_v16, 16  ;;  %v13427_v47 = vadd.f32 %v9293_v5, %v9292_v22  ;;  %v7511_v53 = vrot.slane %v13251_v27, 1  ;;  %v7585_v7 = vrot.slane %v13420_v4, 1  ;;  %v9296_v30 = vpop.f32.mrb[91].mxu1  ;;  %10094 = vmatprep.subr.bf16.mxu1 %v10724_v26 }
 0x2ce   : > { %v7498_v19 = vshrl.u32 %v13339_v28, 16  ;;  %v4025_v35 = vrot.slane %v4023_v50, 4  ;;  %v4033_v40 = vor.u32 %v4032_v38, %v4029_v42  ;;  %v4039_v24 = vrot.slane %v4037_v51, 6 }
 0x2cf   : > { %v4042_v39 = vrot.slane %v4040_v0, 7  ;;  %v13435_v36 = vadd.f32 %v9296_v30, %v9295_v2  ;;  %v7022_v27 = vsel %vm2173_vm13, %v7019_v15, %v7021_v37  ;;  %v7572_v33 = vsel %vm2173_vm13, %v7570_v18, %v7571_v20 }
 0x2d0   : > { %v4034_v12 = vsel %vm11257_vm12, %v4025_v35, %v4033_v40  ;;  %v4035_v54 = vrot.slane %v4033_v40, 4  ;;  %10083 = vmatmul.mubr.bf16.gmra.mrb[164].mxu1 %v7022_v27  ;;  %v7512_v29 = vsel %vm2173_vm13, %v7509_v61, %v7511_v53  ;;  %v7586_v52 = vsel %vm2173_vm13, %v7581_v63, %v7585_v7 }
 0x2d1   : > { %v4043_v14 = vor.u32 %v4042_v39, %v4039_v24  ;;  %4071 = vst [vmem:[%s10822_s22 + $0x30] sm:$0xf] %v4034_v12  ;;  %10095 = vmatpush3.bf16.msra.mxu1 %v10724_v26  ;;  %10102 = vmatprep.mubr.bf16.mxu1 %v7572_v33  ;;  %v7500_v21 = vor.u32 %v7498_v19, %v13385_v60  ;;  %v9298_v31 = vpop.f32.mrb[92].mxu1  ;;  %v7513_v63 = vrot.slane %v13309_v46, 1  ;;  %v10729_v60 = vld [vmem:[%s13726_s5 + $0x238] sm:$0xff]   ;;  %v7575_v13 = vrot.slane %v13401_v3, 1 }
 0x2d2   : > { %10096 = vmatprep.subr.bf16.mxu1 %v10726_v6  ;;  %v9299_v9 = vpop.f32.mrb[93].mxu1  ;;  %v7579_v56 = vrot.slane %v7512_v29, 1  ;;  %v7589_v4 = vrot.slane %v10730_v58, 1  ;;  %v7515_v43 = vrot.slane %v13339_v28, 1 }
 0x2d3   : > { %v4044_v15 = vsel %vm11257_vm12, %v4035_v54, %v4043_v14  ;;  %v4045_v48 = vrot.slane %v4043_v14, 4  ;;  %7814 = vmatmul.mubr.bf16.gmra.mrb[108].mxu0 %v7512_v29  ;;  %v13463_v32 = vadd.f32 %v9299_v9, %v9298_v31  ;;  %v9301_v45 = vpop.f32.mrb[94].mxu1  ;;  %v7591_v8 = vrot.slane %v7500_v21, 1 }
 0x2d4   : > { %4072 = vst [vmem:[%s10822_s22 + $0x34] sm:$0xf] %v4044_v15  ;;  %7821 = vmatprep.mubr.bf16.mxu0 %v7586_v52  ;;  %v9302_v11 = vpop.f32.mrb[95].mxu1  ;;  %v7514_v23 = vsel %vm2173_vm13, %v7511_v53, %v7513_v63  ;;  %v7576_v37 = vsel %vm2173_vm13, %v7571_v20, %v7575_v13  ;;  %v7580_v3 = vsel %vm2173_vm13, %v7575_v13, %v7579_v56  ;;  %v7593_v35 = vrot.slane %v7515_v43, 1 }
 0x2d5   : > { %v4074_v25 = vsel %vm11035_vm4, %v4045_v48, %v4073_v10  ;;  %10097 = vmatpush3.bf16.msra.mxu1 %v10726_v6  ;;  %v13469_v34 = vadd.f32 %v9302_v11, %v9301_v45  ;;  %v7592_v50 = vsel %vm2173_vm13, %v7585_v7, %v7591_v8  ;;  %v7590_v18 = vsel %vm2173_vm13, %v7513_v63, %v7589_v4 }
 0x2d6   : > { %4075 = vst [vmem:[%s10822_s22 + $0x38] sm:$0x3] %v4074_v25  ;;  %10098 = vmatprep.subr.bf16.mxu1 %v10728_v44  ;;  %v7516_v42 = vsel %vm2173_vm13, %v7513_v63, %v7515_v43  ;;  %v7583_v38 = vrot.slane %v7514_v23, 1 }
 0x2d7   : > { %v7587_v28 = vrot.slane %v7516_v42, 1 }
 0x2d8   : > { %v7584_v62 = vsel %vm2173_vm13, %v7579_v56, %v7583_v38 }
 0x2d9   : > { %10099 = vmatpush3.bf16.msra.mxu1 %v10728_v44  ;;  %v9304_v46 = vpop.f32.mrb[96].mxu1  ;;  %v7588_v20 = vsel %vm2173_vm13, %v7583_v38, %v7587_v28  ;;  %v7594_v27 = vsel %vm2173_vm13, %v7587_v28, %v7593_v35 }
 0x2da   : > { %10100 = vmatprep.subr.bf16.mxu1 %v10729_v60  ;;  %v9305_v49 = vpop.f32.mrb[97].mxu1 }
 0x2db   : > { %7822 = vmatmul.mubr.bf16.gmra.mrb[112].mxu0 %v7514_v23  ;;  %v13474_v16 = vadd.f32 %v9305_v49, %v9304_v46  ;;  %v9307_v26 = vpop.f32.mrb[98].mxu1 }
 0x2dc   : > { %7829 = vmatprep.mubr.bf16.mxu0 %v7592_v50  ;;  %v9308_v22 = vpop.f32.mrb[99].mxu1 }
 0x2dd   : > { %10101 = vmatpush3.bf16.msra.mxu1 %v10729_v60  ;;  %v13477_v41 = vadd.f32 %v9308_v22, %v9307_v26 }
 0x2e0   : > { %10103 = vmatmul.mubr.bf16.vlgmr.msra.gmra.mrb[156].mxu1 %v7576_v37 }
 0x2e1   : > { %10106 = vmatprep.mubr.bf16.mxu1 %v7580_v3  ;;  %v9310_v51 = vpop.f32.mrb[100].mxu1 }
 0x2e2   : > { %v9311_v0 = vpop.f32.mrb[101].mxu1 }
 0x2e3   : > { %7830 = vmatmul.mubr.bf16.gmra.mrb[116].mxu0 %v7590_v18  ;;  %v9312_v5 = vadd.f32 %v9311_v0, %v9310_v51  ;;  %v9313_v2 = vpop.f32.mrb[102].mxu1 }
 0x2e4   : > { %v9314_v53 = vpop.f32.mrb[103].mxu1 }
 0x2e5   : > { %v9315_v7 = vadd.f32 %v9314_v53, %v9313_v2 }
 0x2e8   : > { %10107 = vmatmul.mubr.bf16.gmra.mrb[160].mxu1 %v7584_v62 }
 0x2e9   : > { %10110 = vmatprep.mubr.bf16.mxu1 %v7588_v20  ;;  %v9316_v19 = vpop.f32.mrb[104].mxu1 }
 0x2ea   : > { %v9317_v40 = vpop.f32.mrb[105].mxu1 }
 0x2eb   : > { %v9318_v24 = vadd.f32 %v9317_v40, %v9316_v19  ;;  %v9319_v39 = vpop.f32.mrb[106].mxu1 }
 0x2ec   : > { %v9320_v30 = vpop.f32.mrb[107].mxu1 }
 0x2ed   : > { %v9321_v6 = vadd.f32 %v9320_v30, %v9319_v39 }
 0x2f0   : > { %10111 = vmatmul.mubr.bf16.gmra.mrb[164].mxu1 %v7594_v27 }
 0x2f1   : > { %v9366_v12 = vpop.f32.mrb[108].mxu1 }
 0x2f2   : > { %v9367_v54 = vpop.f32.mrb[109].mxu1 }
 0x2f3   : > { %v9368_v14 = vadd.f32 %v9367_v54, %v9366_v12  ;;  %v9369_v33 = vpop.f32.mrb[110].mxu1 }
 0x2f4   : > { %v9370_v10 = vpop.f32.mrb[111].mxu1 }
 0x2f5   : > { %v10153_v29 = vadd.f32 %v9368_v14, %v13388_v17  ;;  %v9371_v15 = vadd.f32 %v9370_v10, %v9369_v33 }
 0x2f7   : > { %v10159_v48 = vadd.f32 %v9371_v15, %v13393_v57 }
 0x2f9   : > { %v9372_v52 = vpop.f32.mrb[112].mxu1 }
 0x2fa   : > { %v9373_v44 = vpop.f32.mrb[113].mxu1 }
 0x2fb   : > { %v9374_v21 = vadd.f32 %v9373_v44, %v9372_v52  ;;  %v9375_v31 = vpop.f32.mrb[114].mxu1 }
 0x2fc   : > { %v9376_v25 = vpop.f32.mrb[115].mxu1 }
 0x2fd   : > { %v13491_v9 = vadd.f32 %v9374_v21, %v13427_v47  ;;  %v9377_v45 = vadd.f32 %v9376_v25, %v9375_v31 }
 0x2ff   : > { %v13494_v63 = vadd.f32 %v9377_v45, %v13435_v36 }
 0x301   : > { %v9378_v11 = vpop.f32.mrb[116].mxu1 }
 0x302   : > { %v9379_v60 = vpop.f32.mrb[117].mxu1 }
 0x303   : > { %v9380_v8 = vadd.f32 %v9379_v60, %v9378_v11  ;;  %v9381_v23 = vpop.f32.mrb[118].mxu1 }
 0x304   : > { %v9382_v17 = vpop.f32.mrb[119].mxu1 }
 0x305   : > { %v13497_v58 = vadd.f32 %v9380_v8, %v13463_v32  ;;  %v9383_v57 = vadd.f32 %v9382_v17, %v9381_v23 }
 0x307   : > { %v13500_v50 = vadd.f32 %v9383_v57, %v13469_v34 }
 0x309   : > { %v9384_v13 = vpop.f32.mrb[120].mxu1 }
 0x30a   : > { %v9385_v46 = vpop.f32.mrb[121].mxu1 }
 0x30b   : > { %v9386_v47 = vadd.f32 %v9385_v46, %v9384_v13  ;;  %v9387_v56 = vpop.f32.mrb[122].mxu1  ;;  %v9992_v49 = vpop.f32.mrb[36].mxu0 }
 0x30c   : > { %v9388_v26 = vpop.f32.mrb[123].mxu1  ;;  %v5844_v36 = vpop.f32.mrb[37].mxu0 }
 0x30d   : > { %v13503_v4 = vadd.f32 %v9386_v47, %v13474_v16  ;;  %v9389_v43 = vadd.f32 %v9388_v26, %v9387_v56  ;;  %v13505_v22 = vpop.f32.mrb[38].mxu0 }
 0x30e   : > { %v5847_v37 = vpop.f32.mrb[39].mxu0 }
 0x30f   : > { %v13508_v32 = vadd.f32 %v9389_v43, %v13477_v41 }
 0x311   : > { %v9390_v3 = vpop.f32.mrb[124].mxu1 }
 0x312   : > { %v9391_v34 = vpop.f32.mrb[125].mxu1 }
 0x313   : > { %v9392_v18 = vadd.f32 %v9391_v34, %v9390_v3  ;;  %v9393_v42 = vpop.f32.mrb[126].mxu1  ;;  %v13510_v38 = vpop.f32.mrb[40].mxu0 }
 0x314   : > { %v9394_v51 = vpop.f32.mrb[127].mxu1  ;;  %v13512_v0 = vpop.f32.mrb[41].mxu0 }
 0x315   : > { %v13514_v28 = vadd.f32 %v9392_v18, %v9312_v5  ;;  %v9395_v16 = vadd.f32 %v9394_v51, %v9393_v42  ;;  %v13516_v2 = vpop.f32.mrb[42].mxu0 }
 0x316   : > { %v13518_v53 = vpop.f32.mrb[43].mxu0 }
 0x317   : > { %v13520_v62 = vadd.f32 %v9395_v16, %v9315_v7 }
 0x319   : > { %v9396_v41 = vpop.f32.mrb[128].mxu1 }
 0x31a   : > { %v9397_v20 = vpop.f32.mrb[129].mxu1 }
 0x31b   : > { %v9398_v19 = vadd.f32 %v9397_v20, %v9396_v41  ;;  %v9399_v35 = vpop.f32.mrb[130].mxu1  ;;  %v13522_v40 = vpop.f32.mrb[44].mxu0 }
 0x31c   : > { %v9400_v39 = vpop.f32.mrb[131].mxu1  ;;  %v13524_v30 = vpop.f32.mrb[45].mxu0 }
 0x31d   : > { %v13526_v27 = vadd.f32 %v9398_v19, %v9318_v24  ;;  %v9401_v5 = vadd.f32 %v9400_v39, %v9399_v35  ;;  %v13528_v12 = vpop.f32.mrb[46].mxu0 }
 0x31e   : > { %v13530_v54 = vpop.f32.mrb[47].mxu0 }
 0x31f   : > { %v13532_v14 = vadd.f32 %v9401_v5, %v9321_v6 }
 0x321   : > { %v9432_v7 = vpop.f32.mrb[132].mxu1 }
 0x322   : > { %v9433_v33 = vpop.f32.mrb[133].mxu1 }
 0x323   : > { %v9434_v10 = vadd.f32 %v9433_v33, %v9432_v7  ;;  %v9435_v15 = vpop.f32.mrb[134].mxu1 }
 0x324   : > { %v9436_v52 = vpop.f32.mrb[135].mxu1 }
 0x325   : > { %v10154_v44 = vadd.f32 %v10153_v29, %v9434_v10  ;;  %v9437_v21 = vadd.f32 %v9436_v52, %v9435_v15  ;;  %v6095_v52 = vld [vmem:[%s10822_s22 + $0x38] sm:$0xe] }
 0x327   : > { %v10155_v31 = vadd.f32 %v10154_v44, %v5844_v36  ;;  %v10160_v25 = vadd.f32 %v10159_v48, %v9437_v21 }
 0x329   : > { %v5903_v45 = vadd.f32 %v10155_v31, %v13140_v59  ;;  %v10161_v24 = vadd.f32 %v10160_v25, %v5847_v37  ;;  %v9438_v11 = vpop.f32.mrb[136].mxu1 }
 0x32a   : > { %v9439_v60 = vpop.f32.mrb[137].mxu1 }
 0x32b   : > { %v5915_v8 = vmax.f32 %v5903_v45, 0.0  ;;  %v5904_v23 = vadd.f32 %v10161_v24, %v13140_v59  ;;  %v9440_v17 = vadd.f32 %v9439_v60, %v9438_v11  ;;  %v9441_v6 = vpop.f32.mrb[138].mxu1  ;;  %v9498_v57 = vpop.f32.mrb[48].mxu0 }
 0x32c   : > { %v9442_v13 = vpop.f32.mrb[139].mxu1  ;;  %v9499_v46 = vpop.f32.mrb[49].mxu0 }
 0x32d   : > { %v8992_v47 = vpack.c.bf16 %v5915_v8, %v5915_v8  ;;  %v5916_v56 = vmax.f32 %v5904_v23, 0.0  ;;  %v10151_v29 = vadd.f32 %v13491_v9, %v9440_v17  ;;  %v9443_v26 = vadd.f32 %v9442_v13, %v9441_v6  ;;  %v9501_v36 = vpop.f32.mrb[50].mxu0  ;;  %v13545_v9 = vld [vmem:[%s13728_s7] ss:$0 sm:$0xff] }
 0x32e   : > { %v13537_v48 = vadd.f32 %v9499_v46, %v9498_v57  ;;  %v9502_v43 = vpop.f32.mrb[51].mxu0 }
 0x32f   : > { %v5964_v37 = vshrl.u32 %v8992_v47, 16  ;;  %v5967_v3 = vshll.u32 %v8992_v47, 16  ;;  %v8993_v34 = vpack.c.bf16 %v5916_v56, %v5916_v56  ;;  %v10152_v18 = vadd.f32 %v10151_v29, %v9992_v49 }
 0x330   : > { %v10157_v59 = vadd.f32 %v13494_v63, %v9443_v26  ;;  %v13540_v42 = vadd.f32 %v9502_v43, %v9501_v36 }
 0x331   : > { %v5966_v51 = vrot.slane %v5964_v37, 6  ;;  %v5969_v16 = vrot.slane %v5967_v3, 7  ;;  %v5973_v41 = vshrl.u32 %v8993_v34, 16  ;;  %v5976_v20 = vshll.u32 %v8993_v34, 16  ;;  %v9444_v19 = vpop.f32.mrb[140].mxu1 }
 0x332   : > { %v5905_v35 = vadd.f32 %v13545_v9, %v10152_v18  ;;  %v10158_v39 = vadd.f32 %v10157_v59, %v13505_v22  ;;  %v9445_v49 = vpop.f32.mrb[141].mxu1 }
 0x333   : > { %v5970_v5 = vor.u32 %v5969_v16, %v5966_v51  ;;  %v5975_v63 = vrot.slane %v5973_v41, 6  ;;  %v5978_v7 = vrot.slane %v5976_v20, 7  ;;  %v9446_v33 = vadd.f32 %v9445_v49, %v9444_v19  ;;  %v9447_v10 = vpop.f32.mrb[142].mxu1  ;;  %v9504_v15 = vpop.f32.mrb[52].mxu0 }
 0x334   : > { %v5917_v44 = vmax.f32 %v5905_v35, 0.0  ;;  %v5906_v21 = vadd.f32 %v13545_v9, %v10158_v39  ;;  %v9448_v31 = vpop.f32.mrb[143].mxu1  ;;  %v9505_v25 = vpop.f32.mrb[53].mxu0 }
 0x335   : > { %v5971_v45 = vrot.slane %v5970_v5, 4  ;;  %v6096_v24 = vsel %vm11233_vm11, %v5970_v5, %v6095_v52  ;;  %v5979_v22 = vor.u32 %v5978_v7, %v5975_v63  ;;  %v10166_v11 = vadd.f32 %v13497_v58, %v9446_v33  ;;  %v9507_v60 = vpop.f32.mrb[54].mxu0 }
 0x336   : > { %6097 = vst [vmem:[%s10822_s22 + $0x38] sm:$0xe] %v6096_v24  ;;  %v8994_v8 = vpack.c.bf16 %v5917_v44, %v5917_v44  ;;  %v5918_v23 = vmax.f32 %v5906_v21, 0.0  ;;  %v9449_v17 = vadd.f32 %v9448_v31, %v9447_v10  ;;  %v13555_v6 = vadd.f32 %v9505_v25, %v9504_v15  ;;  %v9508_v57 = vpop.f32.mrb[55].mxu0 }
 0x337   : > { %v5980_v13 = vsel %vm11257_vm12, %v5971_v45, %v5979_v22  ;;  %v10167_v46 = vadd.f32 %v10166_v11, %v13512_v0  ;;  %v13560_v47 = vadd.f32 %v9508_v57, %v9507_v60  ;;  %v5981_v20 = vrot.slane %v5979_v22, 4 }
 0x338   : > { %6098 = vst [vmem:[%s10822_s22 + $0x3c] sm:$0xf] %v5980_v13  ;;  %v5983_v1 = vshrl.u32 %v8994_v8, 16  ;;  %v5986_v56 = vshll.u32 %v8994_v8, 16  ;;  %v8995_v29 = vpack.c.bf16 %v5918_v23, %v5918_v23  ;;  %v10172_v58 = vadd.f32 %v13500_v50, %v9449_v17 }
 0x339   : > { %v5907_v26 = vadd.f32 %v13545_v9, %v10167_v46  ;;  %v9450_v36 = vpop.f32.mrb[144].mxu1 }
 0x33a   : > { %v5985_v43 = vrot.slane %v5983_v1, 6  ;;  %v5988_v37 = vrot.slane %v5986_v56, 7  ;;  %v5993_v3 = vshrl.u32 %v8995_v29, 16  ;;  %v5996_v34 = vshll.u32 %v8995_v29, 16  ;;  %v9451_v18 = vpop.f32.mrb[145].mxu1 }
 0x33b   : > { %v5919_v59 = vmax.f32 %v5907_v26, 0.0  ;;  %v10173_v51 = vadd.f32 %v10172_v58, %v13518_v53  ;;  %v9452_v0 = vadd.f32 %v9451_v18, %v9450_v36  ;;  %v9453_v16 = vpop.f32.mrb[146].mxu1 }
 0x33c   : > { %v9510_v41 = vpop.f32.mrb[56].mxu0  ;;  %v5989_v19 = vor.u32 %v5988_v37, %v5985_v43  ;;  %v5995_v35 = vrot.slane %v5993_v3, 6  ;;  %v5998_v39 = vrot.slane %v5996_v34, 7  ;;  %v9454_v50 = vpop.f32.mrb[147].mxu1 }
 0x33d   : > { %v9511_v49 = vpop.f32.mrb[57].mxu0  ;;  %v8996_v5 = vpack.c.bf16 %v5919_v59, %v5919_v59  ;;  %v5908_v63 = vadd.f32 %v13545_v9, %v10173_v51  ;;  %v10163_v7 = vadd.f32 %v13503_v4, %v9452_v0  ;;  %v9455_v33 = vadd.f32 %v9454_v50, %v9453_v16 }
 0x33e   : > { %v9513_v10 = vpop.f32.mrb[58].mxu0  ;;  %v5990_v53 = vsel %vm11257_vm12, %v5981_v20, %v5989_v19  ;;  %v5991_v15 = vrot.slane %v5989_v19, 4  ;;  %v5999_v52 = vor.u32 %v5998_v39, %v5995_v35  ;;  %v13570_v44 = vadd.f32 %v9511_v49, %v9510_v41 }
 0x33f   : > { %v9514_v21 = vpop.f32.mrb[59].mxu0  ;;  %6099 = vst [vmem:[%s10822_s22 + $0x40] sm:$0xf] %v5990_v53  ;;  %v6003_v31 = vshrl.u32 %v8996_v5, 16  ;;  %v6006_v25 = vshll.u32 %v8996_v5, 16  ;;  %v5920_v45 = vmax.f32 %v5908_v63, 0.0  ;;  %v10164_v24 = vadd.f32 %v10163_v7, %v13510_v38 }
 0x340   : > { %v6000_v4 = vsel %vm11257_vm12, %v5991_v15, %v5999_v52  ;;  %v10169_v22 = vadd.f32 %v13508_v32, %v9455_v33  ;;  %v13577_v11 = vadd.f32 %v9514_v21, %v9513_v10  ;;  %v6001_v13 = vrot.slane %v5999_v52, 4 }
 0x341   : > { %6100 = vst [vmem:[%s10822_s22 + $0x44] sm:$0xf] %v6000_v4  ;;  %v6005_v60 = vrot.slane %v6003_v31, 6  ;;  %v6008_v8 = vrot.slane %v6006_v25, 7  ;;  %v8997_v23 = vpack.c.bf16 %v5920_v45, %v5920_v45  ;;  %v5909_v17 = vadd.f32 %v13545_v9, %v10164_v24  ;;  %v9456_v57 = vpop.f32.mrb[148].mxu1 }
 0x342   : > { %v10170_v46 = vadd.f32 %v10169_v22, %v13516_v2  ;;  %v9457_v1 = vpop.f32.mrb[149].mxu1 }
 0x343   : > { %v6009_v38 = vor.u32 %v6008_v8, %v6005_v60  ;;  %v6013_v56 = vshrl.u32 %v8997_v23, 16  ;;  %v6016_v29 = vshll.u32 %v8997_v23, 16  ;;  %v5921_v58 = vmax.f32 %v5909_v17, 0.0  ;;  %v9459_v26 = vpop.f32.mrb[150].mxu1 }
 0x344   : > { %v9516_v32 = vpop.f32.mrb[60].mxu0  ;;  %v5910_v36 = vadd.f32 %v13545_v9, %v10170_v46  ;;  %v9458_v43 = vadd.f32 %v9457_v1, %v9456_v57  ;;  %v9460_v37 = vpop.f32.mrb[151].mxu1 }
 0x345   : > { %v9517_v3 = vpop.f32.mrb[61].mxu0  ;;  %v6010_v34 = vsel %vm11257_vm12, %v6001_v13, %v6009_v38  ;;  %v6011_v18 = vrot.slane %v6009_v38, 4  ;;  %v6015_v59 = vrot.slane %v6013_v56, 6  ;;  %v6018_v51 = vrot.slane %v6016_v29, 7 }
 0x346   : > { %v9519_v2 = vpop.f32.mrb[62].mxu0  ;;  %6101 = vst [vmem:[%s10822_s22 + $0x48] sm:$0xf] %v6010_v34  ;;  %v8998_v0 = vpack.c.bf16 %v5921_v58, %v5921_v58  ;;  %v5922_v16 = vmax.f32 %v5910_v36, 0.0  ;;  %v10178_v41 = vadd.f32 %v13514_v28, %v9458_v43  ;;  %v9461_v20 = vadd.f32 %v9460_v37, %v9459_v26 }
 0x347   : > { %v9520_v19 = vpop.f32.mrb[63].mxu0  ;;  %v6019_v35 = vor.u32 %v6018_v51, %v6015_v59  ;;  %v13587_v39 = vadd.f32 %v9517_v3, %v9516_v32 }
 0x348   : > { %v13589_v50 = vadd.f32 %v9520_v19, %v9519_v2  ;;  %v6023_v49 = vshrl.u32 %v8998_v0, 16  ;;  %v6026_v5 = vshll.u32 %v8998_v0, 16  ;;  %v8999_v63 = vpack.c.bf16 %v5922_v16, %v5922_v16 }
 0x349   : > { %v10179_v7 = vadd.f32 %v10178_v41, %v13524_v30  ;;  %v6020_v33 = vsel %vm11257_vm12, %v6011_v18, %v6019_v35  ;;  %v10184_v10 = vadd.f32 %v13520_v62, %v9461_v20  ;;  %v9462_v53 = vpop.f32.mrb[152].mxu1  ;;  %v6021_v30 = vrot.slane %v6019_v35, 4 }
 0x34a   : > { %6102 = vst [vmem:[%s10822_s22 + $0x4c] sm:$0xf] %v6020_v33  ;;  %v6025_v28 = vrot.slane %v6023_v49, 6  ;;  %v6028_v15 = vrot.slane %v6026_v5, 7  ;;  %v6033_v52 = vshrl.u32 %v8999_v63, 16  ;;  %v6036_v21 = vshll.u32 %v8999_v63, 16 }
 0x34b   : > { %v9463_v31 = vpop.f32.mrb[153].mxu1  ;;  %v5911_v25 = vadd.f32 %v13545_v9, %v10179_v7  ;;  %v10185_v45 = vadd.f32 %v10184_v10, %v13530_v54 }
 0x34c   : > { %v9464_v24 = vadd.f32 %v9463_v31, %v9462_v53  ;;  %v9465_v4 = vpop.f32.mrb[154].mxu1  ;;  %v9522_v22 = vpop.f32.mrb[64].mxu0  ;;  %v6029_v60 = vor.u32 %v6028_v15, %v6025_v28  ;;  %v6035_v8 = vrot.slane %v6033_v52, 6  ;;  %v6038_v23 = vrot.slane %v6036_v21, 7 }
 0x34d   : > { %v9466_v62 = vpop.f32.mrb[155].mxu1  ;;  %v9523_v17 = vpop.f32.mrb[65].mxu0  ;;  %v5923_v57 = vmax.f32 %v5911_v25, 0.0  ;;  %v5912_v13 = vadd.f32 %v13545_v9, %v10185_v45 }
 0x34e   : > { %v10175_v46 = vadd.f32 %v13526_v27, %v9464_v24  ;;  %v9467_v1 = vadd.f32 %v9466_v62, %v9465_v4  ;;  %v9525_v38 = vpop.f32.mrb[66].mxu0  ;;  %v6030_v54 = vsel %vm11257_vm12, %v6021_v30, %v6029_v60  ;;  %v6031_v56 = vrot.slane %v6029_v60, 4 }
 0x34f   : > { %v6039_v29 = vor.u32 %v6038_v23, %v6035_v8  ;;  %v13602_v58 = vadd.f32 %v9523_v17, %v9522_v22  ;;  %v9526_v26 = vpop.f32.mrb[67].mxu0  ;;  %6103 = vst [vmem:[%s10822_s22 + $0x50] sm:$0xf] %v6030_v54  ;;  %v9000_v32 = vpack.c.bf16 %v5923_v57, %v5923_v57  ;;  %v5924_v36 = vmax.f32 %v5912_v13, 0.0 }
 0x350   : > { %v10176_v43 = vadd.f32 %v10175_v46, %v13522_v40  ;;  %v10181_v37 = vadd.f32 %v13532_v14, %v9467_v1  ;;  %v13609_v3 = vadd.f32 %v9526_v26, %v9525_v38 }
 0x351   : > { %v6040_v27 = vsel %vm11257_vm12, %v6031_v56, %v6039_v29  ;;  %v6043_v34 = vshrl.u32 %v9000_v32, 16  ;;  %v6046_v18 = vshll.u32 %v9000_v32, 16  ;;  %v9001_v59 = vpack.c.bf16 %v5924_v36, %v5924_v36  ;;  %v6109_v32 = vld [vmem:[%s10822_s22 + $0x68] sm:$0x3] }
 0x352   : > { %6104 = vst [vmem:[%s10822_s22 + $0x54] sm:$0xf] %v6040_v27  ;;  %v5913_v51 = vadd.f32 %v13545_v9, %v10176_v43  ;;  %v10182_v2 = vadd.f32 %v10181_v37, %v13528_v12  ;;  %v6041_v19 = vrot.slane %v6039_v29, 4 }
 0x353   : > { %v6045_v0 = vrot.slane %v6043_v34, 6  ;;  %v6048_v16 = vrot.slane %v6046_v18, 7  ;;  %v6053_v41 = vshrl.u32 %v9001_v59, 16  ;;  %v6056_v20 = vshll.u32 %v9001_v59, 16 }
 0x354   : > { %v9528_v40 = vpop.f32.mrb[68].mxu0  ;;  %v5925_v14 = vmax.f32 %v5913_v51, 0.0  ;;  %v5914_v35 = vadd.f32 %v13545_v9, %v10182_v2 }
 0x355   : > { %v9529_v49 = vpop.f32.mrb[69].mxu0  ;;  %v6049_v5 = vor.u32 %v6048_v16, %v6045_v0  ;;  %v6055_v63 = vrot.slane %v6053_v41, 6  ;;  %v6058_v7 = vrot.slane %v6056_v20, 7 }
 0x356   : > { %v13615_v33 = vadd.f32 %v9529_v49, %v9528_v40  ;;  %v9531_v10 = vpop.f32.mrb[70].mxu0  ;;  %v9002_v53 = vpack.c.bf16 %v5925_v14, %v5925_v14  ;;  %v5926_v12 = vmax.f32 %v5914_v35, 0.0 }
 0x357   : > { %v9532_v28 = vpop.f32.mrb[71].mxu0  ;;  %v6050_v15 = vsel %vm11257_vm12, %v6041_v19, %v6049_v5  ;;  %v6051_v52 = vrot.slane %v6049_v5, 4  ;;  %v6059_v21 = vor.u32 %v6058_v7, %v6055_v63 }
 0x358   : > { %v13619_v31 = vadd.f32 %v9532_v28, %v9531_v10  ;;  %6105 = vst [vmem:[%s10822_s22 + $0x58] sm:$0xf] %v6050_v15  ;;  %v6063_v25 = vshrl.u32 %v9002_v53, 16  ;;  %v6066_v45 = vshll.u32 %v9002_v53, 16  ;;  %v9003_v24 = vpack.c.bf16 %v5926_v12, %v5926_v12 }
 0x359   : > { %v6060_v4 = vsel %vm11257_vm12, %v6051_v52, %v6059_v21  ;;  %v6061_v62 = vrot.slane %v6059_v21, 4 }
 0x35a   : > { %6106 = vst [vmem:[%s10822_s22 + $0x5c] sm:$0xf] %v6060_v4  ;;  %v6065_v22 = vrot.slane %v6063_v25, 6  ;;  %v6068_v30 = vrot.slane %v6066_v45, 7  ;;  %v6073_v60 = vshrl.u32 %v9003_v24, 16  ;;  %v6076_v8 = vshll.u32 %v9003_v24, 16 }
 0x35c   : > { %v9578_v23 = vpop.f32.mrb[72].mxu0  ;;  %v6069_v17 = vor.u32 %v6068_v30, %v6065_v22  ;;  %v6075_v57 = vrot.slane %v6073_v60, 6  ;;  %v6078_v13 = vrot.slane %v6076_v8, 7 }
 0x35d   : > { %v9579_v46 = vpop.f32.mrb[73].mxu0 }
 0x35e   : > { %v9580_v1 = vadd.f32 %v9579_v46, %v9578_v23  ;;  %v9581_v38 = vpop.f32.mrb[74].mxu0  ;;  %v6070_v54 = vsel %vm11257_vm12, %v6061_v62, %v6069_v17  ;;  %v6071_v56 = vrot.slane %v6069_v17, 4  ;;  %v6079_v29 = vor.u32 %v6078_v13, %v6075_v57 }
 0x35f   : > { %v9582_v26 = vpop.f32.mrb[75].mxu0  ;;  %6107 = vst [vmem:[%s10822_s22 + $0x60] sm:$0xf] %v6070_v54 }
 0x360   : > { %v10189_v36 = vadd.f32 %v9580_v1, %v13537_v48  ;;  %v9583_v43 = vadd.f32 %v9582_v26, %v9581_v38  ;;  %v6080_v37 = vsel %vm11257_vm12, %v6071_v56, %v6079_v29  ;;  %v6081_v27 = vrot.slane %v6079_v29, 4 }
 0x361   : > { %6108 = vst [vmem:[%s10822_s22 + $0x64] sm:$0xf] %v6080_v37 }
 0x362   : > { %v10195_v34 = vadd.f32 %v9583_v43, %v13540_v42  ;;  %v6110_v18 = vsel %vm11035_vm4, %v6081_v27, %v6109_v32 }
 0x363   : > { %6111 = vst [vmem:[%s10822_s22 + $0x68] sm:$0x3] %v6110_v18 }
 0x364   : > { %v9584_v59 = vpop.f32.mrb[76].mxu0 }
 0x365   : > { %v9585_v51 = vpop.f32.mrb[77].mxu0 }
 0x366   : > { %v9586_v2 = vadd.f32 %v9585_v51, %v9584_v59  ;;  %v9587_v0 = vpop.f32.mrb[78].mxu0 }
 0x367   : > { %v9588_v16 = vpop.f32.mrb[79].mxu0 }
 0x368   : > { %v10186_v41 = vadd.f32 %v9586_v2, %v13555_v6  ;;  %v9589_v48 = vadd.f32 %v9588_v16, %v9587_v0 }
 0x36a   : > { %v10192_v20 = vadd.f32 %v9589_v48, %v13560_v47 }
 0x36c   : > { %v9590_v55 = vpop.f32.mrb[80].mxu0 }
 0x36d   : > { %v9591_v40 = vpop.f32.mrb[81].mxu0 }
 0x36e   : > { %v9592_v19 = vadd.f32 %v9591_v40, %v9590_v55  ;;  %v9593_v14 = vpop.f32.mrb[82].mxu0 }
 0x36f   : > { %v9594_v35 = vpop.f32.mrb[83].mxu0 }
 0x370   : > { %v10201_v42 = vadd.f32 %v9592_v19, %v13570_v44  ;;  %v9595_v61 = vadd.f32 %v9594_v35, %v9593_v14 }
 0x372   : > { %v10207_v49 = vadd.f32 %v9595_v61, %v13577_v11 }
 0x374   : > { %v9596_v5 = vpop.f32.mrb[84].mxu0 }
 0x375   : > { %v9597_v63 = vpop.f32.mrb[85].mxu0 }
 0x376   : > { %v9598_v7 = vadd.f32 %v9597_v63, %v9596_v5  ;;  %v9599_v10 = vpop.f32.mrb[86].mxu0 }
 0x377   : > { %v9600_v53 = vpop.f32.mrb[87].mxu0 }
 0x378   : > { %v10198_v6 = vadd.f32 %v9598_v7, %v13587_v39  ;;  %v9601_v12 = vadd.f32 %v9600_v53, %v9599_v10 }
 0x37a   : > { %v10204_v47 = vadd.f32 %v9601_v12, %v13589_v50 }
 0x37d   : > { %v9602_v28 = vpop.f32.mrb[88].mxu0 }
 0x37e   : > { %v9603_v15 = vpop.f32.mrb[89].mxu0 }
 0x37f   : > { %v9604_v52 = vadd.f32 %v9603_v15, %v9602_v28  ;;  %v9605_v21 = vpop.f32.mrb[90].mxu0 }
 0x380   : > { %v9606_v25 = vpop.f32.mrb[91].mxu0 }
 0x381   : > { %v10213_v44 = vadd.f32 %v9604_v52, %v13602_v58  ;;  %v9607_v45 = vadd.f32 %v9606_v25, %v9605_v21 }
 0x383   : > { %v10219_v11 = vadd.f32 %v9607_v45, %v13609_v3 }
 0x385   : > { %v9608_v24 = vpop.f32.mrb[92].mxu0 }
 0x386   : > { %v9609_v4 = vpop.f32.mrb[93].mxu0 }
 0x387   : > { %v9610_v22 = vadd.f32 %v9609_v4, %v9608_v24  ;;  %v9611_v30 = vpop.f32.mrb[94].mxu0 }
 0x388   : > { %v9612_v60 = vpop.f32.mrb[95].mxu0 }
 0x389   : > { %v13646_v39 = vadd.f32 %v9610_v22, %v13615_v33  ;;  %v9613_v8 = vadd.f32 %v9612_v60, %v9611_v30 }
 0x38b   : > { %v13649_v50 = vadd.f32 %v9613_v8, %v13619_v31 }
 0x38d   : > { %v9644_v23 = vpop.f32.mrb[96].mxu0 }
 0x38e   : > { %v9645_v62 = vpop.f32.mrb[97].mxu0 }
 0x38f   : > { %v9646_v17 = vadd.f32 %v9645_v62, %v9644_v23  ;;  %v9647_v57 = vpop.f32.mrb[98].mxu0 }
 0x390   : > { %v9648_v58 = vpop.f32.mrb[99].mxu0 }
 0x391   : > { %v9649_v13 = vadd.f32 %v9648_v58, %v9647_v57  ;;  %v10190_v46 = vadd.f32 %v10189_v36, %v9646_v17 }
 0x393   : > { %v10196_v3 = vadd.f32 %v10195_v34, %v9649_v13 }
 0x395   : > { %v9650_v1 = vpop.f32.mrb[100].mxu0 }
 0x396   : > { %v9651_v38 = vpop.f32.mrb[101].mxu0 }
 0x397   : > { %v9652_v54 = vadd.f32 %v9651_v38, %v9650_v1  ;;  %v9653_v56 = vpop.f32.mrb[102].mxu0 }
 0x398   : > { %v9654_v29 = vpop.f32.mrb[103].mxu0 }
 0x399   : > { %v9655_v26 = vadd.f32 %v9654_v29, %v9653_v56  ;;  %v10187_v33 = vadd.f32 %v10186_v41, %v9652_v54 }
 0x39b   : > { %v10193_v32 = vadd.f32 %v10192_v20, %v9655_v26 }
 0x39e   : > { %v9656_v43 = vpop.f32.mrb[104].mxu0 }
 0x39f   : > { %v9657_v37 = vpop.f32.mrb[105].mxu0 }
 0x3a0   : > { %v9658_v31 = vadd.f32 %v9657_v37, %v9656_v43  ;;  %v9659_v27 = vpop.f32.mrb[106].mxu0 }
 0x3a1   : > { %v9660_v18 = vpop.f32.mrb[107].mxu0 }
 0x3a2   : > { %v9661_v59 = vadd.f32 %v9660_v18, %v9659_v27  ;;  %v10202_v51 = vadd.f32 %v10201_v42, %v9658_v31 }
 0x3a4   : > { %v13651_v2 = vadd.f32 %v10207_v49, %v9661_v59 }
 0x3a6   : > { %v9662_v0 = vpop.f32.mrb[108].mxu0 }
 0x3a7   : > { %v9663_v36 = vpop.f32.mrb[109].mxu0 }
 0x3a8   : > { %v9664_v34 = vadd.f32 %v9663_v36, %v9662_v0  ;;  %v9665_v16 = vpop.f32.mrb[110].mxu0 }
 0x3a9   : > { %v9666_v48 = vpop.f32.mrb[111].mxu0 }
 0x3aa   : > { %v9667_v55 = vadd.f32 %v9666_v48, %v9665_v16  ;;  %v10199_v40 = vadd.f32 %v10198_v6, %v9664_v34 }
 0x3ac   : > { %v13653_v19 = vadd.f32 %v10204_v47, %v9667_v55 }
 0x3ae   : > { %v9668_v41 = vpop.f32.mrb[112].mxu0 }
 0x3af   : > { %v9669_v20 = vpop.f32.mrb[113].mxu0 }
 0x3b0   : > { %v9670_v14 = vadd.f32 %v9669_v20, %v9668_v41  ;;  %v9671_v35 = vpop.f32.mrb[114].mxu0  ;;  %v8111_v20 = vld [vmem:[%s10822_s22 + $0x68] sm:$0xf] }
 0x3b1   : > { %v9672_v61 = vpop.f32.mrb[115].mxu0 }
 0x3b2   : > { %v9673_v5 = vadd.f32 %v9672_v61, %v9671_v35  ;;  %v13655_v63 = vadd.f32 %v10213_v44, %v9670_v14 }
 0x3b3   : > { %v10104_v42 = vpop.f32.mrb[156].mxu1 }
 0x3b4   : > { %v13657_v49 = vadd.f32 %v10219_v11, %v9673_v5  ;;  %v10188_v7 = vadd.f32 %v10187_v33, %v10104_v42  ;;  %v7872_v10 = vpop.f32.mrb[157].mxu1 }
 0x3b5   : > { %v10191_v53 = vadd.f32 %v10190_v46, %v7872_v10  ;;  %v10105_v12 = vpop.f32.mrb[158].mxu1 }
 0x3b6   : > { %v9674_v28 = vpop.f32.mrb[116].mxu0  ;;  %v7933_v6 = vadd.f32 %v13545_v9, %v10188_v7  ;;  %v10194_v47 = vadd.f32 %v10193_v32, %v10105_v12  ;;  %v7875_v15 = vpop.f32.mrb[159].mxu1 }
 0x3b7   : > { %v9675_v52 = vpop.f32.mrb[117].mxu0  ;;  %v7931_v21 = vadd.f32 %v13545_v9, %v10191_v53  ;;  %v10197_v25 = vadd.f32 %v10196_v3, %v7875_v15 }
 0x3b8   : > { %v9676_v45 = vadd.f32 %v9675_v52, %v9674_v28  ;;  %v9677_v24 = vpop.f32.mrb[118].mxu0  ;;  %v7945_v44 = vmax.f32 %v7933_v6, 0.0  ;;  %v7934_v4 = vadd.f32 %v13545_v9, %v10194_v47 }
 0x3b9   : > { %v9678_v11 = vpop.f32.mrb[119].mxu0  ;;  %v7943_v22 = vmax.f32 %v7931_v21, 0.0  ;;  %v7932_v30 = vadd.f32 %v13545_v9, %v10197_v25 }
 0x3ba   : > { %v9679_v60 = vadd.f32 %v9678_v11, %v9677_v24  ;;  %v10211_v8 = vadd.f32 %v13646_v39, %v9676_v45  ;;  %v9006_v23 = vpack.c.bf16 %v7945_v44, %v7945_v44  ;;  %v7946_v62 = vmax.f32 %v7934_v4, 0.0 }
 0x3bb   : > { %v9004_v17 = vpack.c.bf16 %v7943_v22, %v7943_v22  ;;  %v7944_v57 = vmax.f32 %v7932_v30, 0.0  ;;  %v10108_v58 = vpop.f32.mrb[160].mxu1 }
 0x3bc   : > { %v10217_v13 = vadd.f32 %v13649_v50, %v9679_v60  ;;  %v8009_v46 = vshrl.u32 %v9006_v23, 16  ;;  %v9007_v3 = vpack.c.bf16 %v7946_v62, %v7946_v62  ;;  %v10200_v1 = vadd.f32 %v10199_v40, %v10108_v58  ;;  %v7888_v38 = vpop.f32.mrb[161].mxu1 }
 0x3bd   : > { %v8012_v54 = vshll.u32 %v9006_v23, 16  ;;  %v7992_v56 = vshrl.u32 %v9004_v17, 16  ;;  %v9005_v29 = vpack.c.bf16 %v7944_v57, %v7944_v57  ;;  %v10203_v26 = vadd.f32 %v10202_v51, %v7888_v38  ;;  %v10109_v33 = vpop.f32.mrb[162].mxu1 }
 0x3be   : > { %v8011_v32 = vrot.slane %v8009_v46, 7  ;;  %v7995_v43 = vshll.u32 %v9004_v17, 16  ;;  %v8018_v37 = vshrl.u32 %v9007_v3, 16  ;;  %v7937_v39 = vadd.f32 %v13545_v9, %v10200_v1  ;;  %v7891_v31 = vpop.f32.mrb[163].mxu1 }
 0x3bf   : > { %v7994_v27 = vrot.slane %v7992_v56, 7  ;;  %v8021_v18 = vshll.u32 %v9007_v3, 16  ;;  %v8000_v59 = vshrl.u32 %v9005_v29, 16  ;;  %v7935_v50 = vadd.f32 %v13545_v9, %v10203_v26 }
 0x3c0   : > { %v8014_v0 = vor.u32 %v8012_v54, %v8011_v32  ;;  %v8020_v36 = vrot.slane %v8018_v37, 7  ;;  %v8003_v34 = vshll.u32 %v9005_v29, 16  ;;  %v7949_v16 = vmax.f32 %v7937_v39, 0.0 }
 0x3c1   : > { %v8016_v48 = vrot.slane %v8011_v32, 4  ;;  %v7997_v51 = vor.u32 %v7995_v43, %v7994_v27  ;;  %v8002_v55 = vrot.slane %v8000_v59, 7  ;;  %v7947_v40 = vmax.f32 %v7935_v50, 0.0 }
 0x3c2   : > { %v7998_v41 = vrot.slane %v7994_v27, 4  ;;  %v8023_v14 = vor.u32 %v8021_v18, %v8020_v36  ;;  %v9010_v35 = vpack.c.bf16 %v7949_v16, %v7949_v16  ;;  %v10206_v61 = vadd.f32 %v13653_v19, %v10109_v33 }
 0x3c3   : > { %v8112_v42 = vsel %vm11116_vm7, %v7997_v51, %v8111_v20  ;;  %v8005_v7 = vor.u32 %v8003_v34, %v8002_v55  ;;  %v8007_v10 = vrot.slane %v8002_v55, 4  ;;  %v9008_v53 = vpack.c.bf16 %v7947_v40, %v7947_v40  ;;  %v10112_v12 = vpop.f32.mrb[164].mxu1 }
 0x3c4   : > { %8113 = vst [vmem:[%s10822_s22 + $0x68] sm:$0xf] %v8112_v42  ;;  %v8024_v6 = vsel %vm11550_vm2, %v8016_v48, %v8023_v14  ;;  %v7938_v47 = vadd.f32 %v13545_v9, %v10206_v61  ;;  %v7904_v15 = vpop.f32.mrb[165].mxu1  ;;  %v8045_v21 = vshrl.u32 %v9010_v35, 16  ;;  %v10209_v4 = vadd.f32 %v13651_v2, %v7891_v31 }
 0x3c5   : > { %8116 = vst [vmem:[%s10822_s22 + $0x74] sm:$0xf] %v8024_v6  ;;  %v8006_v19 = vsel %vm11550_vm2, %v7998_v41, %v8005_v7  ;;  %v8015_v52 = vsel %vm11550_vm2, %v8007_v10, %v8014_v0  ;;  %v8027_v25 = vshrl.u32 %v9008_v53, 16  ;;  %v10113_v45 = vpop.f32.mrb[166].mxu1  ;;  %v8030_v24 = vshll.u32 %v9008_v53, 16 }
 0x3c6   : > { %8114 = vst [vmem:[%s10822_s22 + $0x6c] sm:$0xf] %v8006_v19  ;;  %8115 = vst [vmem:[%s10822_s22 + $0x70] sm:$0xf] %v8015_v52  ;;  %v7950_v44 = vmax.f32 %v7938_v47, 0.0  ;;  %v10212_v11 = vadd.f32 %v10211_v8, %v10112_v12  ;;  %v7907_v22 = vpop.f32.mrb[167].mxu1  ;;  %v10215_v60 = vadd.f32 %v13655_v63, %v7904_v15  ;;  %v10218_v23 = vadd.f32 %v10217_v13, %v10113_v45 }
 0x3c7   : > { %v8029_v30 = vrot.slane %v8027_v25, 7  ;;  %v10221_v62 = vadd.f32 %v13657_v49, %v7907_v22  ;;  %v7936_v57 = vadd.f32 %v13545_v9, %v10209_v4  ;;  %v8025_v58 = vrot.slane %v8020_v36, 4  ;;  %v8125_v52 = vld [vmem:[%s10822_s22 + $0x98] sm:$0x1] }
 0x3c8   : > { %v9011_v17 = vpack.c.bf16 %v7950_v44, %v7950_v44  ;;  %v7941_v3 = vadd.f32 %v13545_v9, %v10212_v11  ;;  %v7939_v1 = vadd.f32 %v13545_v9, %v10215_v60  ;;  %v8047_v38 = vrot.slane %v8045_v21, 7 }
 0x3c9   : > { %v8032_v46 = vor.u32 %v8030_v24, %v8029_v30  ;;  %v7948_v8 = vmax.f32 %v7936_v57, 0.0  ;;  %v7942_v54 = vadd.f32 %v13545_v9, %v10218_v23  ;;  %v7940_v49 = vadd.f32 %v13545_v9, %v10221_v62 }
 0x3ca   : > { %v8054_v2 = vshrl.u32 %v9011_v17, 16  ;;  %v7953_v13 = vmax.f32 %v7941_v3, 0.0  ;;  %v7951_v56 = vmax.f32 %v7939_v1, 0.0  ;;  %v8057_v26 = vshll.u32 %v9011_v17, 16 }
 0x3cb   : > { %v8033_v63 = vsel %vm11550_vm2, %v8025_v58, %v8032_v46  ;;  %v9009_v33 = vpack.c.bf16 %v7948_v8, %v7948_v8  ;;  %v7954_v32 = vmax.f32 %v7942_v54, 0.0  ;;  %v7952_v39 = vmax.f32 %v7940_v49, 0.0 }
 0x3cc   : > { %8117 = vst [vmem:[%s10822_s22 + $0x78] sm:$0xf] %v8033_v63  ;;  %v8056_v29 = vrot.slane %v8054_v2, 7  ;;  %v9014_v43 = vpack.c.bf16 %v7953_v13, %v7953_v13  ;;  %v9012_v37 = vpack.c.bf16 %v7951_v56, %v7951_v56  ;;  %v8052_v31 = vrot.slane %v8047_v38, 4 }
 0x3cd   : > { %v8036_v18 = vshrl.u32 %v9009_v33, 16  ;;  %v8048_v59 = vshll.u32 %v9010_v35, 16  ;;  %v8039_v50 = vshll.u32 %v9009_v33, 16  ;;  %v9015_v16 = vpack.c.bf16 %v7954_v32, %v7954_v32 }
 0x3ce   : > { %v8059_v27 = vor.u32 %v8057_v26, %v8056_v29  ;;  %v8081_v0 = vshrl.u32 %v9014_v43, 16  ;;  %v8063_v36 = vshrl.u32 %v9012_v37, 16  ;;  %v9013_v48 = vpack.c.bf16 %v7952_v39, %v7952_v39 }
 0x3cf   : > { %v8038_v9 = vrot.slane %v8036_v18, 7  ;;  %v8050_v51 = vor.u32 %v8048_v59, %v8047_v38  ;;  %v8066_v41 = vshll.u32 %v9012_v37, 16  ;;  %v8034_v20 = vrot.slane %v8029_v30, 4 }
 0x3d0   : > { %v8060_v34 = vsel %vm11550_vm2, %v8052_v31, %v8059_v27  ;;  %v8083_v55 = vrot.slane %v8081_v0, 7  ;;  %v8065_v40 = vrot.slane %v8063_v36, 7  ;;  %v8090_v61 = vshrl.u32 %v9015_v16, 16 }
 0x3d1   : > { %8120 = vst [vmem:[%s10822_s22 + $0x84] sm:$0xf] %v8060_v34  ;;  %v8041_v14 = vor.u32 %v8039_v50, %v8038_v9  ;;  %v8043_v35 = vrot.slane %v8038_v9, 4  ;;  %v8061_v5 = vrot.slane %v8056_v29, 4  ;;  %v8093_v7 = vshll.u32 %v9015_v16, 16 }
 0x3d2   : > { %v8068_v42 = vor.u32 %v8066_v41, %v8065_v40  ;;  %v8092_v12 = vrot.slane %v8090_v61, 7  ;;  %v8072_v6 = vshrl.u32 %v9013_v48, 16  ;;  %v8084_v47 = vshll.u32 %v9014_v43, 16 }
 0x3d3   : > { %v8042_v10 = vsel %vm11550_vm2, %v8034_v20, %v8041_v14  ;;  %v8051_v53 = vsel %vm11550_vm2, %v8043_v35, %v8050_v51  ;;  %v8088_v15 = vrot.slane %v8083_v55, 4  ;;  %v8075_v24 = vshll.u32 %v9013_v48, 16 }
 0x3d4   : > { %8118 = vst [vmem:[%s10822_s22 + $0x7c] sm:$0xf] %v8042_v10  ;;  %8119 = vst [vmem:[%s10822_s22 + $0x80] sm:$0xf] %v8051_v53  ;;  %v8069_v19 = vsel %vm11550_vm2, %v8061_v5, %v8068_v42  ;;  %v8095_v21 = vor.u32 %v8093_v7, %v8092_v12  ;;  %v8097_v25 = vrot.slane %v8092_v12, 4  ;;  %v8074_v45 = vrot.slane %v8072_v6, 7 }
 0x3d5   : > { %8121 = vst [vmem:[%s10822_s22 + $0x88] sm:$0xf] %v8069_v19  ;;  %v8086_v44 = vor.u32 %v8084_v47, %v8083_v55  ;;  %v8070_v4 = vrot.slane %v8065_v40, 4 }
 0x3d6   : > { %v8096_v11 = vsel %vm11550_vm2, %v8088_v15, %v8095_v21  ;;  %v8126_v30 = vsel %vm11711_vm5, %v8097_v25, %v8125_v52  ;;  %v8077_v60 = vor.u32 %v8075_v24, %v8074_v45  ;;  %v8079_v23 = vrot.slane %v8074_v45, 4 }
 0x3d7   : > { %8124 = vst [vmem:[%s10822_s22 + $0x94] sm:$0xf] %v8096_v11  ;;  %8127 = vst [vmem:[%s10822_s22 + $0x98] sm:$0x1] %v8126_v30 }
 0x3d8   : > { %v8078_v62 = vsel %vm11550_vm2, %v8070_v4, %v8077_v60  ;;  %v8087_v17 = vsel %vm11550_vm2, %v8079_v23, %v8086_v44 }
 0x3d9   : > { %8122 = vst [vmem:[%s10822_s22 + $0x8c] sm:$0xf] %v8078_v62  ;;  %8123 = vst [vmem:[%s10822_s22 + $0x90] sm:$0xf] %v8087_v17 }
 0x3da PF: > { %s18_s27 = sadd.s32 1, %s10742_s27  }
 0x3db   : > { %p15_p4 = scmp.ge.s32.totalorder %s18_s27, 4  }
 0x3dd   :  { %17 = sbr.rel (!%p15_p4) target bundleno = 1 (0x1), region = 84 }

</bundles_post_ra>
